<compile_context>
chip_gen: v7x
topology: tpu7x:2x2x1
jax: 0.10.0
libtpu: 0.0.40
codegen_flags: <defaults>
</compile_context>

<pallas_src>
import jax
import jax.numpy as jnp
from jax.experimental import pallas as pl
from jax.experimental.pallas import tpu as pltpu

# ----- model sizes (consistent with the module's implied shapes) -----
OBS = 32                    # observation dim (input to base nn)
HID = 64                    # nn.output_size (actor_features dim)
ACT = 8                     # action_space.n
OPP = 3                     # opp_agents
RNN = HID                   # recurrent_hidden_state_size (base is non-recurrent)

TB = 128                    # batch tile (MXU M dim; natural for v5e, fine v6e/v7x)
OUT_W = 128                 # lane-dense output slab width

# fused-head lane layout (matmul result):  [ value(1) | opp_logits(24) | self_logits(8) | pad ]
H_VAL = 0
H_OPP = 1
H_SELF = H_OPP + OPP * ACT            # 25

# output slab lane layout: [ value(1) | dist(8) | opp_probs(24) | dist_ent(1) | opp_ent(1) | pad ]
V_OFF = 0
DIST_OFF = 1
OPP_OFF = DIST_OFF + ACT              # 9
DENT_OFF = OPP_OFF + OPP * ACT        # 33
OENT_OFF = DENT_OFF + 1               # 34
USED = OENT_OFF + 1                   # 35


def _softmax_and_entropy(lg):
    """Row softmax + per-row entropy in the NaN-safe logsumexp form."""
    m = jnp.max(lg, axis=-1, keepdims=True)
    e = jnp.exp(lg - m)
    s = jnp.sum(e, axis=-1, keepdims=True)
    p = e * pl.reciprocal(s, approx=True)
    ent = jnp.log(s) - jnp.sum(p * (lg - m), axis=-1, keepdims=True)
    return p, ent


def policy_kernel(x_ref, w1_ref, b1_ref, w2_ref, b2_ref,
                  wh_ref, bh_ref, wao_ref, out_ref):
    x = x_ref[...]                                            # (TB, OBS)
    tb = x.shape[0]

    # base nn: two tanh MLP layers -> actor_features h2
    h1 = jnp.tanh(
        jnp.dot(x, w1_ref[...], preferred_element_type=jnp.float32) + b1_ref[...]
    )
    h2 = jnp.tanh(
        jnp.dot(h1, w2_ref[...], preferred_element_type=jnp.float32) + b2_ref[...]
    )

    # one fused, lane-dense head matmul: [value | opp_logits | self_logits(+ba)]
    heads = (
        jnp.dot(h2, wh_ref[...], preferred_element_type=jnp.float32) + bh_ref[...]
    )                                                          # (TB, 128)

    value = heads[:, H_VAL:H_VAL + 1]                          # (TB, 1)

    # Agent_Actor: per-opponent softmax over groups of ACT lanes (local values only)
    opp_ps = []
    opp_ent = jnp.zeros((tb, 1), jnp.float32)
    for k in range(OPP):                                       # static unroll
        lg = heads[:, H_OPP + k * ACT:H_OPP + (k + 1) * ACT]
        p, ent = _softmax_and_entropy(lg)
        opp_ps.append(p)
        opp_ent = opp_ent + ent                                # sum over opponents, per row
    opp_probs = jnp.concatenate(opp_ps, axis=-1)               # (TB, OPP*ACT)

    # self-action distribution conditioned on (actor_features, opp_probs)
    logits = heads[:, H_SELF:H_SELF + ACT] + jnp.dot(
        opp_probs, wao_ref[...], preferred_element_type=jnp.float32
    )
    dist, dist_ent = _softmax_and_entropy(logits)              # (TB, ACT), (TB, 1)

    # single lane-dense output slab
    pad = jnp.zeros((tb, OUT_W - USED), jnp.float32)
    out_ref[...] = jnp.concatenate(
        [value, dist, opp_probs, dist_ent, opp_ent, pad], axis=-1
    )


@jax.jit
def policy_forward_pallas(x, params):
    (w1, b1, w2, b2, wv, bv, wopp, bopp, wa_h, wa_o, ba) = params

    # fuse the three h2 heads into one lane-dense [HID, 128] weight / [1, 128] bias
    wh = jnp.concatenate([wv, wopp, wa_h], axis=1)             # (HID, 33)
    bh = jnp.concatenate([bv, bopp, ba], axis=1)               # (1, 33)
    wh = jnp.pad(wh, ((0, 0), (0, OUT_W - wh.shape[1])))
    bh = jnp.pad(bh, ((0, 0), (0, OUT_W - bh.shape[1])))

    b = x.shape[0]
    bp = ((b + TB - 1) // TB) * TB
    if bp != b:
        x = jnp.pad(x, ((0, bp - b), (0, 0)))
    n_tiles = bp // TB

    out = pl.pallas_call(
        policy_kernel,
        out_shape=jax.ShapeDtypeStruct((bp, OUT_W), jnp.float32),
        grid=(n_tiles,),
        in_specs=[
            pl.BlockSpec((TB, OBS), lambda i: (i, 0)),          # x: streamed per tile
            pl.BlockSpec((OBS, HID), lambda i: (0, 0)),         # weights: constant index_map
            pl.BlockSpec((1, HID), lambda i: (0, 0)),           #  -> DMA'd once, stay resident
            pl.BlockSpec((HID, HID), lambda i: (0, 0)),
            pl.BlockSpec((1, HID), lambda i: (0, 0)),
            pl.BlockSpec((HID, OUT_W), lambda i: (0, 0)),
            pl.BlockSpec((1, OUT_W), lambda i: (0, 0)),
            pl.BlockSpec((OPP * ACT, ACT), lambda i: (0, 0)),
        ],
        out_specs=pl.BlockSpec((TB, OUT_W), lambda i: (i, 0)),
        compiler_params=pltpu.CompilerParams(
            dimension_semantics=("parallel",),                  # megacore on v7x
        ),
    )(x, w1, b1, w2, b2, wh, bh, wa_o)

    return out[:b]


def policy_act(params, inputs, rnn_hxs, masks, deterministic=False, rng=None):
    """Mirrors Policy.act(): returns (value, action, action_log_probs,
    dist_entropy, opp_action_probs, opp_actions_entropy, rnn_hxs)."""
    out = policy_forward_pallas(inputs, params)
    b = inputs.shape[0]

    value = out[:, V_OFF:V_OFF + 1]                             # (B, 1)
    dist = out[:, DIST_OFF:DIST_OFF + ACT]                      # (B, ACT)
    opp_action_probs = out[:, OPP_OFF:OPP_OFF + OPP * ACT].reshape(b, OPP, ACT)
    dist_entropy = jnp.mean(out[:, DENT_OFF])                   # global mean (tile-safe)
    opp_actions_entropy = jnp.mean(out[:, OENT_OFF]) / OPP      # mean over B*OPP heads

    if deterministic:
        action = jnp.argmax(dist, axis=1)[:, None]              # (B, 1) int
    else:
        if rng is None:
            rng = jax.random.PRNGKey(0)
        action = jax.random.categorical(rng, jnp.log(dist), axis=-1)[:, None]
    action_log_probs = jnp.log(jnp.take_along_axis(dist, action, axis=1))  # (B, 1)

    # base nn is non-recurrent -> rnn_hxs passed through unchanged
    return (value, action, action_log_probs, dist_entropy,
            opp_action_probs, opp_actions_entropy, rnn_hxs)


def policy_forward_ref(x, params):
    """Pure-JAX reference of the same forward pass (for correctness check)."""
    (w1, b1, w2, b2, wv, bv, wopp, bopp, wa_h, wa_o, ba) = params
    h1 = jnp.tanh(x @ w1 + b1)
    h2 = jnp.tanh(h1 @ w2 + b2)
    value = h2 @ wv + bv
    opp_logits = (h2 @ wopp + bopp).reshape(-1, OPP, ACT)
    opp_probs = jax.nn.softmax(opp_logits, axis=-1)
    logits = h2 @ wa_h + opp_probs.reshape(-1, OPP * ACT) @ wa_o + ba
    dist = jax.nn.softmax(logits, axis=-1)
    return value, dist, opp_probs


def init_params(key):
    ks = jax.random.split(key, 8)

    def lin(k, fan_in, fan_out):
        scale = 1.0 / jnp.sqrt(jnp.float32(fan_in))
        return jax.random.uniform(k, (fan_in, fan_out), jnp.float32, -scale, scale)

    w1 = lin(ks[0], OBS, HID)
    b1 = jnp.zeros((1, HID), jnp.float32)
    w2 = lin(ks[1], HID, HID)
    b2 = jnp.zeros((1, HID), jnp.float32)
    wv = lin(ks[2], HID, 1)
    bv = jnp.zeros((1, 1), jnp.float32)
    wopp = lin(ks[3], HID, OPP * ACT)
    bopp = jnp.zeros((1, OPP * ACT), jnp.float32)
    wa_h = lin(ks[4], HID, ACT)
    wa_o = lin(ks[5], OPP * ACT, ACT)
    ba = jnp.zeros((1, ACT), jnp.float32)
    return (w1, b1, w2, b2, wv, bv, wopp, bopp, wa_h, wa_o, ba)


if __name__ == "__main__":
    B = 256  # batched environment steps (2 grid tiles of 128 rows)

    key = jax.random.PRNGKey(0)
    k_param, k_x, k_sample = jax.random.split(key, 3)

    params = init_params(k_param)
    inputs = jax.random.normal(k_x, (B, OBS), jnp.float32)
    rnn_hxs = jnp.zeros((B, RNN), jnp.float32)
    masks = jnp.ones((B, 1), jnp.float32)

    # deterministic (argmax) path
    outs = policy_act(params, inputs, rnn_hxs, masks, deterministic=True)
    outs = jax.block_until_ready(outs)
    (value, action, action_log_probs, dist_entropy,
     opp_action_probs, opp_actions_entropy, rnn_hxs_out) = outs

    assert value.shape == (B, 1)
    assert action.shape == (B, 1)
    assert action_log_probs.shape == (B, 1)
    assert opp_action_probs.shape == (B, OPP, ACT)
    assert dist_entropy.shape == ()
    assert opp_actions_entropy.shape == ()

    # stochastic (categorical sampling) path
    outs_s = policy_act(params, inputs, rnn_hxs, masks,
                        deterministic=False, rng=k_sample)
    outs_s = jax.block_until_ready(outs_s)
    assert outs_s[1].shape == (B, 1)

    # correctness vs pure-JAX reference
    slab = jax.block_until_ready(policy_forward_pallas(inputs, params))
    v_ref, dist_ref, opp_ref = policy_forward_ref(inputs, params)
    assert jnp.allclose(slab[:, V_OFF:V_OFF + 1], v_ref, atol=1e-2, rtol=1e-2)
    assert jnp.allclose(slab[:, DIST_OFF:DIST_OFF + ACT], dist_ref,
                        atol=1e-2, rtol=1e-2)
    assert jnp.allclose(slab[:, OPP_OFF:OPP_OFF + OPP * ACT],
                        opp_ref.reshape(B, OPP * ACT), atol=1e-2, rtol=1e-2)
    assert bool(jnp.all(jnp.isfinite(slab)))

    print("KERNEL_OK")
</pallas_src>

<mosaic_0001>
module attributes {stable_mosaic.version = 11 : i64} {
  func.func @policy_kernel(%arg0: i32, %arg1: memref<128x32xf32, #tpu.memory_space<vmem>>, %arg2: memref<32x64xf32, #tpu.memory_space<vmem>>, %arg3: memref<1x64xf32, #tpu.memory_space<vmem>>, %arg4: memref<64x64xf32, #tpu.memory_space<vmem>>, %arg5: memref<1x64xf32, #tpu.memory_space<vmem>>, %arg6: memref<64x128xf32, #tpu.memory_space<vmem>>, %arg7: memref<1x128xf32, #tpu.memory_space<vmem>>, %arg8: memref<24x8xf32, #tpu.memory_space<vmem>>, %arg9: memref<128x128xf32, #tpu.memory_space<vmem>>) attributes {dimension_semantics = [#tpu.dimension_semantics<parallel>], iteration_bounds = array<i64: 2>, scalar_prefetch = 0 : i64, scratch_operands = 0 : i64, tpu.core_type = #tpu.core_type<tc>, window_params = [{transform_indices = @transform_0, window_bounds = array<i64: 128, 32>}, {pipeline_mode = #tpu.pipeline_mode<synchronous>, transform_indices = @transform_1, window_bounds = array<i64: 32, 64>}, {pipeline_mode = #tpu.pipeline_mode<synchronous>, transform_indices = @transform_2, window_bounds = array<i64: 1, 64>}, {pipeline_mode = #tpu.pipeline_mode<synchronous>, transform_indices = @transform_3, window_bounds = array<i64: 64, 64>}, {pipeline_mode = #tpu.pipeline_mode<synchronous>, transform_indices = @transform_4, window_bounds = array<i64: 1, 64>}, {pipeline_mode = #tpu.pipeline_mode<synchronous>, transform_indices = @transform_5, window_bounds = array<i64: 64, 128>}, {pipeline_mode = #tpu.pipeline_mode<synchronous>, transform_indices = @transform_6, window_bounds = array<i64: 1, 128>}, {pipeline_mode = #tpu.pipeline_mode<synchronous>, transform_indices = @transform_7, window_bounds = array<i64: 24, 8>}, {transform_indices = @transform_8, window_bounds = array<i64: 128, 128>}]} {
    %c0 = arith.constant 0 : index
    %c0_0 = arith.constant 0 : index
    %0 = vector.load %arg1[%c0, %c0_0] : memref<128x32xf32, #tpu.memory_space<vmem>>, vector<128x32xf32>
    %c0_1 = arith.constant 0 : index
    %c0_2 = arith.constant 0 : index
    %1 = vector.load %arg2[%c0_1, %c0_2] : memref<32x64xf32, #tpu.memory_space<vmem>>, vector<32x64xf32>
    %cst = arith.constant dense<0.000000e+00> : vector<128x64xf32>
    %2 = tpu.matmul %0, %1, %cst {dimension_numbers = #tpu.dot_dimension_numbers<[1], [0], [0], [1], [0, 0, 1, 1], [], []>} : vector<128x32xf32>, vector<32x64xf32>, vector<128x64xf32> -> vector<128x64xf32>
    %c0_3 = arith.constant 0 : index
    %c0_4 = arith.constant 0 : index
    %3 = vector.load %arg3[%c0_3, %c0_4] : memref<1x64xf32, #tpu.memory_space<vmem>>, vector<1x64xf32>
    %4 = vector.broadcast %3 : vector<1x64xf32> to vector<128x64xf32>
    %5 = arith.addf %2, %4 : vector<128x64xf32>
    %6 = math.tanh %5 : vector<128x64xf32>
    %c0_5 = arith.constant 0 : index
    %c0_6 = arith.constant 0 : index
    %7 = vector.load %arg4[%c0_5, %c0_6] : memref<64x64xf32, #tpu.memory_space<vmem>>, vector<64x64xf32>
    %cst_7 = arith.constant dense<0.000000e+00> : vector<128x64xf32>
    %8 = tpu.matmul %6, %7, %cst_7 {dimension_numbers = #tpu.dot_dimension_numbers<[1], [0], [0], [1], [0, 0, 1, 1], [], []>} : vector<128x64xf32>, vector<64x64xf32>, vector<128x64xf32> -> vector<128x64xf32>
    %c0_8 = arith.constant 0 : index
    %c0_9 = arith.constant 0 : index
    %9 = vector.load %arg5[%c0_8, %c0_9] : memref<1x64xf32, #tpu.memory_space<vmem>>, vector<1x64xf32>
    %10 = vector.broadcast %9 : vector<1x64xf32> to vector<128x64xf32>
    %11 = arith.addf %8, %10 : vector<128x64xf32>
    %12 = math.tanh %11 : vector<128x64xf32>
    %c0_10 = arith.constant 0 : index
    %c0_11 = arith.constant 0 : index
    %13 = vector.load %arg6[%c0_10, %c0_11] : memref<64x128xf32, #tpu.memory_space<vmem>>, vector<64x128xf32>
    %cst_12 = arith.constant dense<0.000000e+00> : vector<128x128xf32>
    %14 = tpu.matmul %12, %13, %cst_12 {dimension_numbers = #tpu.dot_dimension_numbers<[1], [0], [0], [1], [0, 0, 1, 1], [], []>} : vector<128x64xf32>, vector<64x128xf32>, vector<128x128xf32> -> vector<128x128xf32>
    %c0_13 = arith.constant 0 : index
    %c0_14 = arith.constant 0 : index
    %15 = vector.load %arg7[%c0_13, %c0_14] : memref<1x128xf32, #tpu.memory_space<vmem>>, vector<1x128xf32>
    %16 = vector.broadcast %15 : vector<1x128xf32> to vector<128x128xf32>
    %17 = arith.addf %14, %16 : vector<128x128xf32>
    %18 = vector.extract_strided_slice %17 {offsets = [0, 0], sizes = [128, 1], strides = [1, 1]} : vector<128x128xf32> to vector<128x1xf32>
    %cst_15 = arith.constant 0.000000e+00 : f32
    %19 = vector.broadcast %cst_15 : f32 to vector<128x1xf32>
    %20 = vector.extract_strided_slice %17 {offsets = [0, 1], sizes = [128, 8], strides = [1, 1]} : vector<128x128xf32> to vector<128x8xf32>
    %cst_16 = arith.constant dense<0xFF800000> : vector<128xf32>
    %21 = vector.multi_reduction <maximumf>, %20, %cst_16 [1] : vector<128x8xf32> to vector<128xf32>
    %22 = vector.shape_cast %21 : vector<128xf32> to vector<128x1xf32>
    %23 = vector.broadcast %22 : vector<128x1xf32> to vector<128x8xf32>
    %24 = arith.subf %20, %23 : vector<128x8xf32>
    %25 = math.exp %24 : vector<128x8xf32>
    %cst_17 = arith.constant dense<0.000000e+00> : vector<128xf32>
    %26 = vector.multi_reduction <add>, %25, %cst_17 [1] : vector<128x8xf32> to vector<128xf32>
    %27 = vector.shape_cast %26 : vector<128xf32> to vector<128x1xf32>
    %28 = tpu.reciprocal %27 {approx = true} : vector<128x1xf32> -> vector<128x1xf32>
    %29 = vector.broadcast %28 : vector<128x1xf32> to vector<128x8xf32>
    %30 = arith.mulf %25, %29 : vector<128x8xf32>
    %31 = math.log %27 : vector<128x1xf32>
    %32 = vector.broadcast %22 : vector<128x1xf32> to vector<128x8xf32>
    %33 = arith.subf %20, %32 : vector<128x8xf32>
    %34 = arith.mulf %30, %33 : vector<128x8xf32>
    %cst_18 = arith.constant dense<0.000000e+00> : vector<128xf32>
    %35 = vector.multi_reduction <add>, %34, %cst_18 [1] : vector<128x8xf32> to vector<128xf32>
    %36 = vector.shape_cast %35 : vector<128xf32> to vector<128x1xf32>
    %37 = arith.subf %31, %36 : vector<128x1xf32>
    %38 = arith.addf %19, %37 : vector<128x1xf32>
    %39 = vector.extract_strided_slice %17 {offsets = [0, 9], sizes = [128, 8], strides = [1, 1]} : vector<128x128xf32> to vector<128x8xf32>
    %cst_19 = arith.constant dense<0xFF800000> : vector<128xf32>
    %40 = vector.multi_reduction <maximumf>, %39, %cst_19 [1] : vector<128x8xf32> to vector<128xf32>
    %41 = vector.shape_cast %40 : vector<128xf32> to vector<128x1xf32>
    %42 = vector.broadcast %41 : vector<128x1xf32> to vector<128x8xf32>
    %43 = arith.subf %39, %42 : vector<128x8xf32>
    %44 = math.exp %43 : vector<128x8xf32>
    %cst_20 = arith.constant dense<0.000000e+00> : vector<128xf32>
    %45 = vector.multi_reduction <add>, %44, %cst_20 [1] : vector<128x8xf32> to vector<128xf32>
    %46 = vector.shape_cast %45 : vector<128xf32> to vector<128x1xf32>
    %47 = tpu.reciprocal %46 {approx = true} : vector<128x1xf32> -> vector<128x1xf32>
    %48 = vector.broadcast %47 : vector<128x1xf32> to vector<128x8xf32>
    %49 = arith.mulf %44, %48 : vector<128x8xf32>
    %50 = math.log %46 : vector<128x1xf32>
    %51 = vector.broadcast %41 : vector<128x1xf32> to vector<128x8xf32>
    %52 = arith.subf %39, %51 : vector<128x8xf32>
    %53 = arith.mulf %49, %52 : vector<128x8xf32>
    %cst_21 = arith.constant dense<0.000000e+00> : vector<128xf32>
    %54 = vector.multi_reduction <add>, %53, %cst_21 [1] : vector<128x8xf32> to vector<128xf32>
    %55 = vector.shape_cast %54 : vector<128xf32> to vector<128x1xf32>
    %56 = arith.subf %50, %55 : vector<128x1xf32>
    %57 = arith.addf %38, %56 : vector<128x1xf32>
    %58 = vector.extract_strided_slice %17 {offsets = [0, 17], sizes = [128, 8], strides = [1, 1]} : vector<128x128xf32> to vector<128x8xf32>
    %cst_22 = arith.constant dense<0xFF800000> : vector<128xf32>
    %59 = vector.multi_reduction <maximumf>, %58, %cst_22 [1] : vector<128x8xf32> to vector<128xf32>
    %60 = vector.shape_cast %59 : vector<128xf32> to vector<128x1xf32>
    %61 = vector.broadcast %60 : vector<128x1xf32> to vector<128x8xf32>
    %62 = arith.subf %58, %61 : vector<128x8xf32>
    %63 = math.exp %62 : vector<128x8xf32>
    %cst_23 = arith.constant dense<0.000000e+00> : vector<128xf32>
    %64 = vector.multi_reduction <add>, %63, %cst_23 [1] : vector<128x8xf32> to vector<128xf32>
    %65 = vector.shape_cast %64 : vector<128xf32> to vector<128x1xf32>
    %66 = tpu.reciprocal %65 {approx = true} : vector<128x1xf32> -> vector<128x1xf32>
    %67 = vector.broadcast %66 : vector<128x1xf32> to vector<128x8xf32>
    %68 = arith.mulf %63, %67 : vector<128x8xf32>
    %69 = math.log %65 : vector<128x1xf32>
    %70 = vector.broadcast %60 : vector<128x1xf32> to vector<128x8xf32>
    %71 = arith.subf %58, %70 : vector<128x8xf32>
    %72 = arith.mulf %68, %71 : vector<128x8xf32>
    %cst_24 = arith.constant dense<0.000000e+00> : vector<128xf32>
    %73 = vector.multi_reduction <add>, %72, %cst_24 [1] : vector<128x8xf32> to vector<128xf32>
    %74 = vector.shape_cast %73 : vector<128xf32> to vector<128x1xf32>
    %75 = arith.subf %69, %74 : vector<128x1xf32>
    %76 = arith.addf %57, %75 : vector<128x1xf32>
    %77 = tpu.concatenate %30, %49, %68 in 1 : vector<128x8xf32>, vector<128x8xf32>, vector<128x8xf32> -> vector<128x24xf32>
    %78 = vector.extract_strided_slice %17 {offsets = [0, 25], sizes = [128, 8], strides = [1, 1]} : vector<128x128xf32> to vector<128x8xf32>
    %c0_25 = arith.constant 0 : index
    %c0_26 = arith.constant 0 : index
    %79 = vector.load %arg8[%c0_25, %c0_26] : memref<24x8xf32, #tpu.memory_space<vmem>>, vector<24x8xf32>
    %cst_27 = arith.constant dense<0.000000e+00> : vector<128x8xf32>
    %80 = tpu.matmul %77, %79, %cst_27 {dimension_numbers = #tpu.dot_dimension_numbers<[1], [0], [0], [1], [0, 0, 1, 1], [], []>} : vector<128x24xf32>, vector<24x8xf32>, vector<128x8xf32> -> vector<128x8xf32>
    %81 = arith.addf %78, %80 : vector<128x8xf32>
    %cst_28 = arith.constant dense<0xFF800000> : vector<128xf32>
    %82 = vector.multi_reduction <maximumf>, %81, %cst_28 [1] : vector<128x8xf32> to vector<128xf32>
    %83 = vector.shape_cast %82 : vector<128xf32> to vector<128x1xf32>
    %84 = vector.broadcast %83 : vector<128x1xf32> to vector<128x8xf32>
    %85 = arith.subf %81, %84 : vector<128x8xf32>
    %86 = math.exp %85 : vector<128x8xf32>
    %cst_29 = arith.constant dense<0.000000e+00> : vector<128xf32>
    %87 = vector.multi_reduction <add>, %86, %cst_29 [1] : vector<128x8xf32> to vector<128xf32>
    %88 = vector.shape_cast %87 : vector<128xf32> to vector<128x1xf32>
    %89 = tpu.reciprocal %88 {approx = true} : vector<128x1xf32> -> vector<128x1xf32>
    %90 = vector.broadcast %89 : vector<128x1xf32> to vector<128x8xf32>
    %91 = arith.mulf %86, %90 : vector<128x8xf32>
    %92 = math.log %88 : vector<128x1xf32>
    %93 = vector.broadcast %83 : vector<128x1xf32> to vector<128x8xf32>
    %94 = arith.subf %81, %93 : vector<128x8xf32>
    %95 = arith.mulf %91, %94 : vector<128x8xf32>
    %cst_30 = arith.constant dense<0.000000e+00> : vector<128xf32>
    %96 = vector.multi_reduction <add>, %95, %cst_30 [1] : vector<128x8xf32> to vector<128xf32>
    %97 = vector.shape_cast %96 : vector<128xf32> to vector<128x1xf32>
    %98 = arith.subf %92, %97 : vector<128x1xf32>
    %cst_31 = arith.constant 0.000000e+00 : f32
    %99 = vector.broadcast %cst_31 : f32 to vector<128x93xf32>
    %100 = tpu.concatenate %18, %91, %77, %98, %76, %99 in 1 : vector<128x1xf32>, vector<128x8xf32>, vector<128x24xf32>, vector<128x1xf32>, vector<128x1xf32>, vector<128x93xf32> -> vector<128x128xf32>
    %c0_32 = arith.constant 0 : index
    %c0_33 = arith.constant 0 : index
    %101 = vector.load %arg9[%c0_32, %c0_33] : memref<128x128xf32, #tpu.memory_space<vmem>>, vector<128x128xf32>
    tpu.vector_store %arg9[%c0_32, %c0_33], %100 {strides = array<i32>} : memref<128x128xf32, #tpu.memory_space<vmem>>, vector<128x128xf32>,
    return
  }
  func.func @transform_0(%arg0: i32) -> (i32, i32) {
    %c0_i32 = arith.constant 0 : i32
    %c0_i32_0 = arith.constant 0 : i32
    return %arg0, %c0_i32 : i32, i32
  }
  func.func @transform_1(%arg0: i32) -> (i32, i32) {
    %c0_i32 = arith.constant 0 : i32
    %c0_i32_0 = arith.constant 0 : i32
    %c0_i32_1 = arith.constant 0 : i32
    return %c0_i32, %c0_i32_0 : i32, i32
  }
  func.func @transform_2(%arg0: i32) -> (i32, i32) {
    %c0_i32 = arith.constant 0 : i32
    %c0_i32_0 = arith.constant 0 : i32
    %c0_i32_1 = arith.constant 0 : i32
    return %c0_i32, %c0_i32_0 : i32, i32
  }
  func.func @transform_3(%arg0: i32) -> (i32, i32) {
    %c0_i32 = arith.constant 0 : i32
    %c0_i32_0 = arith.constant 0 : i32
    %c0_i32_1 = arith.constant 0 : i32
    return %c0_i32, %c0_i32_0 : i32, i32
  }
  func.func @transform_4(%arg0: i32) -> (i32, i32) {
    %c0_i32 = arith.constant 0 : i32
    %c0_i32_0 = arith.constant 0 : i32
    %c0_i32_1 = arith.constant 0 : i32
    return %c0_i32, %c0_i32_0 : i32, i32
  }
  func.func @transform_5(%arg0: i32) -> (i32, i32) {
    %c0_i32 = arith.constant 0 : i32
    %c0_i32_0 = arith.constant 0 : i32
    %c0_i32_1 = arith.constant 0 : i32
    return %c0_i32, %c0_i32_0 : i32, i32
  }
  func.func @transform_6(%arg0: i32) -> (i32, i32) {
    %c0_i32 = arith.constant 0 : i32
    %c0_i32_0 = arith.constant 0 : i32
    %c0_i32_1 = arith.constant 0 : i32
    return %c0_i32, %c0_i32_0 : i32, i32
  }
  func.func @transform_7(%arg0: i32) -> (i32, i32) {
    %c0_i32 = arith.constant 0 : i32
    %c0_i32_0 = arith.constant 0 : i32
    %c0_i32_1 = arith.constant 0 : i32
    return %c0_i32, %c0_i32_0 : i32, i32
  }
  func.func @transform_8(%arg0: i32) -> (i32, i32) {
    %c0_i32 = arith.constant 0 : i32
    %c0_i32_0 = arith.constant 0 : i32
    return %arg0, %c0_i32 : i32, i32
  }
}

</mosaic_0001>

<bundles_post_ra>
// kernel: policy_forward_pallas.1
= control target key start
LH: loop header
LB: loop body
LE: loop exit
PB: predicated region body
PF: predicated region fallthrough
CT: control target
= control target key end

     0   :  { %13 = vsyncpa [#allocation3], 0  ;;  %s6957_s0 = inlined_call_operand.vmem [shape: f32[256,32], index: 0, kind: input, shape index: {}]   ;;  %s6958_s1 = inlined_call_operand.vmem [shape: f32[32,64], index: 1, kind: input, shape index: {}]   ;;  %s6959_s2 = inlined_call_operand.vmem [shape: f32[1,64], index: 2, kind: input, shape index: {}]   ;;  %s6960_s3 = inlined_call_operand.vmem [shape: f32[64,64], index: 3, kind: input, shape index: {}]   ;;  %s6961_s4 = inlined_call_operand.vmem [shape: f32[1,64], index: 4, kind: input, shape index: {}]   ;;  %s6962_s5 = inlined_call_operand.vmem [shape: f32[64,128], index: 5, kind: input, shape index: {}]   ;;  %s6963_s6 = inlined_call_operand.vmem [shape: f32[1,128], index: 6, kind: input, shape index: {}]   ;;  %s6964_s7 = inlined_call_operand.vmem [shape: f32[24,8], index: 7, kind: input, shape index: {}]   ;;  %s6965_s8 = inlined_call_operand.hbm [shape: f32[256,128], index: 8, kind: output, shape index: {}]  }
   0x1   :  { %15 = vsyncpa [#allocation3 + $0x1], 0  ;;  %s4457_s27 = smov 0   ;;  %s4459_s28 = smov 0  }
   0x2   :  { %s4461_s29 = smov 0   ;;  %s4463_s30 = smov 0  }
   0x3 LB: > { %s4478_s9 = sadd.s32 4294967295, %s4400_s30   ;;  %s3485_s10 = sadd.s32 4294967294, %s4400_s30   ;;  %s4400_s30 = sphi %s4463_s30, %s7440_s30   ;;  %s4396_s29 = sphi %s4461_s29, %s7439_s29   ;;  %s4392_s28 = sphi %s4459_s28, %s7438_s28   ;;  %s4388_s27 = sphi %s4457_s27, %s7437_s27  }
   0x4   : > { %s4482_s11 = sadd.s32 1, %s4400_s30   ;;  %s201_s12 = sadd.s32 1, %s4396_s29 }
   0x5   : > { %s198_s13 = ssub.s32 %s4400_s30, %s4482_s11  ;;  %p211_p0 = scmp.ne.s32.totalorder %s4396_s29, %s4392_s28 }
   0x6   : > { %p199_p1 = scmp.eq.s32.totalorder %s198_s13, 0  ;;  %p212_p2 = scmp.eq.s32.totalorder %s4478_s9, 1 }
   0x7   : > { %p217_p3 = scmp.ne.s32.totalorder %s4392_s28, %s4388_s27  ;;  %p218_p4 = scmp.eq.s32.totalorder %s3485_s10, 1 }
   0x8   : > { %s4493_s14 = scalar_select %p199_p1, %s4396_s29, %s201_s12  }
   0x9   : > { %p4495_p5 = por %p212_p2, %p211_p0  ;;  %p4499_p6 = por %p218_p4, %p217_p3 }
   0xa   : > { %p3488_p7 = scmp.ge.s32.totalorder %s4400_s30, 1  ;;  %p266_p8 = scmp.lt.s32.totalorder %s4400_s30, 3 }
   0xc   : > { %p267_p9 = pnand %p3488_p7, %p266_p8 }
   0xe   : > { %270 = sbr.rel (%p267_p9) target bundleno = 2493 (0x9bd), region = 52 }
  0x15   : > { %v323_v0 = vld [vmem:[%s6958_s1] sm:$0xff]  ;;  %v324_v1 = vld [vmem:[%s6958_s1 + $0x8] sm:$0xff]  ;;  %v325_v2 = vld [vmem:[%s6958_s1 + $0x10] sm:$0xff]  ;;  %s3490_s23 = sshll.u32 %s4478_s9, 4  ;;  %vm334_vm0 = vcmask 261120   ;;  %vm559_vm1 = vcmask 523264  }
  0x16   : > { %v3794_v3 = vpack.c.bf16 %v324_v1, %v323_v0  ;;  %v326_v4 = vld [vmem:[%s6958_s1 + $0x18] sm:$0xff]  ;;  %p301_p10 = scmp.lt.s32.totalorder %s3490_s23, 31  ;;  %v544_v22 = vld [vmem:[%s6960_s3] sm:$0xff]  ;;  %v545_v23 = vld [vmem:[%s6960_s3 + $0x8] sm:$0xff]  ;;  %vm1411_vm2 = vcmask 138312   ;;  %vm977_vm3 = vcmask 72712  }
  0x17   : > { %v3798_v5 = vpack.c.bf16 %v326_v4, %v325_v2  ;;  %v3802_v24 = vpack.c.bf16 %v545_v23, %v544_v22  ;;  %v546_v25 = vld [vmem:[%s6960_s3 + $0x10] sm:$0xff]  ;;  %v547_v26 = vld [vmem:[%s6960_s3 + $0x18] sm:$0xff]  ;;  %v548_v28 = vld [vmem:[%s6960_s3 + $0x20] sm:$0xff]  ;;  %vm1844_vm4 = vcmask 203912   ;;  %s4403_s17 = smov 127   ;;  %s4404_s18 = smov 111  }
  0x18   : > { %3795 = vmatprep.subr.bf16.mxu0 %v3794_v3  ;;  %s7442_s23 = smov (!%p301_p10, %s3490_s23), 31  ;;  %v3806_v27 = vpack.c.bf16 %v547_v26, %v546_v25  ;;  %v549_v29 = vld [vmem:[%s6960_s3 + $0x28] sm:$0xff]  ;;  %v550_v31 = vld [vmem:[%s6960_s3 + $0x30] sm:$0xff]  ;;  %v551_v32 = vld [vmem:[%s6960_s3 + $0x38] sm:$0xff]  ;;  %vm1138_vm5 = vcmask 64512   ;;  %vm2485_vm6 = vcmask 130048  }
  0x19   : > { %3797 = vmatpush3.bf16.msra.mxu0 %v3794_v3  ;;  %s3491_s26 = sshll.u32 %s7442_s23, 3  ;;  %3803 = vmatprep.subr.bf16.mxu1 %v3802_v24  ;;  %v3810_v30 = vpack.c.bf16 %v549_v29, %v548_v28  ;;  %v3814_v33 = vpack.c.bf16 %v551_v32, %v550_v31  ;;  %v769_v34 = vld [vmem:[%s6962_s5] sm:$0xff]  ;;  %v770_v35 = vld [vmem:[%s6962_s5 + $0x8] sm:$0xff]  ;;  %v771_v36 = vld [vmem:[%s6962_s5 + $0x10] sm:$0xff]  ;;  %vm2505_vm7 = vcmask 195584   ;;  %s4405_s25 = smov 25  }
  0x1a   : > { %3799 = vmatprep.subr.bf16.mxu0 %v3798_v5  ;;  %s4521_s13 = scalar_lea.vmem %s6957_s0, %s3491_s26  ;;  %3805 = vmatpush3.bf16.msra.mxu1 %v3802_v24  ;;  %v3818_v37 = vpack.c.bf16 %v770_v35, %v769_v34  ;;  %v772_v38 = vld [vmem:[%s6962_s5 + $0x18] sm:$0xff]  ;;  %v773_v40 = vld [vmem:[%s6962_s5 + $0x20] sm:$0xff]  ;;  %v774_v41 = vld [vmem:[%s6962_s5 + $0x28] sm:$0xff]  ;;  %vm2779_vm8 = vcmask 269512   ;;  %s4406_s26 = smov 9   ;;  %vm3308_vm9 = vcmask 7168  }
  0x1b   : > { %v307_v6 = vld [vmem:[%s4521_s13] sm:$0xff]  ;;  %v308_v7 = vld [vmem:[%s4521_s13 + $0x8] sm:$0xff]  ;;  %v309_v8 = vld [vmem:[%s4521_s13 + $0x10] sm:$0xff]  ;;  %3807 = vmatprep.subr.bf16.mxu1 %v3806_v27  ;;  %v3822_v39 = vpack.c.bf16 %v772_v38, %v771_v36  ;;  %v3826_v42 = vpack.c.bf16 %v774_v41, %v773_v40  ;;  %s4407_s10 = smov 103   ;;  %s4408_s12 = smov 104   ;;  %vm3325_vm10 = vcmask 72704  }
  0x1c   : > { %3660 = vmatprep.mubr.msk.f32.mxu0 %vm334_vm0, %v307_v6  ;;  %v310_v9 = vld [vmem:[%s4521_s13 + $0x18] sm:$0xff]  ;;  %v311_v10 = vld [vmem:[%s4521_s13 + $0x20] sm:$0xff]  ;;  %v312_v11 = vld [vmem:[%s4521_s13 + $0x28] sm:$0xff]  ;;  %vm3342_vm11 = vcmask 269312   ;;  %vm3359_vm12 = vcmask 277504   ;;  %vm3376_vm13 = vcmask 285696  }
  0x1d   : > { %3801 = vmatpush3.bf16.msra.mxu0 %v3798_v5  ;;  %v313_v12 = vld [vmem:[%s4521_s13 + $0x30] sm:$0xff]  ;;  %v314_v13 = vld [vmem:[%s4521_s13 + $0x38] sm:$0xff]  ;;  %v315_v14 = vld [vmem:[%s4521_s13 + $0x40] sm:$0xff]  ;;  %s3564_s19 = sshll.u32 %s4478_s9, 11 }
  0x1e   : > { %v316_v15 = vld [vmem:[%s4521_s13 + $0x48] sm:$0xff]  ;;  %v317_v16 = vld [vmem:[%s4521_s13 + $0x50] sm:$0xff]  ;;  %v318_v17 = vld [vmem:[%s4521_s13 + $0x58] sm:$0xff]  ;;  %3809 = vmatpush3.bf16.msra.mxu1 %v3806_v27  ;;  %3819 = vmatprep.subr.bf16.mxu0 %v3818_v37  ;;  %s6907_s23 = scalar_lea.hbm %s6965_s8, %s3564_s19 }
  0x1f   : > { %v319_v18 = vld [vmem:[%s4521_s13 + $0x60] sm:$0xff]  ;;  %v320_v19 = vld [vmem:[%s4521_s13 + $0x68] sm:$0xff]  ;;  %v321_v20 = vld [vmem:[%s4521_s13 + $0x70] sm:$0xff]  ;;  %3811 = vmatprep.subr.bf16.mxu1 %v3810_v30 }
  0x20   : > { %3661 = vmatmul.mubr.msk.f32.vlgmr.msra.gmra.mrb[0].mxu0 %vm334_vm0, %v308_v7  ;;  %v322_v21 = vld [vmem:[%s4521_s13 + $0x78] sm:$0xff]  ;;  %v4600_v43 = vld [vmem:[%s6959_s2] ss:$0 sm:$0xff]  ;;  %v775_v28 = vld [vmem:[%s6962_s5 + $0x30] sm:$0xff]  ;;  %s4402_s13 = smov 119  }
  0x21   : > { %3663 = vmatprep.mubr.msk.f32.mxu0 %vm334_vm0, %v309_v8  ;;  %3821 = vmatpush3.bf16.msra.mxu0 %v3818_v37  ;;  %v776_v29 = vld [vmem:[%s6962_s5 + $0x38] sm:$0xff]  ;;  %v4643_v31 = vld [vmem:[%s6961_s4] ss:$0 sm:$0xff] }
  0x22   : > { %3813 = vmatpush3.bf16.msra.mxu1 %v3810_v30  ;;  %3823 = vmatprep.subr.bf16.mxu0 %v3822_v39  ;;  %v3830_v30 = vpack.c.bf16 %v776_v29, %v775_v28 }
  0x23   : > { %3815 = vmatprep.subr.bf16.mxu1 %v3814_v33 }
  0x24   : > { %3664 = vmatmul.mubr.msk.f32.gmra.mrb[2].mxu0 %vm334_vm0, %v310_v9 }
  0x25   : > { %3666 = vmatprep.mubr.msk.f32.mxu0 %vm334_vm0, %v311_v10  ;;  %3825 = vmatpush3.bf16.msra.mxu0 %v3822_v39 }
  0x26   : > { %3817 = vmatpush3.bf16.msra.mxu1 %v3814_v33  ;;  %3827 = vmatprep.subr.bf16.mxu0 %v3826_v42 }
  0x28   : > { %3667 = vmatmul.mubr.msk.f32.gmra.mrb[4].mxu0 %vm334_vm0, %v312_v11 }
  0x29   : > { %3669 = vmatprep.mubr.msk.f32.mxu0 %vm334_vm0, %v313_v12  ;;  %3829 = vmatpush3.bf16.msra.mxu0 %v3826_v42 }
  0x2a   : > { %3831 = vmatprep.subr.bf16.mxu0 %v3830_v30 }
  0x2c   : > { %3670 = vmatmul.mubr.msk.f32.gmra.mrb[6].mxu0 %vm334_vm0, %v314_v13 }
  0x2d   : > { %3672 = vmatprep.mubr.msk.f32.mxu0 %vm334_vm0, %v315_v14  ;;  %3833 = vmatpush3.bf16.msra.mxu0 %v3830_v30 }
  0x30   : > { %3673 = vmatmul.mubr.msk.f32.gmra.mrb[8].mxu0 %vm334_vm0, %v316_v15 }
  0x31   : > { %3675 = vmatprep.mubr.msk.f32.mxu0 %vm334_vm0, %v317_v16 }
  0x34   : > { %3676 = vmatmul.mubr.msk.f32.gmra.mrb[10].mxu0 %vm334_vm0, %v318_v17 }
  0x35   : > { %3678 = vmatprep.mubr.msk.f32.mxu0 %vm334_vm0, %v319_v18 }
  0x38   : > { %3679 = vmatmul.mubr.msk.f32.gmra.mrb[12].mxu0 %vm334_vm0, %v320_v19 }
  0x39   : > { %3681 = vmatprep.mubr.msk.f32.mxu0 %vm334_vm0, %v321_v20 }
  0x3c   : > { %3682 = vmatmul.mubr.msk.f32.gmra.mrb[14].mxu0 %vm334_vm0, %v322_v21 }
  0xf3   : > { %v3662_v44 = vpop.f32.mrb[0].mxu0 }
  0xf4   : > { %v455_v45 = vadd.f32 %v3662_v44, %v4600_v43  ;;  %v449_v46 = vpop.f32.mrb[1].mxu0 }
  0xf5   : > { %v450_v47 = vadd.f32 %v4600_v43, %v449_v46 }
  0xf7   : > { %3890 = vtanh.f32 %v450_v47  ;;  %v3665_v48 = vpop.f32.mrb[2].mxu0 }
  0xf8   : > { %3892 = vtanh.f32 %v455_v45  ;;  %v465_v49 = vadd.f32 %v3665_v48, %v4600_v43  ;;  %v459_v50 = vpop.f32.mrb[3].mxu0 }
  0xf9   : > { %v460_v51 = vadd.f32 %v4600_v43, %v459_v50 }
  0xfa   : > { %3894 = vtanh.f32 %v465_v49 }
  0xfb   : > { %3896 = vtanh.f32 %v460_v51  ;;  %v3668_v52 = vpop.f32.mrb[4].mxu0 }
  0xfc   : > { %v475_v53 = vadd.f32 %v3668_v52, %v4600_v43  ;;  %v469_v54 = vpop.f32.mrb[5].mxu0 }
  0xfd   : > { %v470_v55 = vadd.f32 %v4600_v43, %v469_v54 }
  0xfe   : > { %3898 = vtanh.f32 %v475_v53 }
  0xff   : > { %3900 = vtanh.f32 %v470_v55  ;;  %v3671_v56 = vpop.f32.mrb[6].mxu0 }
 0x100   : > { %v485_v57 = vadd.f32 %v3671_v56, %v4600_v43  ;;  %v479_v58 = vpop.f32.mrb[7].mxu0 }
 0x101   : > { %v3891_v59 = vpop.eup %3890  ;;  %v480_v60 = vadd.f32 %v4600_v43, %v479_v58 }
 0x102   : > { %v3893_v61 = vpop.eup %3892  ;;  %3700 = vmatprep.mubr.msk.f32.mxu1 %vm559_vm1, %v3891_v59  ;;  %3902 = vtanh.f32 %v485_v57 }
 0x103   : > { %3701 = vmatmul.mubr.msk.f32.vlgmr.msra.gmra.mrb[0].mxu1 %vm559_vm1, %v3893_v61  ;;  %3904 = vtanh.f32 %v480_v60  ;;  %v3674_v62 = vpop.f32.mrb[8].mxu0 }
 0x104   : > { %v3895_v63 = vpop.eup %3894  ;;  %v495_v0 = vadd.f32 %v3674_v62, %v4600_v43  ;;  %v489_v1 = vpop.f32.mrb[9].mxu0 }
 0x105   : > { %v3897_v2 = vpop.eup %3896  ;;  %v490_v3 = vadd.f32 %v4600_v43, %v489_v1 }
 0x106   : > { %3703 = vmatprep.mubr.msk.f32.mxu1 %vm559_vm1, %v3897_v2  ;;  %3906 = vtanh.f32 %v495_v0 }
 0x107   : > { %3704 = vmatmul.mubr.msk.f32.gmra.mrb[2].mxu1 %vm559_vm1, %v3895_v63  ;;  %3908 = vtanh.f32 %v490_v3  ;;  %v3677_v4 = vpop.f32.mrb[10].mxu0 }
 0x108   : > { %v3899_v5 = vpop.eup %3898  ;;  %v505_v6 = vadd.f32 %v3677_v4, %v4600_v43  ;;  %v499_v7 = vpop.f32.mrb[11].mxu0 }
 0x109   : > { %v3901_v8 = vpop.eup %3900  ;;  %v500_v9 = vadd.f32 %v4600_v43, %v499_v7 }
 0x10a   : > { %3706 = vmatprep.mubr.msk.f32.mxu1 %vm559_vm1, %v3901_v8  ;;  %3910 = vtanh.f32 %v505_v6 }
 0x10b   : > { %3707 = vmatmul.mubr.msk.f32.gmra.mrb[4].mxu1 %vm559_vm1, %v3899_v5  ;;  %3912 = vtanh.f32 %v500_v9  ;;  %v3680_v10 = vpop.f32.mrb[12].mxu0 }
 0x10c   : > { %v3903_v11 = vpop.eup %3902  ;;  %v515_v12 = vadd.f32 %v3680_v10, %v4600_v43  ;;  %v509_v13 = vpop.f32.mrb[13].mxu0 }
 0x10d   : > { %v3905_v14 = vpop.eup %3904  ;;  %v510_v15 = vadd.f32 %v4600_v43, %v509_v13 }
 0x10e   : > { %3709 = vmatprep.mubr.msk.f32.mxu1 %vm559_vm1, %v3905_v14  ;;  %3914 = vtanh.f32 %v515_v12 }
 0x10f   : > { %3710 = vmatmul.mubr.msk.f32.gmra.mrb[6].mxu1 %vm559_vm1, %v3903_v11  ;;  %3916 = vtanh.f32 %v510_v15  ;;  %v3683_v16 = vpop.f32.mrb[14].mxu0 }
 0x110   : > { %v3907_v17 = vpop.eup %3906  ;;  %v525_v18 = vadd.f32 %v3683_v16, %v4600_v43  ;;  %v519_v19 = vpop.f32.mrb[15].mxu0  ;;  %v4680_v16 = vld [vmem:[%s6963_s6] ss:$0 sm:$0xff] }
 0x111   : > { %v3909_v20 = vpop.eup %3908  ;;  %v520_v21 = vadd.f32 %v4600_v43, %v519_v19 }
 0x112   : > { %3712 = vmatprep.mubr.msk.f32.mxu1 %vm559_vm1, %v3909_v20  ;;  %3918 = vtanh.f32 %v525_v18 }
 0x113   : > { %3713 = vmatmul.mubr.msk.f32.gmra.mrb[8].mxu1 %vm559_vm1, %v3907_v17  ;;  %3920 = vtanh.f32 %v520_v21 }
 0x114   : > { %v3911_v22 = vpop.eup %3910 }
 0x115   : > { %v3913_v23 = vpop.eup %3912 }
 0x116   : > { %3715 = vmatprep.mubr.msk.f32.mxu1 %vm559_vm1, %v3913_v23 }
 0x117   : > { %3716 = vmatmul.mubr.msk.f32.gmra.mrb[10].mxu1 %vm559_vm1, %v3911_v22 }
 0x118   : > { %v3915_v24 = vpop.eup %3914 }
 0x119   : > { %v3917_v25 = vpop.eup %3916 }
 0x11a   : > { %3718 = vmatprep.mubr.msk.f32.mxu1 %vm559_vm1, %v3917_v25 }
 0x11b   : > { %3719 = vmatmul.mubr.msk.f32.gmra.mrb[12].mxu1 %vm559_vm1, %v3915_v24 }
 0x11c   : > { %v3919_v26 = vpop.eup %3918 }
 0x11d   : > { %v3921_v27 = vpop.eup %3920 }
 0x11e   : > { %3721 = vmatprep.mubr.msk.f32.mxu1 %vm559_vm1, %v3921_v27 }
 0x11f   : > { %3722 = vmatmul.mubr.msk.f32.gmra.mrb[14].mxu1 %vm559_vm1, %v3919_v26 }
 0x1d6   : > { %v3702_v32 = vpop.f32.mrb[0].mxu1 }
 0x1d7   : > { %v680_v33 = vadd.f32 %v3702_v32, %v4643_v31  ;;  %v674_v34 = vpop.f32.mrb[1].mxu1 }
 0x1d8   : > { %v675_v35 = vadd.f32 %v4643_v31, %v674_v34 }
 0x1da   : > { %3922 = vtanh.f32 %v675_v35  ;;  %v3705_v36 = vpop.f32.mrb[2].mxu1 }
 0x1db   : > { %3924 = vtanh.f32 %v680_v33  ;;  %v690_v37 = vadd.f32 %v3705_v36, %v4643_v31  ;;  %v684_v38 = vpop.f32.mrb[3].mxu1 }
 0x1dc   : > { %v685_v39 = vadd.f32 %v4643_v31, %v684_v38 }
 0x1dd   : > { %3926 = vtanh.f32 %v690_v37 }
 0x1de   : > { %3928 = vtanh.f32 %v685_v39  ;;  %v3708_v40 = vpop.f32.mrb[4].mxu1 }
 0x1df   : > { %v700_v41 = vadd.f32 %v3708_v40, %v4643_v31  ;;  %v694_v42 = vpop.f32.mrb[5].mxu1 }
 0x1e0   : > { %v695_v43 = vadd.f32 %v4643_v31, %v694_v42 }
 0x1e1   : > { %3930 = vtanh.f32 %v700_v41 }
 0x1e2   : > { %3932 = vtanh.f32 %v695_v43  ;;  %v3711_v44 = vpop.f32.mrb[6].mxu1 }
 0x1e3   : > { %v710_v45 = vadd.f32 %v3711_v44, %v4643_v31  ;;  %v704_v46 = vpop.f32.mrb[7].mxu1 }
 0x1e4   : > { %v3923_v47 = vpop.eup %3922  ;;  %v705_v48 = vadd.f32 %v4643_v31, %v704_v46 }
 0x1e5   : > { %v3925_v49 = vpop.eup %3924  ;;  %3740 = vmatprep.mubr.msk.f32.mxu0 %vm559_vm1, %v3923_v47  ;;  %3934 = vtanh.f32 %v710_v45 }
 0x1e6   : > { %3741 = vmatmul.mubr.msk.f32.vlgmr.msra.gmra.mrb[16].mxu0 %vm559_vm1, %v3925_v49  ;;  %3936 = vtanh.f32 %v705_v48  ;;  %v3714_v50 = vpop.f32.mrb[8].mxu1 }
 0x1e7   : > { %v3927_v51 = vpop.eup %3926  ;;  %v720_v52 = vadd.f32 %v3714_v50, %v4643_v31  ;;  %v714_v53 = vpop.f32.mrb[9].mxu1 }
 0x1e8   : > { %v3929_v54 = vpop.eup %3928  ;;  %v715_v55 = vadd.f32 %v4643_v31, %v714_v53 }
 0x1e9   : > { %3743 = vmatprep.mubr.msk.f32.mxu0 %vm559_vm1, %v3929_v54  ;;  %3938 = vtanh.f32 %v720_v52 }
 0x1ea   : > { %3744 = vmatmul.mubr.msk.f32.gmra.mrb[18].mxu0 %vm559_vm1, %v3927_v51  ;;  %3940 = vtanh.f32 %v715_v55  ;;  %v3717_v56 = vpop.f32.mrb[10].mxu1 }
 0x1eb   : > { %v3931_v57 = vpop.eup %3930  ;;  %v730_v58 = vadd.f32 %v3717_v56, %v4643_v31  ;;  %v724_v59 = vpop.f32.mrb[11].mxu1 }
 0x1ec   : > { %v3933_v60 = vpop.eup %3932  ;;  %v725_v61 = vadd.f32 %v4643_v31, %v724_v59 }
 0x1ed   : > { %3746 = vmatprep.mubr.msk.f32.mxu0 %vm559_vm1, %v3933_v60  ;;  %3942 = vtanh.f32 %v730_v58 }
 0x1ee   : > { %3747 = vmatmul.mubr.msk.f32.gmra.mrb[20].mxu0 %vm559_vm1, %v3931_v57  ;;  %3944 = vtanh.f32 %v725_v61  ;;  %v3720_v62 = vpop.f32.mrb[12].mxu1 }
 0x1ef   : > { %v3935_v63 = vpop.eup %3934  ;;  %v740_v0 = vadd.f32 %v3720_v62, %v4643_v31  ;;  %v734_v1 = vpop.f32.mrb[13].mxu1 }
 0x1f0   : > { %v3937_v2 = vpop.eup %3936  ;;  %v735_v3 = vadd.f32 %v4643_v31, %v734_v1 }
 0x1f1   : > { %3749 = vmatprep.mubr.msk.f32.mxu0 %vm559_vm1, %v3937_v2  ;;  %3946 = vtanh.f32 %v740_v0 }
 0x1f2   : > { %3750 = vmatmul.mubr.msk.f32.gmra.mrb[22].mxu0 %vm559_vm1, %v3935_v63  ;;  %3948 = vtanh.f32 %v735_v3  ;;  %v3723_v4 = vpop.f32.mrb[14].mxu1 }
 0x1f3   : > { %v3939_v5 = vpop.eup %3938  ;;  %v750_v6 = vadd.f32 %v3723_v4, %v4643_v31  ;;  %v744_v7 = vpop.f32.mrb[15].mxu1 }
 0x1f4   : > { %v3941_v8 = vpop.eup %3940  ;;  %v745_v9 = vadd.f32 %v4643_v31, %v744_v7 }
 0x1f5   : > { %3752 = vmatprep.mubr.msk.f32.mxu0 %vm559_vm1, %v3941_v8  ;;  %3950 = vtanh.f32 %v750_v6 }
 0x1f6   : > { %3753 = vmatmul.mubr.msk.f32.gmra.mrb[24].mxu0 %vm559_vm1, %v3939_v5  ;;  %3952 = vtanh.f32 %v745_v9 }
 0x1f7   : > { %v3943_v10 = vpop.eup %3942 }
 0x1f8   : > { %v3945_v11 = vpop.eup %3944 }
 0x1f9   : > { %3755 = vmatprep.mubr.msk.f32.mxu0 %vm559_vm1, %v3945_v11 }
 0x1fa   : > { %3756 = vmatmul.mubr.msk.f32.gmra.mrb[26].mxu0 %vm559_vm1, %v3943_v10 }
 0x1fb   : > { %v3947_v12 = vpop.eup %3946 }
 0x1fc   : > { %v3949_v13 = vpop.eup %3948 }
 0x1fd   : > { %3758 = vmatprep.mubr.msk.f32.mxu0 %vm559_vm1, %v3949_v13 }
 0x1fe   : > { %3759 = vmatmul.mubr.msk.f32.gmra.mrb[28].mxu0 %vm559_vm1, %v3947_v12 }
 0x1ff   : > { %v3951_v14 = vpop.eup %3950 }
 0x200   : > { %v3953_v15 = vpop.eup %3952 }
 0x201   : > { %3761 = vmatprep.mubr.msk.f32.mxu0 %vm559_vm1, %v3953_v15 }
 0x202   : > { %3762 = vmatmul.mubr.msk.f32.gmra.mrb[30].mxu0 %vm559_vm1, %v3951_v14 }
 0x2b9   : > { %v3742_v17 = vpop.f32.mrb[16].mxu0 }
 0x2ba   : > { %v4683_v18 = vadd.f32 %v3742_v17, %v4680_v16  ;;  %v898_v19 = vpop.f32.mrb[17].mxu0 }
 0x2bb   : > { %v4686_v20 = vadd.f32 %v4680_v16, %v898_v19 }
 0x2bc   : > { %7093 = vst [vmem:[#allocation5_spill] sm:$0xff] %v4683_v18  ;;  %v1415_v21 = vsel %vm1411_vm2, %v4683_v18, -inf  ;;  %v981_v22 = vsel %vm977_vm3, %v4683_v18, -inf  ;;  %v1848_v26 = vsel %vm1844_vm4, %v4683_v18, -inf }
 0x2bd   : > { %7094 = vst [vmem:[#allocation6_spill] sm:$0xff] %v4686_v20  ;;  %1416 = vmax.xlane.f32.xlu1 %v1415_v21  ;;  %982 = vmax.xlane.f32.xlu0 %v981_v22  ;;  %v3745_v23 = vpop.f32.mrb[18].mxu0  ;;  %v978_v27 = vsel %vm977_vm3, %v4686_v20, -inf  ;;  %v1412_v31 = vsel %vm1411_vm2, %v4686_v20, -inf  ;;  %v1845_v36 = vsel %vm1844_vm4, %v4686_v20, -inf }
 0x2be   : > { %v4693_v24 = vadd.f32 %v3745_v23, %v4680_v16  ;;  %v908_v25 = vpop.f32.mrb[19].mxu0 }
 0x2bf   : > { %v4706_v35 = vadd.f32 %v4680_v16, %v908_v25 }
 0x2c0   : > { %7095 = vst [vmem:[#allocation7_spill] sm:$0xff] %v4693_v24  ;;  %v1421_v29 = vsel %vm1411_vm2, %v4693_v24, -inf  ;;  %v1854_v33 = vsel %vm1844_vm4, %v4693_v24, -inf  ;;  %v987_v40 = vsel %vm977_vm3, %v4693_v24, -inf }
 0x2c1   : > { %1849 = vmax.xlane.f32.xlu1 %v1848_v26  ;;  %979 = vmax.xlane.f32.xlu0 %v978_v27  ;;  %v3748_v28 = vpop.f32.mrb[20].mxu0  ;;  %7096 = vst [vmem:[#allocation8_spill] sm:$0xff] %v4706_v35  ;;  %v1851_v41 = vsel %vm1844_vm4, %v4706_v35, -inf  ;;  %v984_v46 = vsel %vm977_vm3, %v4706_v35, -inf  ;;  %v1418_v53 = vsel %vm1411_vm2, %v4706_v35, -inf }
 0x2c2   : > { %v918_v30 = vpop.f32.mrb[21].mxu0  ;;  %v4711_v38 = vadd.f32 %v3748_v28, %v4680_v16 }
 0x2c3   : > { %v4725_v48 = vadd.f32 %v4680_v16, %v918_v30 }
 0x2c4   : > { %7097 = vst [vmem:[#allocation9_spill] sm:$0xff] %v4711_v38  ;;  %v1427_v43 = vsel %vm1411_vm2, %v4711_v38, -inf  ;;  %v1860_v49 = vsel %vm1844_vm4, %v4711_v38, -inf  ;;  %v993_v56 = vsel %vm977_vm3, %v4711_v38, -inf }
 0x2c5   : > { %1413 = vmax.xlane.f32.xlu1 %v1412_v31  ;;  %1422 = vmax.xlane.f32.xlu0 %v1421_v29  ;;  %v3751_v32 = vpop.f32.mrb[22].mxu0  ;;  %7099 = vst [vmem:[#allocation11_spill] sm:$0xff] %v4725_v48  ;;  %v990_v57 = vsel %vm977_vm3, %v4725_v48, -inf  ;;  %v1424_v61 = vsel %vm1411_vm2, %v4725_v48, -inf  ;;  %v1857_v1 = vsel %vm1844_vm4, %v4725_v48, -inf }
 0x2c6   : > { %v928_v34 = vpop.f32.mrb[23].mxu0  ;;  %v4738_v55 = vadd.f32 %v3751_v32, %v4680_v16 }
 0x2c7   : > { %v4755_v63 = vadd.f32 %v4680_v16, %v928_v34 }
 0x2c8   : > { %7102 = vst [vmem:[#allocation14_spill] sm:$0xff] %v4738_v55  ;;  %v1433_v62 = vsel %vm1411_vm2, %v4738_v55, -inf  ;;  %v1866_v0 = vsel %vm1844_vm4, %v4738_v55, -inf  ;;  %v999_v3 = vsel %vm977_vm3, %v4738_v55, -inf }
 0x2c9   : > { %1846 = vmax.xlane.f32.xlu1 %v1845_v36  ;;  %1855 = vmax.xlane.f32.xlu0 %v1854_v33  ;;  %v3754_v37 = vpop.f32.mrb[24].mxu0  ;;  %7105 = vst [vmem:[#allocation17_spill] sm:$0xff] %v4755_v63  ;;  %v996_v4 = vsel %vm977_vm3, %v4755_v63, -inf  ;;  %v1430_v5 = vsel %vm1411_vm2, %v4755_v63, -inf  ;;  %v1863_v9 = vsel %vm1844_vm4, %v4755_v63, -inf }
 0x2ca   : > { %v938_v39 = vpop.f32.mrb[25].mxu0  ;;  %v4762_v2 = vadd.f32 %v3754_v37, %v4680_v16 }
 0x2cb   : > { %v4773_v7 = vadd.f32 %v4680_v16, %v938_v39 }
 0x2cc   : > { %7106 = vst [vmem:[#allocation18_spill] sm:$0xff] %v4762_v2  ;;  %v1439_v6 = vsel %vm1411_vm2, %v4762_v2, -inf  ;;  %v1872_v8 = vsel %vm1844_vm4, %v4762_v2, -inf  ;;  %v1005_v11 = vsel %vm977_vm3, %v4762_v2, -inf }
 0x2cd   : > { %988 = vmax.xlane.f32.xlu1 %v987_v40  ;;  %1852 = vmax.xlane.f32.xlu0 %v1851_v41  ;;  %v3757_v42 = vpop.f32.mrb[26].mxu0  ;;  %7107 = vst [vmem:[#allocation19_spill] sm:$0xff] %v4773_v7  ;;  %v1002_v12 = vsel %vm977_vm3, %v4773_v7, -inf  ;;  %v1436_v13 = vsel %vm1411_vm2, %v4773_v7, -inf }
 0x2ce   : > { %v948_v44 = vpop.f32.mrb[27].mxu0  ;;  %v4780_v10 = vadd.f32 %v3757_v42, %v4680_v16 }
 0x2cf   : > { %v4720_v45 = vadd.f32 %v4680_v16, %v948_v44 }
 0x2d0   : > { %7108 = vst [vmem:[#allocation20_spill] sm:$0xff] %v4780_v10  ;;  %v1445_v14 = vsel %vm1411_vm2, %v4780_v10, -inf  ;;  %v1878_v15 = vsel %vm1844_vm4, %v4780_v10, -inf  ;;  %v1011_v17 = vsel %vm977_vm3, %v4780_v10, -inf }
 0x2d1   : > { %7098 = vst [vmem:[#allocation10_spill] sm:$0xff] %v4720_v45  ;;  %985 = vmax.xlane.f32.xlu1 %v984_v46  ;;  %1428 = vmax.xlane.f32.xlu0 %v1427_v43  ;;  %v3760_v47 = vpop.f32.mrb[28].mxu0  ;;  %v1008_v19 = vsel %vm977_vm3, %v4720_v45, -inf  ;;  %v1442_v21 = vsel %vm1411_vm2, %v4720_v45, -inf  ;;  %v1875_v25 = vsel %vm1844_vm4, %v4720_v45, -inf }
 0x2d2   : > { %v4730_v50 = vadd.f32 %v3760_v47, %v4680_v16  ;;  %v958_v51 = vpop.f32.mrb[29].mxu0 }
 0x2d3   : > { %v4733_v52 = vadd.f32 %v4680_v16, %v958_v51 }
 0x2d4   : > { %7100 = vst [vmem:[#allocation12_spill] sm:$0xff] %v4730_v50  ;;  %v1451_v22 = vsel %vm1411_vm2, %v4730_v50, -inf  ;;  %v1884_v23 = vsel %vm1844_vm4, %v4730_v50, -inf  ;;  %v1017_v26 = vsel %vm977_vm3, %v4730_v50, -inf }
 0x2d5   : > { %7101 = vst [vmem:[#allocation13_spill] sm:$0xff] %v4733_v52  ;;  %1419 = vmax.xlane.f32.xlu1 %v1418_v53  ;;  %1861 = vmax.xlane.f32.xlu0 %v1860_v49  ;;  %v3763_v54 = vpop.f32.mrb[30].mxu0  ;;  %v1014_v27 = vsel %vm977_vm3, %v4733_v52, -inf  ;;  %v1448_v28 = vsel %vm1411_vm2, %v4733_v52, -inf  ;;  %v1881_v31 = vsel %vm1844_vm4, %v4733_v52, -inf }
 0x2d6   : > { %v4745_v58 = vadd.f32 %v3763_v54, %v4680_v16  ;;  %v968_v59 = vpop.f32.mrb[31].mxu0 }
 0x2d7   : > { %v4748_v60 = vadd.f32 %v4680_v16, %v968_v59  ;;  %v1869_v16 = vsel %vm1844_vm4, %v4773_v7, -inf }
 0x2d8   : > { %7103 = vst [vmem:[#allocation15_spill] sm:$0xff] %v4745_v58  ;;  %v1457_v29 = vsel %vm1411_vm2, %v4745_v58, -inf  ;;  %v1890_v30 = vsel %vm1844_vm4, %v4745_v58, -inf  ;;  %v1023_v32 = vsel %vm977_vm3, %v4745_v58, -inf }
 0x2d9   : > { %7104 = vst [vmem:[#allocation16_spill] sm:$0xff] %v4748_v60  ;;  %994 = vmax.xlane.f32.xlu1 %v993_v56  ;;  %991 = vmax.xlane.f32.xlu0 %v990_v57  ;;  %v1020_v33 = vsel %vm977_vm3, %v4748_v60, -inf  ;;  %v1454_v34 = vsel %vm1411_vm2, %v4748_v60, -inf  ;;  %v1887_v36 = vsel %vm1844_vm4, %v4748_v60, -inf }
 0x2dd   : > { %1425 = vmax.xlane.f32.xlu1 %v1424_v61  ;;  %1434 = vmax.xlane.f32.xlu0 %v1433_v62 }
 0x2e1   : > { %1858 = vmax.xlane.f32.xlu1 %v1857_v1  ;;  %1867 = vmax.xlane.f32.xlu0 %v1866_v0 }
 0x2e5   : > { %1000 = vmax.xlane.f32.xlu1 %v999_v3  ;;  %997 = vmax.xlane.f32.xlu0 %v996_v4 }
 0x2e9   : > { %1431 = vmax.xlane.f32.xlu1 %v1430_v5  ;;  %1440 = vmax.xlane.f32.xlu0 %v1439_v6 }
 0x2ed   : > { %1864 = vmax.xlane.f32.xlu1 %v1863_v9  ;;  %1873 = vmax.xlane.f32.xlu0 %v1872_v8 }
 0x2f1   : > { %1006 = vmax.xlane.f32.xlu1 %v1005_v11  ;;  %1003 = vmax.xlane.f32.xlu0 %v1002_v12 }
 0x2f5   : > { %1437 = vmax.xlane.f32.xlu1 %v1436_v13  ;;  %1446 = vmax.xlane.f32.xlu0 %v1445_v14 }
 0x2f9   : > { %1870 = vmax.xlane.f32.xlu1 %v1869_v16  ;;  %1879 = vmax.xlane.f32.xlu0 %v1878_v15 }
 0x2fd   : > { %1012 = vmax.xlane.f32.xlu1 %v1011_v17  ;;  %1009 = vmax.xlane.f32.xlu0 %v1008_v19 }
 0x301   : > { %1443 = vmax.xlane.f32.xlu1 %v1442_v21  ;;  %1452 = vmax.xlane.f32.xlu0 %v1451_v22 }
 0x305   : > { %1876 = vmax.xlane.f32.xlu1 %v1875_v25  ;;  %1885 = vmax.xlane.f32.xlu0 %v1884_v23 }
 0x309   : > { %1018 = vmax.xlane.f32.xlu1 %v1017_v26  ;;  %1015 = vmax.xlane.f32.xlu0 %v1014_v27 }
 0x30d   : > { %1449 = vmax.xlane.f32.xlu1 %v1448_v28  ;;  %1458 = vmax.xlane.f32.xlu0 %v1457_v29 }
 0x311   : > { %1882 = vmax.xlane.f32.xlu1 %v1881_v31  ;;  %1891 = vmax.xlane.f32.xlu0 %v1890_v30 }
 0x315   : > { %1024 = vmax.xlane.f32.xlu1 %v1023_v32  ;;  %1021 = vmax.xlane.f32.xlu0 %v1020_v33 }
 0x319   : > { %1455 = vmax.xlane.f32.xlu0 %v1454_v34 }
 0x31d   : > { %1888 = vmax.xlane.f32.xlu0 %v1887_v36 }
 0x34a   : > { %v1417_v37 = vpop.xlane.xlu1 %1416  ;;  %v983_v39 = vpop.xlane.xlu0 %982 }
 0x34b   : > { %v4827_v40 = vsub.f32 %v4683_v18, %v1417_v37  ;;  %v4830_v41 = vsub.f32 %v4683_v18, %v983_v39 }
 0x34d   : > { %7109 = vst [vmem:[#allocation21_spill] sm:$0xff] %v4827_v40  ;;  %v1478_v42 = vmul.f32 1.442695, %v4827_v40  ;;  %v1044_v43 = vmul.f32 1.442695, %v4830_v41 }
 0x34e   : > { %v1850_v44 = vpop.xlane.xlu1 %1849  ;;  %v980_v46 = vpop.xlane.xlu0 %979 }
 0x34f   : > { %3954 = vpow2.f32 %v1478_v42  ;;  %v4835_v47 = vsub.f32 %v4683_v18, %v1850_v44  ;;  %v4838_v49 = vsub.f32 %v4686_v20, %v980_v46 }
 0x350   : > { %3956 = vpow2.f32 %v1044_v43 }
 0x351   : > { %7110 = vst [vmem:[#allocation22_spill] sm:$0xff] %v4835_v47  ;;  %v1911_v51 = vmul.f32 1.442695, %v4835_v47  ;;  %v1042_v56 = vmul.f32 1.442695, %v4838_v49 }
 0x352   : > { %v1414_v53 = vpop.xlane.xlu1 %1413  ;;  %v1423_v54 = vpop.xlane.xlu0 %1422 }
 0x353   : > { %3958 = vpow2.f32 %v1911_v51  ;;  %v4843_v57 = vsub.f32 %v4686_v20, %v1414_v53  ;;  %v4857_v8 = vsub.f32 %v4693_v24, %v1423_v54 }
 0x354   : > { %3960 = vpow2.f32 %v1042_v56 }
 0x355   : > { %7111 = vst [vmem:[#allocation23_spill] sm:$0xff] %v4843_v57  ;;  %v1476_v62 = vmul.f32 1.442695, %v4843_v57  ;;  %7113 = vst [vmem:[#allocation25_spill] sm:$0xff] %v4857_v8  ;;  %v1482_v16 = vmul.f32 1.442695, %v4857_v8 }
 0x356   : > { %v1847_v59 = vpop.xlane.xlu1 %1846  ;;  %v1856_v61 = vpop.xlane.xlu0 %1855 }
 0x357   : > { %v4847_v0 = vsub.f32 %v4686_v20, %v1847_v59  ;;  %3962 = vpow2.f32 %v1476_v62  ;;  %v4868_v13 = vsub.f32 %v4693_v24, %v1856_v61 }
 0x359   : > { %7112 = vst [vmem:[#allocation24_spill] sm:$0xff] %v4847_v0  ;;  %v4849_v1 = vpop.eup %3954  ;;  %v1909_v4 = vmul.f32 1.442695, %v4847_v0  ;;  %7114 = vst [vmem:[#allocation26_spill] sm:$0xff] %v4868_v13  ;;  %v1915_v19 = vmul.f32 1.442695, %v4868_v13 }
 0x35a   : > { %v4851_v3 = vpop.eup %3956  ;;  %v989_v5 = vpop.xlane.xlu1 %988  ;;  %1526 = vrot.lane.b32.xlu0 %v4849_v1, %s4402_s13 }
 0x35b   : > { %v1853_v6 = vpop.xlane.xlu0 %1852  ;;  %1092 = vrot.lane.b32.xlu1 %v4851_v3, %s4403_s17  ;;  %v4862_v9 = vsub.f32 %v4693_v24, %v989_v5  ;;  %3964 = vpow2.f32 %v1909_v4 }
 0x35c   : > { %v4888_v28 = vsub.f32 %v4706_v35, %v1853_v6 }
 0x35d   : > { %v4864_v11 = vpop.eup %3958  ;;  %v1048_v12 = vmul.f32 1.442695, %v4862_v9 }
 0x35e   : > { %v986_v14 = vpop.xlane.xlu1 %985  ;;  %1959 = vrot.lane.b32.xlu0 %v4864_v11, %s4404_s18  ;;  %v4873_v17 = vpop.eup %3960  ;;  %7117 = vst [vmem:[#allocation29_spill] sm:$0xff] %v4888_v28  ;;  %v1913_v37 = vmul.f32 1.442695, %v4888_v28 }
 0x35f   : > { %v1429_v15 = vpop.xlane.xlu0 %1428  ;;  %3966 = vpow2.f32 %v1048_v12  ;;  %v4879_v23 = vsub.f32 %v4706_v35, %v986_v14 }
 0x360   : > { %3968 = vpow2.f32 %v1482_v16  ;;  %v4919_v59 = vsub.f32 %v4711_v38, %v1429_v15 }
 0x361   : > { %7115 = vst [vmem:[#allocation27_spill] sm:$0xff] %v4879_v23  ;;  %v4884_v26 = vpop.eup %3962  ;;  %3970 = vpow2.f32 %v1915_v19  ;;  %v1046_v31 = vmul.f32 1.442695, %v4879_v23 }
 0x362   : > { %v1420_v21 = vpop.xlane.xlu1 %1419  ;;  %1090 = vrot.lane.b32.xlu0 %v4873_v17, %s4403_s17  ;;  %7120 = vst [vmem:[#allocation32_spill] sm:$0xff] %v4919_v59  ;;  %v1486_v15 = vmul.f32 1.442695, %v4919_v59 }
 0x363   : > { %v1862_v22 = vpop.xlane.xlu0 %1861  ;;  %v4882_v25 = vsub.f32 %v4706_v35, %v1420_v21 }
 0x364   : > { %v4930_v6 = vsub.f32 %v4711_v38, %v1862_v22 }
 0x365   : > { %7116 = vst [vmem:[#allocation28_spill] sm:$0xff] %v4882_v25  ;;  %v1480_v27 = vmul.f32 1.442695, %v4882_v25  ;;  %v4896_v33 = vpop.eup %3964 }
 0x366   : > { %v995_v29 = vpop.xlane.xlu1 %994  ;;  %1524 = vrot.lane.b32.xlu0 %v4884_v26, %s4402_s13  ;;  %7122 = vst [vmem:[#allocation34_spill] sm:$0xff] %v4930_v6 }
 0x367   : > { %v992_v30 = vpop.xlane.xlu0 %991  ;;  %3972 = vpow2.f32 %v1480_v27  ;;  %v4903_v39 = vsub.f32 %v4711_v38, %v995_v29  ;;  %v1919_v27 = vmul.f32 1.442695, %v4930_v6 }
 0x368   : > { %v4894_v32 = vsub.f32 %v4725_v48, %v992_v30  ;;  %3974 = vpow2.f32 %v1046_v31 }
 0x369   : > { %v4898_v34 = vpop.eup %3966  ;;  %v1052_v53 = vmul.f32 1.442695, %v4903_v39 }
 0x36a   : > { %7118 = vst [vmem:[#allocation30_spill] sm:$0xff] %v4894_v32  ;;  %v1050_v36 = vmul.f32 1.442695, %v4894_v32  ;;  %1096 = vrot.lane.b32.xlu1 %v4898_v34, %s4403_s17  ;;  %v1426_v42 = vpop.xlane.xlu1 %1425  ;;  %1957 = vrot.lane.b32.xlu0 %v4896_v33, %s4404_s18  ;;  %v4912_v46 = vpop.eup %3968 }
 0x36b   : > { %v1435_v43 = vpop.xlane.xlu0 %1434  ;;  %v4910_v44 = vsub.f32 %v4725_v48, %v1426_v42  ;;  %v4924_v62 = vpop.eup %3970 }
 0x36c   : > { %3976 = vpow2.f32 %v1050_v36 }
 0x36d   : > { %7119 = vst [vmem:[#allocation31_spill] sm:$0xff] %v4910_v44  ;;  %v1484_v51 = vmul.f32 1.442695, %v4910_v44  ;;  %3978 = vpow2.f32 %v1913_v37 }
 0x36e   : > { %v1859_v54 = vpop.xlane.xlu1 %1858  ;;  %1530 = vrot.lane.b32.xlu1 %v4912_v46, %s4402_s13 }
 0x36f   : > { %v1868_v56 = vpop.xlane.xlu0 %1867  ;;  %3980 = vpow2.f32 %v1484_v51  ;;  %v4922_v61 = vsub.f32 %v4725_v48, %v1859_v54 }
 0x370   : > { %3982 = vpow2.f32 %v1052_v53 }
 0x371   : > { %7121 = vst [vmem:[#allocation33_spill] sm:$0xff] %v4922_v61  ;;  %v4926_v4 = vpop.eup %3972  ;;  %v1917_v5 = vmul.f32 1.442695, %v4922_v61 }
 0x372   : > { %v1001_v12 = vpop.xlane.xlu1 %1000  ;;  %1528 = vrot.lane.b32.xlu0 %v4926_v4, %s4402_s13  ;;  %1963 = vrot.lane.b32.xlu1 %v4924_v62, %s4404_s18  ;;  %v4940_v19 = vpop.eup %3974 }
 0x373   : > { %v998_v14 = vpop.xlane.xlu0 %997  ;;  %3984 = vpow2.f32 %v1917_v5  ;;  %v4947_v29 = vsub.f32 %v4738_v55, %v1001_v12  ;;  %v4965_v12 = vsub.f32 %v4738_v55, %v1435_v43 }
 0x374   : > { %v4938_v16 = vsub.f32 %v4755_v63, %v998_v14  ;;  %3986 = vpow2.f32 %v1486_v15 }
 0x375   : > { %7124 = vst [vmem:[#allocation36_spill] sm:$0xff] %v4947_v29  ;;  %v1056_v53 = vmul.f32 1.442695, %v4947_v29  ;;  %7126 = vst [vmem:[#allocation38_spill] sm:$0xff] %v4965_v12 }
 0x376   : > { %7123 = vst [vmem:[#allocation35_spill] sm:$0xff] %v4938_v16  ;;  %v1054_v21 = vmul.f32 1.442695, %v4938_v16  ;;  %v4943_v22 = vpop.eup %3976  ;;  %v1432_v30 = vpop.xlane.xlu1 %1431  ;;  %1094 = vrot.lane.b32.xlu1 %v4940_v19, %s4403_s17 }
 0x377   : > { %v1441_v31 = vpop.xlane.xlu0 %1440  ;;  %v4952_v36 = vsub.f32 %v4755_v63, %v1432_v30  ;;  %1098 = vrot.lane.b32.xlu0 %v4943_v22, %s4403_s17  ;;  %v4956_v37 = vpop.eup %3978  ;;  %v4978_v30 = vsub.f32 %v4738_v55, %v1868_v56 }
 0x378   : > { %3988 = vpow2.f32 %v1054_v21 }
 0x379   : > { %7125 = vst [vmem:[#allocation37_spill] sm:$0xff] %v4952_v36  ;;  %v4958_v42 = vpop.eup %3980  ;;  %v1488_v51 = vmul.f32 1.442695, %v4952_v36  ;;  %3990 = vpow2.f32 %v1919_v27  ;;  %7128 = vst [vmem:[#allocation40_spill] sm:$0xff] %v4978_v30 }
 0x37a   : > { %v1865_v54 = vpop.xlane.xlu1 %1864  ;;  %1961 = vrot.lane.b32.xlu1 %v4956_v37, %s4404_s18  ;;  %v4972_v15 = vpop.eup %3982 }
 0x37b   : > { %v1874_v5 = vpop.xlane.xlu0 %1873  ;;  %3992 = vpow2.f32 %v1488_v51  ;;  %v4968_v14 = vsub.f32 %v4755_v63, %v1865_v54  ;;  %1532 = vrot.lane.b32.xlu0 %v4958_v42, %s4402_s13  ;;  %v1490_v51 = vmul.f32 1.442695, %v4965_v12 }
 0x37c   : > { %3994 = vpow2.f32 %v1056_v53  ;;  %v1923_v53 = vmul.f32 1.442695, %v4978_v30  ;;  %v5026_v47 = vsub.f32 %v4762_v2, %v1874_v5 }
 0x37d   : > { %7127 = vst [vmem:[#allocation39_spill] sm:$0xff] %v4968_v14  ;;  %v4974_v21 = vpop.eup %3984  ;;  %v1921_v27 = vmul.f32 1.442695, %v4968_v14 }
 0x37e   : > { %v1007_v38 = vpop.xlane.xlu1 %1006  ;;  %1100 = vrot.lane.b32.xlu1 %v4972_v15, %s4403_s17  ;;  %v4988_v63 = vpop.eup %3986  ;;  %7134 = vst [vmem:[#allocation46_spill] sm:$0xff] %v5026_v47 }
 0x37f   : > { %v1004_v43 = vpop.xlane.xlu0 %1003  ;;  %3996 = vpow2.f32 %v1921_v27  ;;  %1965 = vrot.lane.b32.xlu0 %v4974_v21, %s4404_s18  ;;  %v4995_v35 = vsub.f32 %v4762_v2, %v1007_v38 }
 0x380   : > { %v4986_v54 = vsub.f32 %v4773_v7, %v1004_v43  ;;  %3998 = vpow2.f32 %v1490_v51 }
 0x381   : > { %7130 = vst [vmem:[#allocation42_spill] sm:$0xff] %v4995_v35  ;;  %v1060_v18 = vmul.f32 1.442695, %v4995_v35 }
 0x382   : > { %7129 = vst [vmem:[#allocation41_spill] sm:$0xff] %v4986_v54  ;;  %v1058_v56 = vmul.f32 1.442695, %v4986_v54  ;;  %v4991_v55 = vpop.eup %3988  ;;  %v1438_v24 = vpop.xlane.xlu1 %1437  ;;  %1534 = vrot.lane.b32.xlu1 %v4988_v63, %s4402_s13 }
 0x383   : > { %v1447_v27 = vpop.xlane.xlu0 %1446  ;;  %v5000_v43 = vsub.f32 %v4773_v7, %v1438_v24  ;;  %1102 = vrot.lane.b32.xlu0 %v4991_v55, %s4403_s17  ;;  %v5004_v48 = vpop.eup %3990  ;;  %v5013_v24 = vsub.f32 %v4762_v2, %v1441_v31 }
 0x384   : > { %4000 = vpow2.f32 %v1058_v56 }
 0x385   : > { %7131 = vst [vmem:[#allocation43_spill] sm:$0xff] %v5000_v43  ;;  %v5006_v20 = vpop.eup %3992  ;;  %v1492_v38 = vmul.f32 1.442695, %v5000_v43  ;;  %4002 = vpow2.f32 %v1923_v53  ;;  %7132 = vst [vmem:[#allocation44_spill] sm:$0xff] %v5013_v24 }
 0x386   : > { %v1871_v30 = vpop.xlane.xlu1 %1870  ;;  %1967 = vrot.lane.b32.xlu1 %v5004_v48, %s4404_s18  ;;  %v5020_v56 = vpop.eup %3994 }
 0x387   : > { %v1880_v51 = vpop.xlane.xlu0 %1879  ;;  %4004 = vpow2.f32 %v1492_v38  ;;  %v5016_v6 = vsub.f32 %v4773_v7, %v1871_v30  ;;  %1536 = vrot.lane.b32.xlu0 %v5006_v20, %s4402_s13  ;;  %v1494_v30 = vmul.f32 1.442695, %v5013_v24 }
 0x388   : > { %4006 = vpow2.f32 %v1060_v18  ;;  %v1927_v18 = vmul.f32 1.442695, %v5026_v47  ;;  %v5074_v0 = vsub.f32 %v4780_v10, %v1880_v51 }
 0x389   : > { %7133 = vst [vmem:[#allocation45_spill] sm:$0xff] %v5016_v6  ;;  %v5022_v53 = vpop.eup %3996  ;;  %v1925_v13 = vmul.f32 1.442695, %v5016_v6 }
 0x38a   : > { %v1013_v14 = vpop.xlane.xlu1 %1012  ;;  %1104 = vrot.lane.b32.xlu1 %v5020_v56, %s4403_s17  ;;  %v5036_v7 = vpop.eup %3998  ;;  %7140 = vst [vmem:[#allocation52_spill] sm:$0xff] %v5074_v0 }
 0x38b   : > { %v1010_v31 = vpop.xlane.xlu0 %1009  ;;  %4008 = vpow2.f32 %v1925_v13  ;;  %1969 = vrot.lane.b32.xlu0 %v5022_v53, %s4404_s18  ;;  %v5043_v6 = vsub.f32 %v4780_v10, %v1013_v14 }
 0x38c   : > { %v5034_v38 = vsub.f32 %v4720_v45, %v1010_v31  ;;  %4010 = vpow2.f32 %v1494_v30 }
 0x38d   : > { %7136 = vst [vmem:[#allocation48_spill] sm:$0xff] %v5043_v6  ;;  %v1064_v47 = vmul.f32 1.442695, %v5043_v6 }
 0x38e   : > { %7135 = vst [vmem:[#allocation47_spill] sm:$0xff] %v5034_v38  ;;  %v1062_v5 = vmul.f32 1.442695, %v5034_v38  ;;  %v5039_v2 = vpop.eup %4000  ;;  %v1444_v12 = vpop.xlane.xlu1 %1443  ;;  %1538 = vrot.lane.b32.xlu1 %v5036_v7, %s4402_s13 }
 0x38f   : > { %v1453_v13 = vpop.xlane.xlu0 %1452  ;;  %v5048_v31 = vsub.f32 %v4720_v45, %v1444_v12  ;;  %1106 = vrot.lane.b32.xlu0 %v5039_v2, %s4403_s17  ;;  %v5052_v24 = vpop.eup %4002  ;;  %v5061_v12 = vsub.f32 %v4780_v10, %v1447_v27 }
 0x390   : > { %4012 = vpow2.f32 %v1062_v5 }
 0x391   : > { %7137 = vst [vmem:[#allocation49_spill] sm:$0xff] %v5048_v31  ;;  %v5054_v61 = vpop.eup %4004  ;;  %v1496_v14 = vmul.f32 1.442695, %v5048_v31  ;;  %4014 = vpow2.f32 %v1927_v18  ;;  %7138 = vst [vmem:[#allocation50_spill] sm:$0xff] %v5061_v12 }
 0x392   : > { %v1877_v59 = vpop.xlane.xlu1 %1876  ;;  %1971 = vrot.lane.b32.xlu1 %v5052_v24, %s4404_s18  ;;  %v5068_v5 = vpop.eup %4006 }
 0x393   : > { %v1886_v30 = vpop.xlane.xlu0 %1885  ;;  %4016 = vpow2.f32 %v1496_v14  ;;  %v5064_v28 = vsub.f32 %v4720_v45, %v1877_v59  ;;  %1540 = vrot.lane.b32.xlu0 %v5054_v61, %s4402_s13  ;;  %v1498_v59 = vmul.f32 1.442695, %v5061_v12 }
 0x394   : > { %4018 = vpow2.f32 %v1064_v47  ;;  %v1931_v47 = vmul.f32 1.442695, %v5074_v0 }
 0x395   : > { %7139 = vst [vmem:[#allocation51_spill] sm:$0xff] %v5064_v28  ;;  %v5070_v18 = vpop.eup %4008  ;;  %v1929_v8 = vmul.f32 1.442695, %v5064_v28 }
 0x396   : > { %v1019_v25 = vpop.xlane.xlu1 %1018  ;;  %1108 = vrot.lane.b32.xlu1 %v5068_v5, %s4403_s17  ;;  %v5084_v45 = vpop.eup %4010 }
 0x397   : > { %v1016_v27 = vpop.xlane.xlu0 %1015  ;;  %4020 = vpow2.f32 %v1929_v8  ;;  %1973 = vrot.lane.b32.xlu0 %v5070_v18, %s4404_s18  ;;  %v5091_v28 = vsub.f32 %v4730_v50, %v1019_v25 }
 0x398   : > { %v5082_v14 = vsub.f32 %v4733_v52, %v1016_v27  ;;  %4022 = vpow2.f32 %v1498_v59 }
 0x399   : > { %7142 = vst [vmem:[#allocation54_spill] sm:$0xff] %v5091_v28  ;;  %v1068_v0 = vmul.f32 1.442695, %v5091_v28 }
 0x39a   : > { %7141 = vst [vmem:[#allocation53_spill] sm:$0xff] %v5082_v14  ;;  %v1066_v51 = vmul.f32 1.442695, %v5082_v14  ;;  %v5087_v10 = vpop.eup %4012  ;;  %v1450_v31 = vpop.xlane.xlu1 %1449  ;;  %1542 = vrot.lane.b32.xlu1 %v5084_v45, %s4402_s13 }
 0x39b   : > { %v1459_v8 = vpop.xlane.xlu0 %1458  ;;  %v5096_v27 = vsub.f32 %v4733_v52, %v1450_v31  ;;  %1110 = vrot.lane.b32.xlu0 %v5087_v10, %s4403_s17  ;;  %v5100_v12 = vpop.eup %4014  ;;  %v5109_v31 = vsub.f32 %v4730_v50, %v1453_v13 }
 0x39c   : > { %4024 = vpow2.f32 %v1066_v51 }
 0x39d   : > { %7143 = vst [vmem:[#allocation55_spill] sm:$0xff] %v5096_v27  ;;  %v5102_v43 = vpop.eup %4016  ;;  %v1500_v25 = vmul.f32 1.442695, %v5096_v27  ;;  %4026 = vpow2.f32 %v1931_v47  ;;  %7144 = vst [vmem:[#allocation56_spill] sm:$0xff] %v5109_v31  ;;  %v1502_v13 = vmul.f32 1.442695, %v5109_v31 }
 0x39e   : > { %v1883_v36 = vpop.xlane.xlu1 %1882  ;;  %1975 = vrot.lane.b32.xlu1 %v5100_v12, %s4404_s18  ;;  %v5116_v51 = vpop.eup %4018 }
 0x39f   : > { %v1892_v59 = vpop.xlane.xlu0 %1891  ;;  %4028 = vpow2.f32 %v1500_v25  ;;  %v5112_v44 = vsub.f32 %v4733_v52, %v1883_v36  ;;  %1544 = vrot.lane.b32.xlu0 %v5102_v43, %s4402_s13  ;;  %v5125_v25 = vsub.f32 %v4730_v50, %v1886_v30 }
 0x3a0   : > { %4030 = vpow2.f32 %v1068_v0 }
 0x3a1   : > { %7145 = vst [vmem:[#allocation57_spill] sm:$0xff] %v5112_v44  ;;  %v5118_v47 = vpop.eup %4020  ;;  %v1933_v27 = vmul.f32 1.442695, %v5112_v44  ;;  %7146 = vst [vmem:[#allocation58_spill] sm:$0xff] %v5125_v25  ;;  %v1935_v30 = vmul.f32 1.442695, %v5125_v25 }
 0x3a2   : > { %1112 = vrot.lane.b32.xlu1 %v5116_v51, %s4403_s17  ;;  %v1025_v52 = vpop.xlane.xlu1 %1024  ;;  %v5132_v57 = vpop.eup %4022 }
 0x3a3   : > { %v1022_v14 = vpop.xlane.xlu0 %1021  ;;  %4032 = vpow2.f32 %v1933_v27  ;;  %1977 = vrot.lane.b32.xlu0 %v5118_v47, %s4404_s18  ;;  %v5141_v27 = vsub.f32 %v4745_v58, %v1025_v52 }
 0x3a4   : > { %v5130_v36 = vsub.f32 %v4748_v60, %v1022_v14  ;;  %4034 = vpow2.f32 %v1502_v13 }
 0x3a5   : > { %7148 = vst [vmem:[#allocation60_spill] sm:$0xff] %v5141_v27  ;;  %v1072_v13 = vmul.f32 1.442695, %v5141_v27 }
 0x3a6   : > { %7147 = vst [vmem:[#allocation59_spill] sm:$0xff] %v5130_v36  ;;  %v1070_v0 = vmul.f32 1.442695, %v5130_v36  ;;  %v5135_v44 = vpop.eup %4024  ;;  %1546 = vrot.lane.b32.xlu1 %v5132_v57, %s4402_s13  ;;  %v5152_v36 = vsub.f32 %v4745_v58, %v1459_v8 }
 0x3a7   : > { %1114 = vrot.lane.b32.xlu0 %v5135_v44, %s4403_s17  ;;  %v5145_v14 = vpop.eup %4026  ;;  %v1456_v31 = vpop.xlane.xlu0 %1455 }
 0x3a8   : > { %4036 = vpow2.f32 %v1070_v0  ;;  %7149 = vst [vmem:[#allocation61_spill] sm:$0xff] %v5152_v36  ;;  %v1506_v0 = vmul.f32 1.442695, %v5152_v36  ;;  %v5177_v28 = vsub.f32 %v4748_v60, %v1456_v31 }
 0x3a9   : > { %v5147_v50 = vpop.eup %4028  ;;  %4038 = vpow2.f32 %v1935_v30  ;;  %v5165_v30 = vsub.f32 %v4745_v58, %v1892_v59 }
 0x3aa   : > { %1979 = vrot.lane.b32.xlu1 %v5145_v14, %s4404_s18  ;;  %v5157_v52 = vpop.eup %4030  ;;  %4040 = vpow2.f32 %v1072_v13  ;;  %7152 = vst [vmem:[#allocation64_spill] sm:$0xff] %v5177_v28  ;;  %v1504_v58 = vmul.f32 1.442695, %v5177_v28 }
 0x3ab   : > { %1548 = vrot.lane.b32.xlu0 %v5147_v50, %s4402_s13  ;;  %7150 = vst [vmem:[#allocation62_spill] sm:$0xff] %v5165_v30  ;;  %4042 = vpow2.f32 %v1506_v0  ;;  %v1939_v38 = vmul.f32 1.442695, %v5165_v30  ;;  %v1889_v59 = vpop.xlane.xlu0 %1888 }
 0x3ac   : > { %v5187_v36 = vsub.f32 %v4748_v60, %v1889_v59 }
 0x3ad   : > { %v5159_v25 = vpop.eup %4032  ;;  %4044 = vpow2.f32 %v1939_v38 }
 0x3ae   : > { %1116 = vrot.lane.b32.xlu1 %v5157_v52, %s4403_s17  ;;  %v5169_v8 = vpop.eup %4034  ;;  %7153 = vst [vmem:[#allocation65_spill] sm:$0xff] %v5187_v36  ;;  %4046 = vpow2.f32 %v1504_v58  ;;  %v1937_v31 = vmul.f32 1.442695, %v5187_v36 }
 0x3af   : > { %1981 = vrot.lane.b32.xlu0 %v5159_v25, %s4404_s18 }
 0x3b0   : > { %4048 = vpow2.f32 %v1937_v31 }
 0x3b2   : > { %v5171_v27 = vpop.eup %4036  ;;  %1550 = vrot.lane.b32.xlu1 %v5169_v8, %s4402_s13 }
 0x3b3   : > { %7151 = vst [vmem:[#allocation63_spill] sm:$0xff] %v5171_v27  ;;  %1118 = vrot.lane.b32.xlu0 %v5171_v27, %s4403_s17  ;;  %v5181_v13 = vpop.eup %4038 }
 0x3b4   : > { %v5189_v0 = vpop.eup %4040 }
 0x3b5   : > { %7154 = vst [vmem:[#allocation66_spill] sm:$0xff] %v5189_v0  ;;  %v5194_v30 = vpop.eup %4042 }
 0x3b6   : > { %1983 = vrot.lane.b32.xlu1 %v5181_v13, %s4404_s18  ;;  %7155 = vst [vmem:[#allocation67_spill] sm:$0xff] %v5194_v30 }
 0x3b7   : > { %v5198_v38 = vpop.eup %4044 }
 0x3b8   : > { %7156 = vst [vmem:[#allocation68_spill] sm:$0xff] %v5198_v38  ;;  %v5202_v59 = vpop.eup %4046 }
 0x3b9   : > { %7157 = vst [vmem:[#allocation69_spill] sm:$0xff] %v5202_v59 }
 0x3ba   : > { %1120 = vrot.lane.b32.xlu1 %v5189_v0, %s4403_s17  ;;  %v5206_v60 = vpop.eup %4048 }
 0x3bb   : > { %7158 = vst [vmem:[#allocation70_spill] sm:$0xff] %v5206_v60 }
 0x3be   : > { %1554 = vrot.lane.b32.xlu1 %v5194_v30, %s4402_s13 }
 0x3c2   : > { %1987 = vrot.lane.b32.xlu1 %v5198_v38, %s4404_s18 }
 0x3c6   : > { %1552 = vrot.lane.b32.xlu1 %v5202_v59, %s4402_s13 }
 0x3ca   : > { %1985 = vrot.lane.b32.xlu1 %v5206_v60, %s4404_s18 }
 0x3cc   : > { %v1527_v58 = vpop.permute.xlu0 %1526 }
 0x3cd   : > { %v1575_v31 = vsel %vm1138_vm5, %v1527_v58, 0.0  ;;  %v1093_v38 = vpop.permute.xlu1 %1092 }
 0x3d0   : > { %v1960_v36 = vpop.permute.xlu0 %1959 }
 0x3d1   : > { %v2008_v27 = vsel %vm1138_vm5, %v1960_v36, 0.0 }
 0x3d2   : > { %1576 = vadd.xlane.f32.xlu0 %v1575_v31 }
 0x3d4   : > { %v1091_v28 = vpop.permute.xlu0 %1090 }
 0x3d5   : > { %v1139_v0 = vsel %vm1138_vm5, %v1091_v28, 0.0  ;;  %v1142_v28 = vsel %vm1138_vm5, %v1093_v38, 0.0 }
 0x3d6   : > { %2009 = vadd.xlane.f32.xlu0 %v2008_v27 }
 0x3d8   : > { %v1525_v30 = vpop.permute.xlu0 %1524 }
 0x3d9   : > { %v1572_v23 = vsel %vm1138_vm5, %v1525_v30, 0.0 }
 0x3da   : > { %1140 = vadd.xlane.f32.xlu0 %v1139_v0 }
 0x3dc   : > { %v1097_v59 = vpop.permute.xlu1 %1096  ;;  %v1958_v54 = vpop.permute.xlu0 %1957 }
 0x3dd   : > { %v2005_v40 = vsel %vm1138_vm5, %v1958_v54, 0.0 }
 0x3de   : > { %2006 = vadd.xlane.f32.xlu0 %v2005_v40 }
 0x3e0   : > { %v1531_v60 = vpop.permute.xlu1 %1530 }
 0x3e4   : > { %v1964_v16 = vpop.permute.xlu1 %1963  ;;  %v1529_v6 = vpop.permute.xlu0 %1528 }
 0x3e5   : > { %v2014_v58 = vsel %vm1138_vm5, %v1964_v16, 0.0  ;;  %v1578_v0 = vsel %vm1138_vm5, %v1529_v6, 0.0 }
 0x3e6   : > { %2015 = vadd.xlane.f32.xlu0 %v2014_v58 }
 0x3e8   : > { %v1095_v31 = vpop.permute.xlu1 %1094 }
 0x3e9   : > { %v1099_v32 = vpop.permute.xlu0 %1098  ;;  %v1145_v36 = vsel %vm1138_vm5, %v1095_v31, 0.0  ;;  %v1148_v31 = vsel %vm1138_vm5, %v1097_v59, 0.0 }
 0x3ea   : > { %1146 = vadd.xlane.f32.xlu0 %v1145_v36  ;;  %v1151_v36 = vsel %vm1138_vm5, %v1099_v32, 0.0 }
 0x3ec   : > { %v1962_v27 = vpop.permute.xlu1 %1961 }
 0x3ed   : > { %v1533_v35 = vpop.permute.xlu0 %1532  ;;  %v2011_v16 = vsel %vm1138_vm5, %v1962_v27, 0.0 }
 0x3ee   : > { %1143 = vadd.xlane.f32.xlu1 %v1142_v28  ;;  %1579 = vadd.xlane.f32.xlu0 %v1578_v0  ;;  %v1581_v28 = vsel %vm1138_vm5, %v1531_v60, 0.0  ;;  %v1584_v0 = vsel %vm1138_vm5, %v1533_v35, 0.0 }
 0x3f0   : > { %v1101_v40 = vpop.permute.xlu1 %1100 }
 0x3f1   : > { %v1966_v54 = vpop.permute.xlu0 %1965 }
 0x3f2   : > { %1573 = vadd.xlane.f32.xlu1 %v1572_v23  ;;  %2012 = vadd.xlane.f32.xlu0 %v2011_v16  ;;  %v1154_v23 = vsel %vm1138_vm5, %v1101_v40, 0.0  ;;  %v2017_v16 = vsel %vm1138_vm5, %v1966_v54, 0.0 }
 0x3f4   : > { %v1535_v58 = vpop.permute.xlu1 %1534 }
 0x3f5   : > { %v1103_v29 = vpop.permute.xlu0 %1102 }
 0x3f6   : > { %1149 = vadd.xlane.f32.xlu1 %v1148_v31  ;;  %1152 = vadd.xlane.f32.xlu0 %v1151_v36  ;;  %v1587_v31 = vsel %vm1138_vm5, %v1535_v58, 0.0  ;;  %v1157_v36 = vsel %vm1138_vm5, %v1103_v29, 0.0 }
 0x3f8   : > { %v1968_v38 = vpop.permute.xlu1 %1967 }
 0x3f9   : > { %v1537_v6 = vpop.permute.xlu0 %1536 }
 0x3fa   : > { %1582 = vadd.xlane.f32.xlu1 %v1581_v28  ;;  %1585 = vadd.xlane.f32.xlu0 %v1584_v0  ;;  %v2020_v28 = vsel %vm1138_vm5, %v1968_v38, 0.0  ;;  %v1590_v0 = vsel %vm1138_vm5, %v1537_v6, 0.0 }
 0x3fc   : > { %v1105_v30 = vpop.permute.xlu1 %1104 }
 0x3fd   : > { %v1970_v27 = vpop.permute.xlu0 %1969 }
 0x3fe   : > { %1155 = vadd.xlane.f32.xlu1 %v1154_v23  ;;  %2018 = vadd.xlane.f32.xlu0 %v2017_v16  ;;  %v1160_v23 = vsel %vm1138_vm5, %v1105_v30, 0.0  ;;  %v2023_v16 = vsel %vm1138_vm5, %v1970_v27, 0.0 }
 0x400   : > { %v1539_v59 = vpop.permute.xlu1 %1538 }
 0x401   : > { %v1107_v32 = vpop.permute.xlu0 %1106 }
 0x402   : > { %1588 = vadd.xlane.f32.xlu1 %v1587_v31  ;;  %1158 = vadd.xlane.f32.xlu0 %v1157_v36  ;;  %v1593_v31 = vsel %vm1138_vm5, %v1539_v59, 0.0  ;;  %v1163_v36 = vsel %vm1138_vm5, %v1107_v32, 0.0 }
 0x404   : > { %v1972_v60 = vpop.permute.xlu1 %1971 }
 0x405   : > { %v1541_v35 = vpop.permute.xlu0 %1540 }
 0x406   : > { %2021 = vadd.xlane.f32.xlu1 %v2020_v28  ;;  %1591 = vadd.xlane.f32.xlu0 %v1590_v0  ;;  %v2026_v28 = vsel %vm1138_vm5, %v1972_v60, 0.0  ;;  %v1596_v0 = vsel %vm1138_vm5, %v1541_v35, 0.0 }
 0x408   : > { %v1109_v40 = vpop.permute.xlu1 %1108 }
 0x409   : > { %v1974_v54 = vpop.permute.xlu0 %1973  ;;  %v1166_v27 = vsel %vm1138_vm5, %v1109_v40, 0.0 }
 0x40a   : > { %1161 = vadd.xlane.f32.xlu1 %v1160_v23  ;;  %2024 = vadd.xlane.f32.xlu0 %v2023_v16  ;;  %v2029_v23 = vsel %vm1138_vm5, %v1974_v54, 0.0 }
 0x40c   : > { %v1543_v58 = vpop.permute.xlu1 %1542 }
 0x40d   : > { %v1111_v29 = vpop.permute.xlu0 %1110  ;;  %v1599_v32 = vsel %vm1138_vm5, %v1543_v58, 0.0 }
 0x40e   : > { %1594 = vadd.xlane.f32.xlu1 %v1593_v31  ;;  %1164 = vadd.xlane.f32.xlu0 %v1163_v36  ;;  %v1169_v31 = vsel %vm1138_vm5, %v1111_v29, 0.0 }
 0x410   : > { %v1976_v38 = vpop.permute.xlu1 %1975 }
 0x411   : > { %v1545_v6 = vpop.permute.xlu0 %1544  ;;  %v2032_v35 = vsel %vm1138_vm5, %v1976_v38, 0.0 }
 0x412   : > { %2027 = vadd.xlane.f32.xlu1 %v2026_v28  ;;  %1597 = vadd.xlane.f32.xlu0 %v1596_v0  ;;  %v1602_v28 = vsel %vm1138_vm5, %v1545_v6, 0.0 }
 0x414   : > { %v1113_v30 = vpop.permute.xlu1 %1112 }
 0x415   : > { %v1978_v16 = vpop.permute.xlu0 %1977  ;;  %v1172_v54 = vsel %vm1138_vm5, %v1113_v30, 0.0 }
 0x416   : > { %1167 = vadd.xlane.f32.xlu1 %v1166_v27  ;;  %2030 = vadd.xlane.f32.xlu0 %v2029_v23  ;;  %v2035_v0 = vsel %vm1138_vm5, %v1978_v16, 0.0 }
 0x418   : > { %v1547_v59 = vpop.permute.xlu1 %1546 }
 0x419   : > { %v1115_v60 = vpop.permute.xlu0 %1114  ;;  %v1605_v29 = vsel %vm1138_vm5, %v1547_v59, 0.0 }
 0x41a   : > { %1600 = vadd.xlane.f32.xlu1 %v1599_v32  ;;  %1170 = vadd.xlane.f32.xlu0 %v1169_v31  ;;  %v1175_v31 = vsel %vm1138_vm5, %v1115_v60, 0.0 }
 0x41c   : > { %v1980_v36 = vpop.permute.xlu1 %1979 }
 0x41d   : > { %v1549_v27 = vpop.permute.xlu0 %1548  ;;  %v2038_v6 = vsel %vm1138_vm5, %v1980_v36, 0.0 }
 0x41e   : > { %2033 = vadd.xlane.f32.xlu1 %v2032_v35  ;;  %1603 = vadd.xlane.f32.xlu0 %v1602_v28  ;;  %v1608_v60 = vsel %vm1138_vm5, %v1549_v27, 0.0 }
 0x420   : > { %v1117_v40 = vpop.permute.xlu1 %1116 }
 0x421   : > { %v1178_v23 = vsel %vm1138_vm5, %v1117_v40, 0.0  ;;  %v1982_v38 = vpop.permute.xlu0 %1981 }
 0x422   : > { %1173 = vadd.xlane.f32.xlu1 %v1172_v54  ;;  %2036 = vadd.xlane.f32.xlu0 %v2035_v0  ;;  %v2041_v35 = vsel %vm1138_vm5, %v1982_v38, 0.0 }
 0x424   : > { %v1551_v58 = vpop.permute.xlu1 %1550 }
 0x425   : > { %v1611_v16 = vsel %vm1138_vm5, %v1551_v58, 0.0  ;;  %v1119_v28 = vpop.permute.xlu0 %1118 }
 0x426   : > { %1606 = vadd.xlane.f32.xlu1 %v1605_v29  ;;  %1179 = vadd.xlane.f32.xlu0 %v1178_v23  ;;  %v1181_v54 = vsel %vm1138_vm5, %v1119_v28, 0.0 }
 0x428   : > { %v1984_v32 = vpop.permute.xlu1 %1983 }
 0x429   : > { %v2044_v40 = vsel %vm1138_vm5, %v1984_v32, 0.0 }
 0x42a   : > { %2039 = vadd.xlane.f32.xlu1 %v2038_v6  ;;  %1176 = vadd.xlane.f32.xlu0 %v1175_v31 }
 0x42c   : > { %v1121_v30 = vpop.permute.xlu1 %1120 }
 0x42d   : > { %v1184_v29 = vsel %vm1138_vm5, %v1121_v30, 0.0 }
 0x42e   : > { %1612 = vadd.xlane.f32.xlu1 %v1611_v16  ;;  %2042 = vadd.xlane.f32.xlu0 %v2041_v35 }
 0x430   : > { %v1555_v59 = vpop.permute.xlu1 %1554 }
 0x431   : > { %v1617_v23 = vsel %vm1138_vm5, %v1555_v59, 0.0 }
 0x432   : > { %2045 = vadd.xlane.f32.xlu1 %v2044_v40  ;;  %1182 = vadd.xlane.f32.xlu0 %v1181_v54 }
 0x434   : > { %v1988_v36 = vpop.permute.xlu1 %1987 }
 0x435   : > { %v2050_v38 = vsel %vm1138_vm5, %v1988_v36, 0.0 }
 0x436   : > { %1609 = vadd.xlane.f32.xlu1 %v1608_v60 }
 0x438   : > { %v1553_v0 = vpop.permute.xlu1 %1552 }
 0x439   : > { %v1614_v58 = vsel %vm1138_vm5, %v1553_v0, 0.0 }
 0x43a   : > { %1185 = vadd.xlane.f32.xlu1 %v1184_v29  ;;  %1615 = vadd.xlane.f32.xlu0 %v1614_v58 }
 0x43c   : > { %v1986_v32 = vpop.permute.xlu1 %1985 }
 0x43d   : > { %v2047_v6 = vsel %vm1138_vm5, %v1986_v32, 0.0 }
 0x43e   : > { %1618 = vadd.xlane.f32.xlu1 %v1617_v23 }
 0x442   : > { %2051 = vadd.xlane.f32.xlu1 %v2050_v38 }
 0x446   : > { %2048 = vadd.xlane.f32.xlu1 %v2047_v6 }
 0x45f   : > { %v5258_v31 = vpop.xlane.xlu0 %1576 }
 0x463   : > { %v5260_v27 = vpop.xlane.xlu0 %2009 }
 0x467   : > { %v5262_v16 = vpop.xlane.xlu0 %1140 }
 0x468   : > { %7159 = vst [vmem:[#allocation71_spill] sm:$0xff] %v5262_v16 }
 0x46b   : > { %v5264_v30 = vpop.xlane.xlu0 %2006 }
 0x473   : > { %v5266_v35 = vpop.xlane.xlu0 %2015 }
 0x474   : > { %7160 = vst [vmem:[#allocation72_spill] sm:$0xff] %v5266_v35 }
 0x477   : > { %v5268_v28 = vpop.xlane.xlu0 %1146 }
 0x478   : > { %7161 = vst [vmem:[#allocation73_spill] sm:$0xff] %v5268_v28 }
 0x47b   : > { %v5270_v59 = vpop.xlane.xlu1 %1143  ;;  %v5272_v40 = vpop.xlane.xlu0 %1579 }
 0x47c   : > { %7162 = vst [vmem:[#allocation74_spill] sm:$0xff] %v5270_v59  ;;  %7163 = vst [vmem:[#allocation75_spill] sm:$0xff] %v5272_v40  ;;  %4050 = vrcp.f32 %v5270_v59 }
 0x47d   : > { %4052 = vrcp.f32 %v5258_v31 }
 0x47e   : > { %4054 = vrcp.f32 %v5262_v16 }
 0x47f   : > { %v5276_v54 = vpop.xlane.xlu1 %1573  ;;  %v5278_v36 = vpop.xlane.xlu0 %2012 }
 0x480   : > { %7164 = vst [vmem:[#allocation76_spill] sm:$0xff] %v5276_v54  ;;  %7165 = vst [vmem:[#allocation77_spill] sm:$0xff] %v5278_v36 }
 0x483   : > { %v5281_v60 = vpop.xlane.xlu1 %1149  ;;  %v5283_v0 = vpop.xlane.xlu0 %1152 }
 0x484   : > { %7166 = vst [vmem:[#allocation78_spill] sm:$0xff] %v5281_v60  ;;  %7167 = vst [vmem:[#allocation79_spill] sm:$0xff] %v5283_v0  ;;  %4056 = vrcp.f32 %v5281_v60 }
 0x485   : > { %4058 = vrcp.f32 %v5276_v54 }
 0x486   : > { %v4051_v29 = vpop.eup %4050 }
 0x487   : > { %v5287_v58 = vpop.xlane.xlu1 %1582  ;;  %v5289_v23 = vpop.xlane.xlu0 %1585  ;;  %v5292_v38 = vmul.f32 %v4051_v29, %v4851_v3  ;;  %v2502_v3 = vld [vmem:[%s6964_s7] sm:$0xff]  ;;  %v2503_v29 = vld [vmem:[%s6964_s7 + $0x8] sm:$0xff] }
 0x488   : > { %7168 = vst [vmem:[#allocation80_spill] sm:$0xff] %v5287_v58  ;;  %7169 = vst [vmem:[#allocation81_spill] sm:$0xff] %v5289_v23  ;;  %v4053_v32 = vpop.eup %4052  ;;  %4060 = vrcp.f32 %v5287_v58  ;;  %v3834_v58 = vpack.c.bf16 %v2503_v29, %v2502_v3 }
 0x489   : > { %4062 = vrcp.f32 %v5266_v35  ;;  %2295 = vrot.lane.b32.xlu0 %v5292_v38, %s4403_s17  ;;  %v5304_v54 = vmul.f32 %v4053_v32, %v4849_v1  ;;  %v4055_v59 = vpop.eup %4054 }
 0x48a   : > { %4064 = vrcp.f32 %v5268_v28  ;;  %v5324_v16 = vmul.f32 %v4055_v59, %v4873_v17  ;;  %3838 = vmatprep.subr.bf16.mxu1 %v3834_v58  ;;  %3835 = vmatprep.subr.bf16.mxu0 %v3834_v58 }
 0x48b   : > { %v5299_v6 = vpop.xlane.xlu1 %1155  ;;  %v5301_v60 = vpop.xlane.xlu0 %2018  ;;  %4066 = vrcp.f32 %v5272_v40  ;;  %3840 = vmatpush3.bf16.msra.mxu1 %v3834_v58  ;;  %3837 = vmatpush3.bf16.msra.mxu0 %v3834_v58 }
 0x48c   : > { %7170 = vst [vmem:[#allocation82_spill] sm:$0xff] %v5299_v6  ;;  %7171 = vst [vmem:[#allocation83_spill] sm:$0xff] %v5301_v60  ;;  %4068 = vrcp.f32 %v5278_v36 }
 0x48d   : > { %2359 = vrot.lane.b32.xlu0 %v5304_v54, %s4403_s17  ;;  %4070 = vrcp.f32 %v5299_v6 }
 0x48e   : > { %v4057_v28 = vpop.eup %4056 }
 0x48f   : > { %v5316_v1 = vpop.xlane.xlu1 %1588  ;;  %v5318_v32 = vpop.xlane.xlu0 %1158  ;;  %v5321_v35 = vmul.f32 %v4057_v28, %v4898_v34  ;;  %v2504_v34 = vld [vmem:[%s6964_s7 + $0x10] sm:$0xff] }
 0x490   : > { %7172 = vst [vmem:[#allocation84_spill] sm:$0xff] %v5316_v1  ;;  %v4059_v40 = vpop.eup %4058  ;;  %4072 = vrcp.f32 %v5316_v1  ;;  %3839 = vmatprep.subr.mxu1 %v2504_v34  ;;  %3768 = vmatprep.subr.mxu0 %v2504_v34 }
 0x491   : > { %2299 = vrot.lane.b32.xlu1 %v5321_v35, %s4403_s17  ;;  %2293 = vrot.lane.b32.xlu0 %v5324_v16, %s4403_s17  ;;  %v5343_v29 = vmul.f32 %v4059_v40, %v4884_v26  ;;  %4074 = vrcp.f32 %v5283_v0 }
 0x492   : > { %v4061_v28 = vpop.eup %4060  ;;  %3841 = vmatpush3.msra.mxu1 %v2504_v34  ;;  %3769 = vmatpush3.msra.mxu0 %v2504_v34 }
 0x493   : > { %v4063_v17 = vpop.eup %4062  ;;  %v5335_v59 = vpop.xlane.xlu1 %2021  ;;  %v5340_v3 = vmul.f32 %v4061_v28, %v4912_v46 }
 0x494   : > { %7173 = vst [vmem:[#allocation85_spill] sm:$0xff] %v5335_v59  ;;  %v5337_v58 = vpop.xlane.xlu0 %1591  ;;  %v4065_v6 = vpop.eup %4064  ;;  %4076 = vrcp.f32 %v5335_v59  ;;  %v5356_v26 = vmul.f32 %v4063_v17, %v4924_v62 }
 0x495   : > { %7174 = vst [vmem:[#allocation86_spill] sm:$0xff] %v5337_v58  ;;  %2363 = vrot.lane.b32.xlu1 %v5340_v3, %s4403_s17  ;;  %2357 = vrot.lane.b32.xlu0 %v5343_v29, %s4403_s17  ;;  %v4067_v1 = vpop.eup %4066  ;;  %v5359_v40 = vmul.f32 %v4065_v6, %v4940_v19  ;;  %4078 = vrcp.f32 %v5289_v23 }
 0x496   : > { %v4069_v34 = vpop.eup %4068  ;;  %4080 = vrcp.f32 %v5301_v60  ;;  %v5372_v62 = vmul.f32 %v4067_v1, %v4926_v4 }
 0x497   : > { %v5351_v36 = vpop.xlane.xlu1 %1161  ;;  %v4071_v28 = vpop.eup %4070  ;;  %v5375_v19 = vmul.f32 %v4069_v34, %v4956_v37 }
 0x498   : > { %7175 = vst [vmem:[#allocation87_spill] sm:$0xff] %v5351_v36  ;;  %v5353_v46 = vpop.xlane.xlu0 %2024  ;;  %4082 = vrcp.f32 %v5351_v36  ;;  %v5391_v37 = vmul.f32 %v4071_v28, %v4972_v15 }
 0x499   : > { %7176 = vst [vmem:[#allocation88_spill] sm:$0xff] %v5353_v46  ;;  %2427 = vrot.lane.b32.xlu1 %v5356_v26, %s4403_s17  ;;  %2297 = vrot.lane.b32.xlu0 %v5359_v40, %s4403_s17 }
 0x49a   : > { %v4073_v6 = vpop.eup %4072 }
 0x49b   : > { %v5367_v59 = vpop.xlane.xlu1 %1594  ;;  %v4075_v17 = vpop.eup %4074  ;;  %v5388_v4 = vmul.f32 %v4073_v6, %v4988_v63 }
 0x49c   : > { %7177 = vst [vmem:[#allocation89_spill] sm:$0xff] %v5367_v59  ;;  %v5369_v0 = vpop.xlane.xlu0 %1164  ;;  %4084 = vrcp.f32 %v5367_v59  ;;  %v5407_v15 = vmul.f32 %v4075_v17, %v4943_v22 }
 0x49d   : > { %2361 = vrot.lane.b32.xlu1 %v5372_v62, %s4403_s17  ;;  %2425 = vrot.lane.b32.xlu0 %v5375_v19, %s4403_s17  ;;  %4086 = vrcp.f32 %v5318_v32 }
 0x49e   : > { %v4077_v1 = vpop.eup %4076 }
 0x49f   : > { %v5383_v60 = vpop.xlane.xlu1 %2027  ;;  %v4079_v34 = vpop.eup %4078  ;;  %v5404_v63 = vmul.f32 %v4077_v1, %v5004_v48 }
 0x4a0   : > { %7178 = vst [vmem:[#allocation90_spill] sm:$0xff] %v5383_v60  ;;  %v5385_v23 = vpop.xlane.xlu0 %1597  ;;  %4088 = vrcp.f32 %v5383_v60  ;;  %v4081_v28 = vpop.eup %4080  ;;  %v5418_v48 = vmul.f32 %v4079_v34, %v4958_v42 }
 0x4a1   : > { %7179 = vst [vmem:[#allocation91_spill] sm:$0xff] %v5385_v23  ;;  %2367 = vrot.lane.b32.xlu1 %v5388_v4, %s4403_s17  ;;  %2303 = vrot.lane.b32.xlu0 %v5391_v37, %s4403_s17  ;;  %4090 = vrcp.f32 %v5337_v58  ;;  %v5421_v22 = vmul.f32 %v4081_v28, %v4974_v21 }
 0x4a2   : > { %4092 = vrcp.f32 %v5353_v46  ;;  %v4083_v6 = vpop.eup %4082 }
 0x4a3   : > { %v5399_v59 = vpop.xlane.xlu1 %1167  ;;  %v5437_v21 = vmul.f32 %v4083_v6, %v5020_v56 }
 0x4a4   : > { %7180 = vst [vmem:[#allocation92_spill] sm:$0xff] %v5399_v59  ;;  %v5401_v36 = vpop.xlane.xlu0 %2030  ;;  %4094 = vrcp.f32 %v5399_v59 }
 0x4a5   : > { %7181 = vst [vmem:[#allocation93_spill] sm:$0xff] %v5401_v36  ;;  %2431 = vrot.lane.b32.xlu1 %v5404_v63, %s4403_s17  ;;  %2301 = vrot.lane.b32.xlu0 %v5407_v15, %s4403_s17 }
 0x4a6   : > { %v4085_v17 = vpop.eup %4084 }
 0x4a7   : > { %v5415_v60 = vpop.xlane.xlu1 %1600  ;;  %v4087_v46 = vpop.eup %4086  ;;  %v5434_v42 = vmul.f32 %v4085_v17, %v5036_v7 }
 0x4a8   : > { %7182 = vst [vmem:[#allocation94_spill] sm:$0xff] %v5415_v60  ;;  %v5423_v1 = vpop.xlane.xlu0 %1170  ;;  %4096 = vrcp.f32 %v5415_v60  ;;  %v5453_v56 = vmul.f32 %v4087_v46, %v4991_v55 }
 0x4a9   : > { %2365 = vrot.lane.b32.xlu1 %v5418_v48, %s4403_s17  ;;  %2429 = vrot.lane.b32.xlu0 %v5421_v22, %s4403_s17  ;;  %4098 = vrcp.f32 %v5369_v0 }
 0x4aa   : > { %v4089_v34 = vpop.eup %4088 }
 0x4ab   : > { %v5431_v58 = vpop.xlane.xlu1 %2033  ;;  %v4091_v60 = vpop.eup %4090  ;;  %v5450_v7 = vmul.f32 %v4089_v34, %v5052_v24 }
 0x4ac   : > { %7183 = vst [vmem:[#allocation95_spill] sm:$0xff] %v5431_v58  ;;  %4100 = vrcp.f32 %v5431_v58  ;;  %v5445_v28 = vpop.xlane.xlu0 %1603  ;;  %v4093_v6 = vpop.eup %4092  ;;  %v5464_v24 = vmul.f32 %v4091_v60, %v5006_v20 }
 0x4ad   : > { %2371 = vrot.lane.b32.xlu1 %v5434_v42, %s4403_s17  ;;  %2307 = vrot.lane.b32.xlu0 %v5437_v21, %s4403_s17  ;;  %7184 = vst [vmem:[#allocation96_spill] sm:$0xff] %v5445_v28  ;;  %4102 = vrcp.f32 %v5385_v23  ;;  %v5467_v55 = vmul.f32 %v4093_v6, %v5022_v53 }
 0x4ae   : > { %4104 = vrcp.f32 %v5401_v36  ;;  %v4095_v17 = vpop.eup %4094 }
 0x4af   : > { %v5447_v59 = vpop.xlane.xlu1 %1173  ;;  %v5483_v53 = vmul.f32 %v4095_v17, %v5068_v5 }
 0x4b0   : > { %7185 = vst [vmem:[#allocation97_spill] sm:$0xff] %v5447_v59  ;;  %v5469_v34 = vpop.xlane.xlu0 %2036  ;;  %4106 = vrcp.f32 %v5447_v59 }
 0x4b1   : > { %2435 = vrot.lane.b32.xlu1 %v5450_v7, %s4403_s17  ;;  %2305 = vrot.lane.b32.xlu0 %v5453_v56, %s4403_s17  ;;  %7187 = vst [vmem:[#allocation99_spill] sm:$0xff] %v5469_v34 }
 0x4b2   : > { %v4097_v46 = vpop.eup %4096 }
 0x4b3   : > { %v5461_v58 = vpop.xlane.xlu1 %1606  ;;  %v4099_v36 = vpop.eup %4098  ;;  %v5480_v20 = vmul.f32 %v4097_v46, %v5084_v45 }
 0x4b4   : > { %7186 = vst [vmem:[#allocation98_spill] sm:$0xff] %v5461_v58  ;;  %4108 = vrcp.f32 %v5461_v58  ;;  %v5490_v6 = vpop.xlane.xlu0 %1179  ;;  %v5499_v5 = vmul.f32 %v4099_v36, %v5039_v2 }
 0x4b5   : > { %2369 = vrot.lane.b32.xlu1 %v5464_v24, %s4403_s17  ;;  %2433 = vrot.lane.b32.xlu0 %v5467_v55, %s4403_s17  ;;  %4110 = vrcp.f32 %v5423_v1  ;;  %7189 = vst [vmem:[#allocation101_spill] sm:$0xff] %v5490_v6 }
 0x4b6   : > { %v4101_v60 = vpop.eup %4100 }
 0x4b7   : > { %v5477_v23 = vpop.xlane.xlu1 %2039  ;;  %v4103_v58 = vpop.eup %4102  ;;  %v5496_v45 = vmul.f32 %v4101_v60, %v5100_v12 }
 0x4b8   : > { %7188 = vst [vmem:[#allocation100_spill] sm:$0xff] %v5477_v23  ;;  %4112 = vrcp.f32 %v5477_v23  ;;  %v4105_v17 = vpop.eup %4104  ;;  %v5508_v23 = vmul.f32 %v4103_v58, %v5054_v61  ;;  %v5513_v36 = vpop.xlane.xlu0 %1176 }
 0x4b9   : > { %2375 = vrot.lane.b32.xlu1 %v5480_v20, %s4403_s17  ;;  %2311 = vrot.lane.b32.xlu0 %v5483_v53, %s4403_s17  ;;  %4114 = vrcp.f32 %v5445_v28  ;;  %v5511_v12 = vmul.f32 %v4105_v17, %v5070_v18  ;;  %7191 = vst [vmem:[#allocation103_spill] sm:$0xff] %v5513_v36 }
 0x4ba   : > { %4116 = vrcp.f32 %v5469_v34  ;;  %v4107_v46 = vpop.eup %4106 }
 0x4bb   : > { %v5493_v59 = vpop.xlane.xlu1 %1612  ;;  %4118 = vrcp.f32 %v5490_v6  ;;  %v5527_v18 = vmul.f32 %v4107_v46, %v5116_v51 }
 0x4bc   : > { %7190 = vst [vmem:[#allocation102_spill] sm:$0xff] %v5493_v59  ;;  %4120 = vrcp.f32 %v5493_v59  ;;  %v5534_v6 = vpop.xlane.xlu0 %2042 }
 0x4bd   : > { %2439 = vrot.lane.b32.xlu1 %v5496_v45, %s4403_s17  ;;  %2309 = vrot.lane.b32.xlu0 %v5499_v5, %s4403_s17  ;;  %4122 = vrcp.f32 %v5513_v36  ;;  %7193 = vst [vmem:[#allocation105_spill] sm:$0xff] %v5534_v6  ;;  %v7291_v36 = vld [vmem:[#allocation17_spill] sm:$0xff] }
 0x4be   : > { %v4109_v2 = vpop.eup %4108 }
 0x4bf   : > { %v5516_v60 = vpop.xlane.xlu1 %2045  ;;  %v4111_v61 = vpop.eup %4110  ;;  %v5524_v58 = vmul.f32 %v4109_v2, %v5132_v57 }
 0x4c0   : > { %7192 = vst [vmem:[#allocation104_spill] sm:$0xff] %v5516_v60  ;;  %4124 = vrcp.f32 %v5516_v60  ;;  %v5543_v51 = vmul.f32 %v4111_v61, %v5087_v10 }
 0x4c1   : > { %2373 = vrot.lane.b32.xlu1 %v5508_v23, %s4403_s17  ;;  %2437 = vrot.lane.b32.xlu0 %v5511_v12, %s4403_s17  ;;  %4126 = vrcp.f32 %v5534_v6 }
 0x4c2   : > { %v4113_v17 = vpop.eup %4112 }
 0x4c3   : > { %v4115_v59 = vpop.eup %4114  ;;  %v5537_v34 = vpop.xlane.xlu1 %1609  ;;  %v5540_v57 = vmul.f32 %v4113_v17, %v5145_v14 }
 0x4c4   : > { %7194 = vst [vmem:[#allocation106_spill] sm:$0xff] %v5537_v34  ;;  %v4117_v46 = vpop.eup %4116  ;;  %4128 = vrcp.f32 %v5537_v34  ;;  %v5552_v60 = vmul.f32 %v4115_v59, %v5102_v43 }
 0x4c5   : > { %2379 = vrot.lane.b32.xlu1 %v5524_v58, %s4403_s17  ;;  %2315 = vrot.lane.b32.xlu0 %v5527_v18, %s4403_s17  ;;  %v4119_v2 = vpop.eup %4118  ;;  %v5555_v14 = vmul.f32 %v4117_v46, %v5118_v47  ;;  %4130 = vrcp.f32 %v5264_v30 }
 0x4c6   : > { %v4121_v10 = vpop.eup %4120  ;;  %v1216_v6 = vmul.f32 %v4119_v2, %v5157_v52  ;;  %4132 = vrcp.f32 %v5260_v27 }
 0x4c7   : > { %v4123_v61 = vpop.eup %4122  ;;  %v5563_v17 = vmul.f32 %v4121_v10, %v5169_v8 }
 0x4c8   : > { %v1215_v46 = vmul.f32 %v4123_v61, %v5135_v44  ;;  %v1252_v44 = vmul.f32 %v5292_v38, %v4830_v41  ;;  %v1256_v41 = vmul.f32 %v5391_v37, %v4903_v39  ;;  %v5609_v38 = vpop.xlane.xlu1 %1185  ;;  %v7198_v39 = vld [vmem:[#allocation42_spill] sm:$0xff] }
 0x4c9   : > { %2443 = vrot.lane.b32.xlu1 %v5540_v57, %s4403_s17  ;;  %2313 = vrot.lane.b32.xlu0 %v5543_v51, %s4403_s17  ;;  %7195 = vst [vmem:[#allocation107_spill] sm:$0xff] %v5609_v38  ;;  %v1260_v37 = vmul.f32 %v5483_v53, %v7198_v39  ;;  %4134 = vrcp.f32 %v5609_v38 }
 0x4ca   : > { %v4125_v43 = vpop.eup %4124 }
 0x4cb   : > { %v4127_v47 = vpop.eup %4126  ;;  %v5571_v59 = vmul.f32 %v4125_v43, %v5181_v13  ;;  %v7202_v43 = vld [vmem:[#allocation35_spill] sm:$0xff] }
 0x4cc   : > { %v5581_v8 = vmul.f32 %v4127_v47, %v5159_v25  ;;  %v5621_v61 = vpop.xlane.xlu1 %1618  ;;  %v1257_v47 = vmul.f32 %v5453_v56, %v7202_v43 }
 0x4cd   : > { %2377 = vrot.lane.b32.xlu1 %v5552_v60, %s4403_s17  ;;  %2441 = vrot.lane.b32.xlu0 %v5555_v14, %s4403_s17  ;;  %4136 = vrcp.f32 %v5621_v61 }
 0x4ce   : > { %v4129_v34 = vpop.eup %4128 }
 0x4cf   : > { %v5578_v52 = vmul.f32 %v4129_v34, %v5147_v50  ;;  %v4131_v2 = vpop.eup %4130  ;;  %v1254_v50 = vmul.f32 %v5321_v35, %v4862_v9  ;;  %v7196_v9 = vld [vmem:[#allocation36_spill] sm:$0xff]  ;;  %v7197_v35 = vld [vmem:[#allocation27_spill] sm:$0xff] }
 0x4d0   : > { %v5590_v13 = vmul.f32 %v4131_v2, %v4896_v33  ;;  %v4133_v10 = vpop.eup %4132  ;;  %v1251_v33 = vmul.f32 %v5324_v16, %v4838_v49  ;;  %v1253_v34 = vmul.f32 %v5359_v40, %v7197_v35  ;;  %v7199_v49 = vld [vmem:[#allocation30_spill] sm:$0xff]  ;;  %7200 = vst [vmem:[#allocation36_spill] sm:$0xff] %v5621_v61  ;;  %v5635_v53 = vpop.xlane.xlu1 %2051  ;;  %v7205_v2 = vld [vmem:[#allocation21_spill] sm:$0xff] }
 0x4d1   : > { %2383 = vrot.lane.b32.xlu1 %v5563_v17, %s4403_s17  ;;  %2319 = vrot.lane.b32.xlu0 %v1216_v6, %s4403_s17  ;;  %v5598_v25 = vmul.f32 %v4133_v10, %v4864_v11  ;;  %v1258_v11 = vmul.f32 %v5437_v21, %v7196_v9  ;;  %v1255_v16 = vmul.f32 %v5407_v15, %v7199_v49  ;;  %v7201_v21 = vld [vmem:[#allocation48_spill] sm:$0xff]  ;;  %v5633_v15 = vpop.xlane.xlu0 %1182  ;;  %v7206_v10 = vld [vmem:[#allocation41_spill] sm:$0xff]  ;;  %4138 = vrcp.f32 %v5635_v53  ;;  %v7213_v49 = vld [vmem:[#allocation67_spill] sm:$0xff] }
 0x4d2   : > { %v1262_v40 = vmul.f32 %v5527_v18, %v7201_v21  ;;  %7203 = vst [vmem:[#allocation27_spill] sm:$0xff] %v5633_v15  ;;  %7204 = vst [vmem:[#allocation42_spill] sm:$0xff] %v5635_v53  ;;  %v7208_v18 = vld [vmem:[#allocation54_spill] sm:$0xff]  ;;  %4140 = vrcp.f32 %v5633_v15  ;;  %v7214_v21 = vld [vmem:[#allocation53_spill] sm:$0xff] }
 0x4d5   : > { %2447 = vrot.lane.b32.xlu1 %v5571_v59, %s4403_s17  ;;  %2317 = vrot.lane.b32.xlu0 %v1215_v46, %s4403_s17  ;;  %v5644_v56 = vpop.xlane.xlu0 %1615 }
 0x4d6   : > { %7207 = vst [vmem:[#allocation30_spill] sm:$0xff] %v5644_v56  ;;  %4142 = vrcp.f32 %v5644_v56 }
 0x4d9   : > { %2381 = vrot.lane.b32.xlu1 %v5578_v52, %s4403_s17  ;;  %2445 = vrot.lane.b32.xlu0 %v5581_v8, %s4403_s17 }
 0x4dd   : > { %1285 = vrot.lane.b32.xlu1 %v1252_v44, %s4403_s17  ;;  %2421 = vrot.lane.b32.xlu0 %v5590_v13, %s4403_s17  ;;  %v1685_v44 = vmul.f32 %v5304_v54, %v7205_v2  ;;  %v7215_v2 = vld [vmem:[#allocation68_spill] sm:$0xff] }
 0x4e1   : > { %1289 = vrot.lane.b32.xlu1 %v1254_v50, %s4403_s17  ;;  %2423 = vrot.lane.b32.xlu0 %v5598_v25, %s4403_s17  ;;  %v1259_v50 = vmul.f32 %v5499_v5, %v7206_v10  ;;  %v7210_v5 = vld [vmem:[#allocation66_spill] sm:$0xff]  ;;  %v7216_v10 = vld [vmem:[#allocation31_spill] sm:$0xff] }
 0x4e5   : > { %1293 = vrot.lane.b32.xlu1 %v1256_v41, %s4403_s17  ;;  %1283 = vrot.lane.b32.xlu0 %v1251_v33, %s4403_s17  ;;  %v1264_v41 = vmul.f32 %v1216_v6, %v7208_v18  ;;  %v7209_v33 = vld [vmem:[#allocation47_spill] sm:$0xff]  ;;  %v5663_v6 = vpop.xlane.xlu1 %2048 }
 0x4e6   : > { %v1261_v9 = vmul.f32 %v5543_v51, %v7209_v33  ;;  %7212 = vst [vmem:[#allocation48_spill] sm:$0xff] %v5663_v6  ;;  %4144 = vrcp.f32 %v5663_v6  ;;  %v7217_v33 = vld [vmem:[#allocation37_spill] sm:$0xff] }
 0x4e9   : > { %1297 = vrot.lane.b32.xlu1 %v1258_v11, %s4403_s17  ;;  %1287 = vrot.lane.b32.xlu0 %v1253_v34, %s4403_s17  ;;  %v4135_v11 = vpop.eup %4134  ;;  %v7211_v34 = vld [vmem:[#allocation23_spill] sm:$0xff] }
 0x4ea   : > { %v5655_v35 = vmul.f32 %v4135_v11, %v7210_v5  ;;  %v1684_v39 = vmul.f32 %v5343_v29, %v7211_v34  ;;  %v7218_v11 = vld [vmem:[#allocation63_spill] sm:$0xff] }
 0x4ed   : > { %1301 = vrot.lane.b32.xlu1 %v1260_v37, %s4403_s17  ;;  %1291 = vrot.lane.b32.xlu0 %v1255_v16, %s4403_s17  ;;  %v4137_v37 = vpop.eup %4136 }
 0x4ee   : > { %v5668_v16 = vmul.f32 %v4137_v37, %v7213_v49  ;;  %v4139_v43 = vpop.eup %4138  ;;  %v7219_v37 = vld [vmem:[#allocation43_spill] sm:$0xff] }
 0x4ef   : > { %v4141_v18 = vpop.eup %4140  ;;  %v1692_v49 = vmul.f32 %v5508_v23, %v7219_v37  ;;  %v7224_v37 = vld [vmem:[#allocation28_spill] sm:$0xff] }
 0x4f0   : > { %v5690_v5 = vmul.f32 %v4141_v18, %v7218_v11  ;;  %v4143_v34 = vpop.eup %4142  ;;  %v7222_v18 = vld [vmem:[#allocation70_spill] sm:$0xff] }
 0x4f1   : > { %1305 = vrot.lane.b32.xlu1 %v1262_v40, %s4403_s17  ;;  %1295 = vrot.lane.b32.xlu0 %v1257_v47, %s4403_s17  ;;  %v1263_v40 = vmul.f32 %v1215_v46, %v7214_v21  ;;  %v7220_v21 = vld [vmem:[#allocation69_spill] sm:$0xff] }
 0x4f5   : > { %1718 = vrot.lane.b32.xlu1 %v1685_v44, %s4402_s13  ;;  %1299 = vrot.lane.b32.xlu0 %v1259_v50, %s4403_s17  ;;  %v5678_v44 = vmul.f32 %v4139_v43, %v7215_v2  ;;  %v1688_v50 = vmul.f32 %v5418_v48, %v7216_v10  ;;  %v4145_v43 = vpop.eup %4144  ;;  %v7221_v10 = vld [vmem:[#allocation49_spill] sm:$0xff] }
 0x4f9   : > { %1309 = vrot.lane.b32.xlu1 %v1264_v41, %s4403_s17  ;;  %1303 = vrot.lane.b32.xlu0 %v1261_v9, %s4403_s17  ;;  %v1690_v9 = vmul.f32 %v5464_v24, %v7217_v33  ;;  %v5706_v33 = vmul.f32 %v4145_v43, %v7222_v18  ;;  %v7225_v43 = vld [vmem:[#allocation24_spill] sm:$0xff]  ;;  %v7227_v18 = vld [vmem:[#allocation29_spill] sm:$0xff] }
 0x4fb   : > { %v5652_v54 = vpop.permute.xlu0 %2295 }
 0x4fd   : > { %2323 = vrot.lane.b32.xlu1 %v5655_v35, %s4403_s17  ;;  %1716 = vrot.lane.b32.xlu0 %v1684_v39, %s4402_s13 }
 0x4ff   : > { %v5665_v51 = vpop.permute.xlu0 %2359 }
 0x501   : > { %2387 = vrot.lane.b32.xlu1 %v5668_v16, %s4403_s17  ;;  %1307 = vrot.lane.b32.xlu0 %v1263_v40, %s4403_s17  ;;  %v5698_v40 = vmul.f32 %v4143_v34, %v7220_v21 }
 0x503   : > { %v2300_v29 = vpop.permute.xlu1 %2299  ;;  %v5675_v47 = vpop.permute.xlu0 %2293 }
 0x505   : > { %2451 = vrot.lane.b32.xlu1 %v5678_v44, %s4403_s17  ;;  %1724 = vrot.lane.b32.xlu0 %v1688_v50, %s4402_s13  ;;  %v1694_v50 = vmul.f32 %v5552_v60, %v7221_v10 }
 0x507   : > { %v2364_v46 = vpop.permute.xlu1 %2363  ;;  %v5685_v41 = vpop.permute.xlu0 %2357 }
 0x509   : > { %1728 = vrot.lane.b32.xlu0 %v1690_v9, %s4402_s13  ;;  %2321 = vrot.lane.b32.xlu1 %v5690_v5, %s4403_s17  ;;  %v2472_v9 = vsel %vm1138_vm5, %v2300_v29, %v2364_v46  ;;  %v7223_v29 = vld [vmem:[#allocation55_spill] sm:$0xff] }
 0x50a   : > { %v1696_v46 = vmul.f32 %v5578_v52, %v7223_v29 }
 0x50b   : > { %v2428_v48 = vpop.permute.xlu1 %2427  ;;  %v2298_v39 = vpop.permute.xlu0 %2297 }
 0x50c   : > { %v5717_v34 = vsel %vm2485_vm6, %v2472_v9, %v2428_v48 }
 0x50d   : > { %1732 = vrot.lane.b32.xlu0 %v1692_v49, %s4402_s13  ;;  %2385 = vrot.lane.b32.xlu1 %v5698_v40, %s4403_s17  ;;  %v1686_v49 = vmul.f32 %v5372_v62, %v7224_v37  ;;  %v2119_v62 = vmul.f32 %v5375_v19, %v7227_v18  ;;  %v7229_v37 = vld [vmem:[#allocation33_spill] sm:$0xff]  ;;  %v7234_v18 = vld [vmem:[#allocation50_spill] sm:$0xff] }
 0x50f   : > { %v2362_v24 = vpop.permute.xlu1 %2361  ;;  %v2426_v2 = vpop.permute.xlu0 %2425 }
 0x510   : > { %v2471_v23 = vsel %vm1138_vm5, %v2298_v39, %v2362_v24  ;;  %v2117_v24 = vmul.f32 %v5590_v13, %v7225_v43  ;;  %v7231_v43 = vld [vmem:[#allocation39_spill] sm:$0xff] }
 0x511   : > { %v5711_v11 = vsel %vm2485_vm6, %v2471_v23, %v2426_v2  ;;  %1736 = vrot.lane.b32.xlu0 %v1694_v50, %s4402_s13  ;;  %2449 = vrot.lane.b32.xlu1 %v5706_v33, %s4403_s17  ;;  %v7226_v2 = vld [vmem:[#allocation25_spill] sm:$0xff]  ;;  %v7228_v23 = vld [vmem:[#allocation32_spill] sm:$0xff] }
 0x512   : > { %3773 = vmatprep.mubr.msk.f32.mxu1 %vm2505_vm7, %v5711_v11  ;;  %v1687_v10 = vmul.f32 %v5340_v3, %v7226_v2  ;;  %v1689_v9 = vmul.f32 %v5388_v4, %v7228_v23  ;;  %v7232_v2 = vld [vmem:[#allocation44_spill] sm:$0xff] }
 0x513   : > { %v2368_v60 = vpop.permute.xlu1 %2367  ;;  %3774 = vmatmul.mubr.msk.f32.vlgmr.msra.gmra.mrb[16].mxu1 %vm2505_vm7, %v5717_v34  ;;  %v2304_v39 = vpop.permute.xlu0 %2303 }
 0x515   : > { %1740 = vrot.lane.b32.xlu0 %v1696_v46, %s4402_s13  ;;  %1720 = vrot.lane.b32.xlu1 %v1686_v49, %s4402_s13  ;;  %v2474_v46 = vsel %vm1138_vm5, %v2304_v39, %v2368_v60  ;;  %v2121_v60 = vmul.f32 %v5421_v22, %v7229_v37  ;;  %v7230_v39 = vld [vmem:[#allocation38_spill] sm:$0xff] }
 0x516   : > { %v1691_v49 = vmul.f32 %v5434_v42, %v7230_v39  ;;  %v7237_v39 = vld [vmem:[#allocation57_spill] sm:$0xff] }
 0x517   : > { %v2432_v48 = vpop.permute.xlu1 %2431  ;;  %v2302_v21 = vpop.permute.xlu0 %2301 }
 0x518   : > { %v5747_v3 = vsel %vm2485_vm6, %v2474_v46, %v2432_v48 }
 0x519   : > { %2149 = vrot.lane.b32.xlu0 %v2117_v24, %s4404_s18  ;;  %1722 = vrot.lane.b32.xlu1 %v1687_v10, %s4402_s13  ;;  %v2123_v24 = vmul.f32 %v5467_v55, %v7231_v43  ;;  %v1693_v10 = vmul.f32 %v5480_v20, %v7232_v2  ;;  %v7240_v2 = vld [vmem:[#allocation26_spill] sm:$0xff] }
 0x51b   : > { %v2366_v52 = vpop.permute.xlu1 %2365  ;;  %v2430_v50 = vpop.permute.xlu0 %2429 }
 0x51c   : > { %v2473_v29 = vsel %vm1138_vm5, %v2302_v21, %v2366_v52 }
 0x51d   : > { %v5742_v13 = vsel %vm2485_vm6, %v2473_v29, %v2430_v50  ;;  %2153 = vrot.lane.b32.xlu0 %v2119_v62, %s4404_s18  ;;  %1726 = vrot.lane.b32.xlu1 %v1689_v9, %s4402_s13  ;;  %v7233_v50 = vld [vmem:[#allocation45_spill] sm:$0xff]  ;;  %v1695_v62 = vmul.f32 %v5524_v58, %v7234_v18  ;;  %v7235_v29 = vld [vmem:[#allocation51_spill] sm:$0xff]  ;;  %v7242_v18 = vld [vmem:[#allocation64_spill] sm:$0xff] }
 0x51e   : > { %3776 = vmatprep.mubr.msk.f32.mxu1 %vm2505_vm7, %v5742_v13  ;;  %v2125_v42 = vmul.f32 %v5511_v12, %v7233_v50  ;;  %v2127_v46 = vmul.f32 %v5555_v14, %v7235_v29  ;;  %v7241_v50 = vld [vmem:[#allocation34_spill] sm:$0xff]  ;;  %v7244_v29 = vld [vmem:[#allocation65_spill] sm:$0xff] }
 0x51f   : > { %v2372_v19 = vpop.permute.xlu1 %2371  ;;  %3777 = vmatmul.mubr.msk.f32.gmra.mrb[18].mxu1 %vm2505_vm7, %v5747_v3  ;;  %v2308_v4 = vpop.permute.xlu0 %2307 }
 0x520   : > { %v2476_v9 = vsel %vm1138_vm5, %v2308_v4, %v2372_v19  ;;  %v7236_v19 = vld [vmem:[#allocation56_spill] sm:$0xff] }
 0x521   : > { %2157 = vrot.lane.b32.xlu0 %v2121_v60, %s4404_s18  ;;  %1730 = vrot.lane.b32.xlu1 %v1691_v49, %s4402_s13  ;;  %v1697_v4 = vmul.f32 %v5563_v17, %v7236_v19  ;;  %v2129_v49 = vmul.f32 %v5581_v8, %v7237_v39 }
 0x523   : > { %v2436_v48 = vpop.permute.xlu1 %2435  ;;  %v2306_v21 = vpop.permute.xlu0 %2305 }
 0x524   : > { %v5777_v20 = vsel %vm2485_vm6, %v2476_v9, %v2436_v48  ;;  %v7238_v48 = vld [vmem:[#allocation22_spill] sm:$0xff] }
 0x525   : > { %2161 = vrot.lane.b32.xlu0 %v2123_v24, %s4404_s18  ;;  %1734 = vrot.lane.b32.xlu1 %v1693_v10, %s4402_s13  ;;  %v7239_v24 = vld [vmem:[#allocation59_spill] sm:$0xff]  ;;  %v2120_v10 = vmul.f32 %v5356_v26, %v7240_v2 }
 0x526   : > { %v1265_v17 = vmul.f32 %v5690_v5, %v7239_v24 }
 0x527   : > { %v2370_v22 = vpop.permute.xlu1 %2369  ;;  %v2434_v52 = vpop.permute.xlu0 %2433 }
 0x528   : > { %v2475_v23 = vsel %vm1138_vm5, %v2306_v21, %v2370_v22  ;;  %v2118_v21 = vmul.f32 %v5598_v25, %v7238_v48 }
 0x529   : > { %v5772_v55 = vsel %vm2485_vm6, %v2475_v23, %v2434_v52  ;;  %2165 = vrot.lane.b32.xlu0 %v2125_v42, %s4404_s18  ;;  %1738 = vrot.lane.b32.xlu1 %v1695_v62, %s4402_s13  ;;  %v2122_v42 = vmul.f32 %v5404_v63, %v7241_v50  ;;  %v1698_v62 = vmul.f32 %v5698_v40, %v7242_v18 }
 0x52a   : > { %3779 = vmatprep.mubr.msk.f32.mxu1 %vm2505_vm7, %v5772_v55 }
 0x52b   : > { %v2376_v12 = vpop.permute.xlu1 %2375  ;;  %3780 = vmatmul.mubr.msk.f32.gmra.mrb[20].mxu1 %vm2505_vm7, %v5777_v20  ;;  %v2312_v58 = vpop.permute.xlu0 %2311 }
 0x52c   : > { %v2478_v52 = vsel %vm1138_vm5, %v2312_v58, %v2376_v12  ;;  %v7243_v12 = vld [vmem:[#allocation40_spill] sm:$0xff] }
 0x52d   : > { %2169 = vrot.lane.b32.xlu0 %v2127_v46, %s4404_s18  ;;  %1742 = vrot.lane.b32.xlu1 %v1697_v4, %s4402_s13  ;;  %v2124_v58 = vmul.f32 %v5450_v7, %v7243_v12  ;;  %v2131_v46 = vmul.f32 %v5706_v33, %v7244_v29  ;;  %v7245_v4 = vld [vmem:[#allocation46_spill] sm:$0xff] }
 0x52e   : > { %v2126_v40 = vmul.f32 %v5496_v45, %v7245_v4 }
 0x52f   : > { %v2440_v37 = vpop.permute.xlu1 %2439  ;;  %v2310_v60 = vpop.permute.xlu0 %2309 }
 0x530   : > { %v5807_v25 = vsel %vm2485_vm6, %v2478_v52, %v2440_v37 }
 0x531   : > { %2173 = vrot.lane.b32.xlu0 %v2129_v49, %s4404_s18  ;;  %2151 = vrot.lane.b32.xlu1 %v2118_v21, %s4404_s18  ;;  %v7246_v49 = vld [vmem:[#allocation52_spill] sm:$0xff] }
 0x532   : > { %v2128_v48 = vmul.f32 %v5540_v57, %v7246_v49 }
 0x533   : > { %v2374_v14 = vpop.permute.xlu1 %2373  ;;  %v2438_v43 = vpop.permute.xlu0 %2437 }
 0x534   : > { %v2477_v22 = vsel %vm1138_vm5, %v2310_v60, %v2374_v14 }
 0x535   : > { %v5802_v8 = vsel %vm2485_vm6, %v2477_v22, %v2438_v43  ;;  %1311 = vrot.lane.b32.xlu0 %v1265_v17, %s4403_s17  ;;  %2155 = vrot.lane.b32.xlu1 %v2120_v10, %s4404_s18  ;;  %v7247_v43 = vld [vmem:[#allocation58_spill] sm:$0xff]  ;;  %v7248_v10 = vld [vmem:[#allocation60_spill] sm:$0xff] }
 0x536   : > { %3782 = vmatprep.mubr.msk.f32.mxu1 %vm2505_vm7, %v5802_v8  ;;  %v2130_v24 = vmul.f32 %v5571_v59, %v7247_v43  ;;  %v1266_v22 = vmul.f32 %v5655_v35, %v7248_v10  ;;  %v2469_v59 = vsel %vm1138_vm5, %v5675_v47, %v5685_v41  ;;  %v2470_v47 = vsel %vm1138_vm5, %v5652_v54, %v5665_v51 }
 0x537   : > { %v2380_v5 = vpop.permute.xlu1 %2379  ;;  %3783 = vmatmul.mubr.msk.f32.gmra.mrb[22].mxu1 %vm2505_vm7, %v5807_v25  ;;  %v2316_v26 = vpop.permute.xlu0 %2315 }
 0x538   : > { %v2480_v60 = vsel %vm1138_vm5, %v2316_v26, %v2380_v5 }
 0x539   : > { %2159 = vrot.lane.b32.xlu1 %v2122_v42, %s4404_s18  ;;  %1744 = vrot.lane.b32.xlu0 %v1698_v62, %s4402_s13  ;;  %v7249_v42 = vld [vmem:[#allocation61_spill] sm:$0xff] }
 0x53a   : > { %v1699_v18 = vmul.f32 %v5668_v16, %v7249_v42 }
 0x53b   : > { %v2444_v23 = vpop.permute.xlu1 %2443  ;;  %v2314_v9 = vpop.permute.xlu0 %2313 }
 0x53c   : > { %v5834_v7 = vsel %vm2485_vm6, %v2480_v60, %v2444_v23 }
 0x53d   : > { %2163 = vrot.lane.b32.xlu1 %v2124_v58, %s4404_s18  ;;  %2177 = vrot.lane.b32.xlu0 %v2131_v46, %s4404_s18 }
 0x53f   : > { %v2378_v63 = vpop.permute.xlu1 %2377  ;;  %v2442_v19 = vpop.permute.xlu0 %2441 }
 0x540   : > { %v2479_v37 = vsel %vm1138_vm5, %v2314_v9, %v2378_v63  ;;  %v7250_v9 = vld [vmem:[#allocation62_spill] sm:$0xff] }
 0x541   : > { %v5830_v39 = vsel %vm2485_vm6, %v2479_v37, %v2442_v19  ;;  %2167 = vrot.lane.b32.xlu1 %v2126_v40, %s4404_s18  ;;  %v2132_v12 = vmul.f32 %v5678_v44, %v7250_v9 }
 0x542   : > { %3785 = vmatprep.mubr.msk.f32.mxu1 %vm2505_vm7, %v5830_v39 }
 0x543   : > { %v2384_v33 = vpop.permute.xlu1 %2383  ;;  %3786 = vmatmul.mubr.msk.f32.gmra.mrb[24].mxu1 %vm2505_vm7, %v5834_v7  ;;  %v2320_v45 = vpop.permute.xlu0 %2319 }
 0x544   : > { %v2482_v5 = vsel %vm1138_vm5, %v2320_v45, %v2384_v33 }
 0x545   : > { %2171 = vrot.lane.b32.xlu1 %v2128_v48, %s4404_s18 }
 0x547   : > { %v2448_v21 = vpop.permute.xlu1 %2447  ;;  %v2318_v14 = vpop.permute.xlu0 %2317 }
 0x548   : > { %v5855_v26 = vsel %vm2485_vm6, %v2482_v5, %v2448_v21 }
 0x549   : > { %2175 = vrot.lane.b32.xlu1 %v2130_v24, %s4404_s18 }
 0x54b   : > { %v2382_v17 = vpop.permute.xlu1 %2381  ;;  %v2446_v2 = vpop.permute.xlu0 %2445 }
 0x54c   : > { %v2481_v52 = vsel %vm1138_vm5, %v2318_v14, %v2382_v17 }
 0x54d   : > { %v5851_v57 = vsel %vm2485_vm6, %v2481_v52, %v2446_v2  ;;  %1313 = vrot.lane.b32.xlu1 %v1266_v22, %s4403_s17 }
 0x54e   : > { %3788 = vmatprep.mubr.msk.f32.mxu1 %vm2505_vm7, %v5851_v57 }
 0x54f   : > { %v1286_v35 = vpop.permute.xlu1 %1285  ;;  %3789 = vmatmul.mubr.msk.f32.gmra.mrb[26].mxu1 %vm2505_vm7, %v5855_v26  ;;  %v2422_v50 = vpop.permute.xlu0 %2421 }
 0x550   : > { %v5867_v62 = vsel %vm2485_vm6, %v2469_v59, %v2422_v50  ;;  %v1334_v17 = vsel %vm1138_vm5, %v1286_v35, 0.0 }
 0x551   : > { %1746 = vrot.lane.b32.xlu1 %v1699_v18, %s4402_s13  ;;  %3770 = vmatprep.mubr.msk.f32.mxu0 %vm2505_vm7, %v5867_v62  ;;  %s297_s13 = sand.u32 1, %s4392_s28  }
 0x552   : > { %s6605_s17 = sshll.u32 %s297_s13, 7  ;;  %s6916_s9 = scalar_lea.sflag [#allocation3], %s297_s13 }
 0x553   : > { %v1290_v41 = vpop.permute.xlu1 %1289  ;;  %v2424_v23 = vpop.permute.xlu0 %2423 }
 0x554   : > { %v5878_v58 = vsel %vm2485_vm6, %v2470_v47, %v2424_v23 }
 0x555   : > { %2179 = vrot.lane.b32.xlu1 %v2132_v12, %s4404_s18  ;;  %3771 = vmatmul.mubr.msk.f32.vlgmr.msra.gmra.mrb[32].mxu0 %vm2505_vm7, %v5878_v58  ;;  %s6627_s18 = scalar_lea.vmem [#allocation2], %s6605_s17 }
 0x556   : > { %s3423_s20 = sshll.u32 %s6627_s18, 4  ;;  %s6909_s20 = int_to_ptr.vmem [resolvable:$true] %s3423_s20 }
 0x557   : > { %v5883_v16 = vpop.permute.xlu1 %1293  ;;  %v1284_v29 = vpop.permute.xlu0 %1283  ;;  %s4338_s24 = scalar_lea.vmem %s6909_s20, 2048 }
 0x558   : > { %v1331_v54 = vsel %vm1138_vm5, %v1284_v29, 0.0  ;;  %p4339_p11 = scmp.ne.s32.totalorder %s6909_s20, %s4338_s24 }
 0x55a   : > { %p4340_p12 = pnand %p4339_p11, %p4495_p5 }
 0x55b   : > { %v5885_v46 = vpop.permute.xlu1 %1297  ;;  %v1288_v63 = vpop.permute.xlu0 %1287 }
 0x55c   : > { %1332 = vadd.xlane.f32.xlu0 %v1331_v54  ;;  %p4341_p13 = pneg %p4340_p12 }
 0x55f   : > { %v5888_v51 = vpop.permute.xlu1 %1301  ;;  %v1292_v44 = vpop.permute.xlu0 %1291 }
 0x563   : > { %v5890_v19 = vpop.permute.xlu1 %1305  ;;  %v5892_v4 = vpop.permute.xlu0 %1295 }
 0x567   : > { %v1719_v40 = vpop.permute.xlu1 %1718  ;;  %v5894_v37 = vpop.permute.xlu0 %1299 }
 0x568   : > { %v1767_v22 = vsel %vm1138_vm5, %v1719_v40, 0.0 }
 0x56b   : > { %v5896_v60 = vpop.permute.xlu1 %1309  ;;  %v5898_v33 = vpop.permute.xlu0 %1303 }
 0x56f   : > { %v2324_v45 = vpop.permute.xlu1 %2323  ;;  %v1717_v49 = vpop.permute.xlu0 %1716 }
 0x570   : > { %v1764_v48 = vsel %vm1138_vm5, %v1717_v49, 0.0 }
 0x571   : > { %1765 = vadd.xlane.f32.xlu0 %v1764_v48 }
 0x573   : > { %v2388_v21 = vpop.permute.xlu1 %2387  ;;  %v5901_v14 = vpop.permute.xlu0 %1307 }
 0x574   : > { %v2484_v18 = vsel %vm1138_vm5, %v2324_v45, %v2388_v21  ;;  %v1340_v45 = vsel %vm1138_vm5, %v1290_v41, 0.0 }
 0x577   : > { %v2452_v43 = vpop.permute.xlu1 %2451  ;;  %v1725_v24 = vpop.permute.xlu0 %1724 }
 0x578   : > { %v5915_v35 = vsel %vm2485_vm6, %v2484_v18, %v2452_v43  ;;  %v1337_v43 = vsel %vm1138_vm5, %v1288_v63, 0.0  ;;  %v1343_v18 = vsel %vm1138_vm5, %v1292_v44, 0.0  ;;  %v1349_v44 = vsel %vm1138_vm5, %v5892_v4, 0.0 }
 0x579   : > { %1335 = vadd.xlane.f32.xlu1 %v1334_v17  ;;  %v1355_v4 = vsel %vm1138_vm5, %v5894_v37, 0.0 }
 0x57b   : > { %v2322_v2 = vpop.permute.xlu1 %2321  ;;  %v1729_v10 = vpop.permute.xlu0 %1728 }
 0x57d   : > { %1768 = vadd.xlane.f32.xlu1 %v1767_v22 }
 0x57f   : > { %v2386_v52 = vpop.permute.xlu1 %2385  ;;  %v5905_v5 = vpop.permute.xlu0 %1732 }
 0x580   : > { %v2483_v59 = vsel %vm1138_vm5, %v2322_v2, %v2386_v52 }
 0x583   : > { %v2450_v50 = vpop.permute.xlu1 %2449  ;;  %v5908_v42 = vpop.permute.xlu0 %1736 }
 0x584   : > { %v5912_v47 = vsel %vm2485_vm6, %v2483_v59, %v2450_v50 }
 0x585   : > { %3791 = vmatprep.mubr.msk.f32.mxu1 %vm2505_vm7, %v5912_v47 }
 0x586   : > { %3792 = vmatmul.mubr.msk.f32.gmra.mrb[28].mxu1 %vm2505_vm7, %v5915_v35 }
 0x587   : > { %v1721_v23 = vpop.permute.xlu1 %1720  ;;  %v5921_v9 = vpop.permute.xlu0 %1740 }
 0x588   : > { %v1770_v2 = vsel %vm1138_vm5, %v1721_v23, 0.0 }
 0x58b   : > { %v1723_v12 = vpop.permute.xlu1 %1722  ;;  %v2150_v29 = vpop.permute.xlu0 %2149 }
 0x58c   : > { %v2197_v54 = vsel %vm1138_vm5, %v2150_v29, 0.0  ;;  %v1773_v48 = vsel %vm1138_vm5, %v1723_v12, 0.0  ;;  %v1776_v29 = vsel %vm1138_vm5, %v1725_v24, 0.0 }
 0x58d   : > { %2198 = vadd.xlane.f32.xlu0 %v2197_v54  ;;  %v1346_v54 = vsel %vm1138_vm5, %v5883_v16, 0.0  ;;  %v1352_v16 = vsel %vm1138_vm5, %v5885_v46, 0.0  ;;  %v1358_v46 = vsel %vm1138_vm5, %v5888_v51, 0.0 }
 0x58f   : > { %v1727_v40 = vpop.permute.xlu1 %1726  ;;  %v2154_v22 = vpop.permute.xlu0 %2153 }
 0x590   : > { %v2203_v59 = vsel %vm1138_vm5, %v2154_v22, 0.0 }
 0x591   : > { %1341 = vadd.xlane.f32.xlu0 %v1340_v45 }
 0x593   : > { %v1731_v49 = vpop.permute.xlu1 %1730  ;;  %v2158_v23 = vpop.permute.xlu0 %2157 }
 0x594   : > { %v2209_v45 = vsel %vm1138_vm5, %v2158_v23, 0.0  ;;  %v1794_v23 = vsel %vm1138_vm5, %v5908_v42, 0.0  ;;  %v1800_v42 = vsel %vm1138_vm5, %v5921_v9, 0.0 }
 0x595   : > { %1774 = vadd.xlane.f32.xlu0 %v1773_v48  ;;  %v1779_v48 = vsel %vm1138_vm5, %v1727_v40, 0.0  ;;  %v1785_v40 = vsel %vm1138_vm5, %v1731_v49, 0.0 }
 0x597   : > { %v1735_v21 = vpop.permute.xlu1 %1734  ;;  %v2162_v22 = vpop.permute.xlu0 %2161 }
 0x598   : > { %v1791_v37 = vsel %vm1138_vm5, %v1735_v21, 0.0  ;;  %v1364_v21 = vsel %vm1138_vm5, %v5890_v19, 0.0 }
 0x599   : > { %1338 = vadd.xlane.f32.xlu0 %v1337_v43 }
 0x59b   : > { %v5927_v17 = vpop.permute.xlu1 %1738 }
 0x59d   : > { %1771 = vadd.xlane.f32.xlu0 %v1770_v2  ;;  %v1782_v2 = vsel %vm1138_vm5, %v1729_v10, 0.0 }
 0x59f   : > { %v5930_v52 = vpop.permute.xlu1 %1742 }
 0x5a1   : > { %2204 = vadd.xlane.f32.xlu0 %v2203_v59  ;;  %v2215_v59 = vsel %vm1138_vm5, %v2162_v22, 0.0 }
 0x5a3   : > { %v2152_v41 = vpop.permute.xlu1 %2151 }
 0x5a4   : > { %v2200_v50 = vsel %vm1138_vm5, %v2152_v41, 0.0 }
 0x5a5   : > { %2201 = vadd.xlane.f32.xlu1 %v2200_v50  ;;  %1344 = vadd.xlane.f32.xlu0 %v1343_v18  ;;  %v1788_v50 = vsel %vm1138_vm5, %v5905_v5, 0.0  ;;  %v2166_v18 = vpop.permute.xlu0 %2165 }
 0x5a7   : > { %v2156_v63 = vpop.permute.xlu1 %2155 }
 0x5a8   : > { %v2206_v12 = vsel %vm1138_vm5, %v2156_v63, 0.0  ;;  %v2221_v63 = vsel %vm1138_vm5, %v2166_v18, 0.0 }
 0x5a9   : > { %2207 = vadd.xlane.f32.xlu1 %v2206_v12  ;;  %1777 = vadd.xlane.f32.xlu0 %v1776_v29  ;;  %v5957_v49 = vpop.permute.xlu0 %2169  ;;  %v1361_v12 = vsel %vm1138_vm5, %v5898_v33, 0.0  ;;  %v1367_v33 = vsel %vm1138_vm5, %v5901_v14, 0.0 }
 0x5ab   : > { %v2160_v43 = vpop.permute.xlu1 %2159 }
 0x5ac   : > { %v2212_v24 = vsel %vm1138_vm5, %v2160_v43, 0.0  ;;  %v1370_v43 = vsel %vm1138_vm5, %v5896_v60, 0.0 }
 0x5ad   : > { %1347 = vadd.xlane.f32.xlu1 %v1346_v54  ;;  %2210 = vadd.xlane.f32.xlu0 %v2209_v45  ;;  %v5965_v51 = vpop.permute.xlu0 %2173 }
 0x5af   : > { %v2164_v41 = vpop.permute.xlu1 %2163 }
 0x5b0   : > { %v2218_v10 = vsel %vm1138_vm5, %v2164_v41, 0.0 }
 0x5b1   : > { %1780 = vadd.xlane.f32.xlu1 %v1779_v48  ;;  %1350 = vadd.xlane.f32.xlu0 %v1349_v44  ;;  %v1312_v45 = vpop.permute.xlu0 %1311  ;;  %v1797_v48 = vsel %vm1138_vm5, %v5927_v17, 0.0 }
 0x5b2   : > { %v1373_v19 = vsel %vm1138_vm5, %v1312_v45, 0.0 }
 0x5b3   : > { %v2168_v29 = vpop.permute.xlu1 %2167 }
 0x5b4   : > { %v2224_v5 = vsel %vm1138_vm5, %v2168_v29, 0.0 }
 0x5b5   : > { %2213 = vadd.xlane.f32.xlu1 %v2212_v24  ;;  %1783 = vadd.xlane.f32.xlu0 %v1782_v2  ;;  %v1745_v24 = vpop.permute.xlu0 %1744  ;;  %v1803_v2 = vsel %vm1138_vm5, %v5930_v52, 0.0 }
 0x5b6   : > { %v1806_v17 = vsel %vm1138_vm5, %v1745_v24, 0.0 }
 0x5b7   : > { %v5967_v54 = vpop.permute.xlu1 %2171 }
 0x5b9   : > { %1353 = vadd.xlane.f32.xlu1 %v1352_v16  ;;  %2216 = vadd.xlane.f32.xlu0 %v2215_v59  ;;  %v5991_v18 = vpop.permute.xlu0 %2177 }
 0x5bb   : > { %v5977_v44 = vpop.permute.xlu1 %2175 }
 0x5bd   : > { %1786 = vadd.xlane.f32.xlu1 %v1785_v40  ;;  %1356 = vadd.xlane.f32.xlu0 %v1355_v4 }
 0x5bf   : > { %v1314_v14 = vpop.permute.xlu1 %1313 }
 0x5c0   : > { %v1376_v9 = vsel %vm1138_vm5, %v1314_v14, 0.0 }
 0x5c1   : > { %2219 = vadd.xlane.f32.xlu1 %v2218_v10  ;;  %1789 = vadd.xlane.f32.xlu0 %v1788_v50 }
 0x5c3   : > { %v1747_v22 = vpop.permute.xlu1 %1746 }
 0x5c4   : > { %v1809_v16 = vsel %vm1138_vm5, %v1747_v22, 0.0 }
 0x5c5   : > { %1359 = vadd.xlane.f32.xlu1 %v1358_v46  ;;  %2222 = vadd.xlane.f32.xlu0 %v2221_v63 }
 0x5c9   : > { %1792 = vadd.xlane.f32.xlu1 %v1791_v37  ;;  %1362 = vadd.xlane.f32.xlu0 %v1361_v12 }
 0x5cd   : > { %2225 = vadd.xlane.f32.xlu1 %v2224_v5  ;;  %1795 = vadd.xlane.f32.xlu0 %v1794_v23 }
 0x5d1   : > { %1365 = vadd.xlane.f32.xlu1 %v1364_v21  ;;  %1368 = vadd.xlane.f32.xlu0 %v1367_v33 }
 0x5d5   : > { %1798 = vadd.xlane.f32.xlu1 %v1797_v48  ;;  %1801 = vadd.xlane.f32.xlu0 %v1800_v42  ;;  %v6005_v48 = vpop.permute.xlu1 %2179 }
 0x5d9   : > { %1371 = vadd.xlane.f32.xlu1 %v1370_v43  ;;  %1374 = vadd.xlane.f32.xlu0 %v1373_v19 }
 0x5dd   : > { %1804 = vadd.xlane.f32.xlu1 %v1803_v2  ;;  %1807 = vadd.xlane.f32.xlu0 %v1806_v17 }
 0x5e1   : > { %1377 = vadd.xlane.f32.xlu1 %v1376_v9 }
 0x5e5   : > { %1810 = vadd.xlane.f32.xlu1 %v1809_v16 }
 0x5e6   : > { %v3775_v60 = vpop.f32.mrb[16].mxu1 }
 0x5e7   : > { %v2630_v59 = vpop.f32.mrb[17].mxu1 }
 0x5e9   : > { %v5993_v46 = vpop.xlane.xlu0 %1332 }
 0x5f2   : > { %v3778_v40 = vpop.f32.mrb[18].mxu1 }
 0x5f3   : > { %v2640_v4 = vpop.f32.mrb[19].mxu1  ;;  %2719 = vrot.lane.b32.xlu0 %v2630_v59, %s4405_s25 }
 0x5f7   : > { %2723 = vrot.lane.b32.xlu0 %v2640_v4, %s4405_s25 }
 0x5fe   : > { %v3781_v52 = vpop.f32.mrb[20].mxu1  ;;  %v5995_v63 = vpop.xlane.xlu0 %1765 }
 0x5ff   : > { %v2650_v41 = vpop.f32.mrb[21].mxu1 }
 0x600   : > { %2727 = vrot.lane.b32.xlu0 %v2650_v41, %s4405_s25 }
 0x606   : > { %v6010_v19 = vpop.xlane.xlu1 %1335 }
 0x60a   : > { %v3784_v10 = vpop.f32.mrb[22].mxu1  ;;  %v6016_v14 = vpop.xlane.xlu1 %1768 }
 0x60b   : > { %v2660_v50 = vpop.f32.mrb[23].mxu1 }
 0x60c   : > { %2731 = vrot.lane.b32.xlu0 %v2660_v50, %s4405_s25 }
 0x616   : > { %v3787_v37 = vpop.f32.mrb[24].mxu1 }
 0x617   : > { %v2670_v12 = vpop.f32.mrb[25].mxu1 }
 0x618   : > { %2735 = vrot.lane.b32.xlu0 %v2670_v12, %s4405_s25 }
 0x61a   : > { %v5998_v29 = vpop.xlane.xlu0 %2198 }
 0x61e   : > { %v6000_v5 = vpop.xlane.xlu0 %1341 }
 0x61f   : > { %7251 = vst [vmem:[#allocation35_spill] sm:$0xff] %v6000_v5 }
 0x622   : > { %v3790_v23 = vpop.f32.mrb[26].mxu1  ;;  %v6003_v33 = vpop.xlane.xlu0 %1774 }
 0x623   : > { %v2680_v21 = vpop.f32.mrb[27].mxu1 }
 0x624   : > { %2739 = vrot.lane.b32.xlu0 %v2680_v21, %s4405_s25 }
 0x626   : > { %v6008_v43 = vpop.xlane.xlu0 %1338 }
 0x627   : > { %7252 = vst [vmem:[#allocation21_spill] sm:$0xff] %v6008_v43 }
 0x628   : > { %v3772_v45 = vpop.f32.mrb[32].mxu0 }
 0x629   : > { %2717 = vrot.lane.b32.xlu1 %v3772_v45, %s4405_s25  ;;  %v2620_v42 = vpop.f32.mrb[33].mxu0 }
 0x62a   : > { %v6013_v24 = vpop.xlane.xlu0 %1771 }
 0x62b   : > { %7253 = vst [vmem:[#allocation41_spill] sm:$0xff] %v6013_v24 }
 0x62d   : > { %2715 = vrot.lane.b32.xlu1 %v2620_v42, %s4405_s25 }
 0x62e   : > { %v6019_v2 = vpop.xlane.xlu0 %2204 }
 0x62f   : > { %7254 = vst [vmem:[#allocation54_spill] sm:$0xff] %v6019_v2 }
 0x631   : > { %2721 = vrot.lane.b32.xlu1 %v3775_v60, %s4405_s25 }
 0x632   : > { %v6021_v17 = vpop.xlane.xlu1 %2201  ;;  %v6024_v9 = vpop.xlane.xlu0 %1344 }
 0x633   : > { %7255 = vst [vmem:[#allocation47_spill] sm:$0xff] %v6024_v9 }
 0x635   : > { %2725 = vrot.lane.b32.xlu1 %v3778_v40, %s4405_s25 }
 0x636   : > { %v6026_v22 = vpop.xlane.xlu1 %2207  ;;  %v6030_v16 = vpop.xlane.xlu0 %1777 }
 0x637   : > { %7256 = vst [vmem:[#allocation66_spill] sm:$0xff] %v6026_v22  ;;  %7257 = vst [vmem:[#allocation23_spill] sm:$0xff] %v6030_v16 }
 0x639   : > { %2729 = vrot.lane.b32.xlu1 %v3781_v52, %s4405_s25 }
 0x63a   : > { %v6032_v60 = vpop.xlane.xlu1 %1347  ;;  %v6035_v59 = vpop.xlane.xlu0 %2210 }
 0x63b   : > { %7258 = vst [vmem:[#allocation67_spill] sm:$0xff] %v6032_v60  ;;  %7259 = vst [vmem:[#allocation53_spill] sm:$0xff] %v6035_v59  ;;  %v7296_v59 = vld [vmem:[#allocation13_spill] sm:$0xff] }
 0x63d   : > { %2733 = vrot.lane.b32.xlu1 %v3784_v10, %s4405_s25 }
 0x63e   : > { %v6037_v40 = vpop.xlane.xlu1 %1780  ;;  %v6039_v4 = vpop.xlane.xlu0 %1350 }
 0x63f   : > { %7260 = vst [vmem:[#allocation68_spill] sm:$0xff] %v6037_v40  ;;  %7261 = vst [vmem:[#allocation31_spill] sm:$0xff] %v6039_v4  ;;  %v7294_v40 = vld [vmem:[#allocation10_spill] sm:$0xff] }
 0x641   : > { %2737 = vrot.lane.b32.xlu1 %v3787_v37, %s4405_s25 }
 0x642   : > { %v6041_v52 = vpop.xlane.xlu1 %2213  ;;  %v6043_v41 = vpop.xlane.xlu0 %1783 }
 0x643   : > { %7262 = vst [vmem:[#allocation37_spill] sm:$0xff] %v6041_v52  ;;  %7263 = vst [vmem:[#allocation63_spill] sm:$0xff] %v6043_v41 }
 0x645   : > { %2741 = vrot.lane.b32.xlu1 %v3790_v23, %s4405_s25 }
 0x646   : > { %v6045_v50 = vpop.xlane.xlu1 %1353  ;;  %v6048_v12 = vpop.xlane.xlu0 %2216 }
 0x647   : > { %7264 = vst [vmem:[#allocation43_spill] sm:$0xff] %v6045_v50  ;;  %7265 = vst [vmem:[#allocation69_spill] sm:$0xff] %v6048_v12 }
 0x64a   : > { %v6050_v21 = vpop.xlane.xlu1 %1786  ;;  %v6053_v23 = vpop.xlane.xlu0 %1356 }
 0x64b   : > { %7266 = vst [vmem:[#allocation49_spill] sm:$0xff] %v6050_v21  ;;  %7267 = vst [vmem:[#allocation70_spill] sm:$0xff] %v6053_v23  ;;  %v7289_v23 = vld [vmem:[#allocation7_spill] sm:$0xff] }
 0x64e   : > { %v6055_v45 = vpop.xlane.xlu1 %2219  ;;  %v6057_v42 = vpop.xlane.xlu0 %1789 }
 0x64f   : > { %7268 = vst [vmem:[#allocation55_spill] sm:$0xff] %v6055_v45  ;;  %7269 = vst [vmem:[#allocation28_spill] sm:$0xff] %v6057_v42  ;;  %v2230_v45 = vsel %vm1138_vm5, %v5967_v54, 0.0  ;;  %v7290_v42 = vld [vmem:[#allocation8_spill] sm:$0xff] }
 0x652   : > { %v6059_v6 = vpop.xlane.xlu1 %1359  ;;  %v6061_v15 = vpop.xlane.xlu0 %2222 }
 0x653   : > { %7270 = vst [vmem:[#allocation24_spill] sm:$0xff] %v6059_v6  ;;  %7271 = vst [vmem:[#allocation25_spill] sm:$0xff] %v6061_v15  ;;  %v2233_v6 = vsel %vm1138_vm5, %v5965_v51, 0.0 }
 0x656   : > { %v6063_v56 = vpop.xlane.xlu1 %1792  ;;  %v6065_v53 = vpop.xlane.xlu0 %1362 }
 0x657   : > { %7272 = vst [vmem:[#allocation29_spill] sm:$0xff] %v6063_v56  ;;  %7273 = vst [vmem:[#allocation32_spill] sm:$0xff] %v6065_v53 }
 0x659   : > { %v3793_v10 = vpop.f32.mrb[28].mxu1 }
 0x65a   : > { %v2690_v37 = vpop.f32.mrb[29].mxu1  ;;  %2745 = vrot.lane.b32.xlu1 %v3793_v10, %s4405_s25  ;;  %v6067_v10 = vpop.xlane.xlu1 %2225 }
 0x65b   : > { %2743 = vrot.lane.b32.xlu0 %v2690_v37, %s4405_s25  ;;  %7274 = vst [vmem:[#allocation33_spill] sm:$0xff] %v6067_v10  ;;  %v6069_v38 = vpop.xlane.xlu0 %1795  ;;  %v2227_v37 = vsel %vm1138_vm5, %v5957_v49, 0.0  ;;  %s4409_s25 = smov [#allocation2]  }
 0x65c   : > { %7275 = vst [vmem:[#allocation38_spill] sm:$0xff] %v6069_v38  ;;  %v2236_v38 = vsel %vm1138_vm5, %v5977_v44, 0.0 }
 0x65e   : > { %v6071_v61 = vpop.xlane.xlu1 %1365 }
 0x65f   : > { %7276 = vst [vmem:[#allocation39_spill] sm:$0xff] %v6071_v61  ;;  %v6079_v56 = vpop.xlane.xlu0 %1368 }
 0x660   : > { %7277 = vst [vmem:[#allocation44_spill] sm:$0xff] %v6079_v56 }
 0x662   : > { %v6081_v53 = vpop.xlane.xlu1 %1798 }
 0x663   : > { %7278 = vst [vmem:[#allocation45_spill] sm:$0xff] %v6081_v53  ;;  %v6085_v61 = vpop.xlane.xlu0 %1801  ;;  %v7286_v53 = vld [vmem:[#allocation5_spill] sm:$0xff] }
 0x664   : > { %7279 = vst [vmem:[#allocation50_spill] sm:$0xff] %v6085_v61 }
 0x666   : > { %v6087_v49 = vpop.xlane.xlu1 %1371 }
 0x667   : > { %7280 = vst [vmem:[#allocation51_spill] sm:$0xff] %v6087_v49 }
 0x66a   : > { %v6091_v54 = vpop.xlane.xlu1 %1804 }
 0x66b   : > { %7282 = vst [vmem:[#allocation57_spill] sm:$0xff] %v6091_v54 }
 0x66e   : > { %v6095_v51 = vpop.xlane.xlu1 %1377 }
 0x66f   : > { %7284 = vst [vmem:[#allocation59_spill] sm:$0xff] %v6095_v51 }
 0x67a   : > { %2228 = vadd.xlane.f32.xlu0 %v2227_v37  ;;  %v6089_v37 = vpop.xlane.xlu0 %1374 }
 0x67b   : > { %7281 = vst [vmem:[#allocation56_spill] sm:$0xff] %v6089_v37  ;;  %v7287_v37 = vld [vmem:[#allocation6_spill] sm:$0xff] }
 0x67e   : > { %2231 = vadd.xlane.f32.xlu1 %v2230_v45  ;;  %2234 = vadd.xlane.f32.xlu0 %v2233_v6  ;;  %v6093_v10 = vpop.xlane.xlu0 %1807  ;;  %v6097_v45 = vpop.xlane.xlu1 %1810 }
 0x67f   : > { %7283 = vst [vmem:[#allocation22_spill] sm:$0xff] %v6093_v10  ;;  %7285 = vst [vmem:[#allocation26_spill] sm:$0xff] %v6097_v45  ;;  %v7288_v10 = vld [vmem:[#allocation11_spill] sm:$0xff] }
 0x682   : > { %2237 = vadd.xlane.f32.xlu1 %v2236_v38  ;;  %v2720_v6 = vpop.permute.xlu0 %2719 }
 0x683   : > { %v6116_v21 = vadd.f32 %v2720_v6, %v7290_v42 }
 0x685   : > { %v2786_v6 = vsel %vm2779_vm8, %v6116_v21, -inf }
 0x686   : > { %v2724_v38 = vpop.permute.xlu0 %2723 }
 0x687   : > { %v6108_v61 = vadd.f32 %v2724_v38, %v7288_v10 }
 0x689   : > { %v2792_v38 = vsel %vm2779_vm8, %v6108_v61, -inf }
 0x68a   : > { %v2728_v45 = vpop.permute.xlu0 %2727 }
 0x68e   : > { %v2732_v12 = vpop.permute.xlu0 %2731 }
 0x69b   : > { %v2718_v56 = vpop.permute.xlu1 %2717 }
 0x69c   : > { %v6100_v15 = vadd.f32 %v2718_v56, %v7286_v53 }
 0x69e   : > { %v2783_v44 = vsel %vm2779_vm8, %v6100_v15, -inf }
 0x69f   : > { %v2716_v49 = vpop.permute.xlu1 %2715  ;;  %2784 = vmax.xlane.f32.xlu0 %v2783_v44  ;;  %v6119_v44 = vadd.f32 %v2728_v45, %v7291_v36  ;;  %v2736_v36 = vpop.permute.xlu0 %2735 }
 0x6a0   : > { %v6105_v54 = vadd.f32 %v2716_v49, %v7287_v37  ;;  %v6136_v10 = vadd.f32 %v2736_v36, %v7294_v40 }
 0x6a1   : > { %v2798_v45 = vsel %vm2779_vm8, %v6119_v44, -inf }
 0x6a2   : > { %v2780_v51 = vsel %vm2779_vm8, %v6105_v54, -inf }
 0x6a3   : > { %2781 = vmax.xlane.f32.xlu1 %v2780_v51  ;;  %v2722_v56 = vpop.permute.xlu1 %2721  ;;  %v7292_v51 = vld [vmem:[#allocation19_spill] sm:$0xff] }
 0x6a4   : > { %v6113_v50 = vadd.f32 %v2722_v56, %v7289_v23  ;;  %v6126_v4 = vadd.f32 %v2732_v12, %v7292_v51  ;;  %v7293_v56 = vld [vmem:[#allocation9_spill] sm:$0xff]  ;;  %v2740_v51 = vpop.permute.xlu0 %2739 }
 0x6a5   : > { %v6146_v9 = vadd.f32 %v2740_v51, %v7296_v59 }
 0x6a6   : > { %v2789_v49 = vsel %vm2779_vm8, %v6113_v50, -inf  ;;  %v2804_v12 = vsel %vm2779_vm8, %v6126_v4, -inf }
 0x6a7   : > { %v2726_v52 = vpop.permute.xlu1 %2725  ;;  %2790 = vmax.xlane.f32.xlu0 %v2789_v49  ;;  %2793 = vmax.xlane.f32.xlu1 %v2792_v38  ;;  %v7295_v49 = vld [vmem:[#allocation14_spill] sm:$0xff]  ;;  %v2816_v51 = vsel %vm2779_vm8, %v6146_v9, -inf }
 0x6a8   : > { %v6129_v60 = vadd.f32 %v2726_v52, %v7293_v56 }
 0x6aa   : > { %v2795_v52 = vsel %vm2779_vm8, %v6129_v60, -inf }
 0x6ab   : > { %v2730_v41 = vpop.permute.xlu1 %2729  ;;  %2787 = vmax.xlane.f32.xlu0 %v2786_v6  ;;  %2799 = vmax.xlane.f32.xlu1 %v2798_v45  ;;  %v7297_v6 = vld [vmem:[#allocation18_spill] sm:$0xff] }
 0x6ac   : > { %v6139_v38 = vadd.f32 %v2730_v41, %v7295_v49  ;;  %v2810_v41 = vsel %vm2779_vm8, %v6136_v10, -inf  ;;  %v7298_v49 = vld [vmem:[#allocation20_spill] sm:$0xff] }
 0x6ae   : > { %v2801_v36 = vsel %vm2779_vm8, %v6139_v38, -inf }
 0x6af   : > { %v2734_v56 = vpop.permute.xlu1 %2733  ;;  %2796 = vmax.xlane.f32.xlu0 %v2795_v52  ;;  %2805 = vmax.xlane.f32.xlu1 %v2804_v12  ;;  %v7299_v12 = vld [vmem:[#allocation12_spill] sm:$0xff] }
 0x6b0   : > { %v6149_v45 = vadd.f32 %v2734_v56, %v7297_v6 }
 0x6b2   : > { %v2807_v52 = vsel %vm2779_vm8, %v6149_v45, -inf }
 0x6b3   : > { %v2738_v40 = vpop.permute.xlu1 %2737  ;;  %2802 = vmax.xlane.f32.xlu0 %v2801_v36  ;;  %2811 = vmax.xlane.f32.xlu1 %v2810_v41  ;;  %v2242_v36 = vsel %vm1138_vm5, %v6005_v48, 0.0  ;;  %v2239_v48 = vsel %vm1138_vm5, %v5991_v18, 0.0 }
 0x6b4   : > { %v6156_v42 = vadd.f32 %v2738_v40, %v7298_v49 }
 0x6b6   : > { %v2813_v6 = vsel %vm2779_vm8, %v6156_v42, -inf }
 0x6b7   : > { %v2742_v56 = vpop.permute.xlu1 %2741  ;;  %2808 = vmax.xlane.f32.xlu0 %v2807_v52  ;;  %2817 = vmax.xlane.f32.xlu1 %v2816_v51  ;;  %v7300_v52 = vld [vmem:[#allocation15_spill] sm:$0xff] }
 0x6b8   : > { %v6163_v59 = vadd.f32 %v2742_v56, %v7299_v12 }
 0x6ba   : > { %v2819_v40 = vsel %vm2779_vm8, %v6163_v59, -inf }
 0x6bb   : > { %2814 = vmax.xlane.f32.xlu0 %v2813_v6  ;;  %2243 = vadd.xlane.f32.xlu1 %v2242_v36 }
 0x6bf   : > { %2820 = vmax.xlane.f32.xlu0 %v2819_v40 }
 0x6cc   : > { %v2746_v41 = vpop.permute.xlu1 %2745  ;;  %3262 = vrot.lane.b32.xlu1 %v5878_v58, %s4406_s26  ;;  %v7301_v58 = vld [vmem:[#allocation16_spill] sm:$0xff] }
 0x6cd   : > { %v6174_v51 = vadd.f32 %v2746_v41, %v7300_v52  ;;  %v2744_v6 = vpop.permute.xlu0 %2743 }
 0x6ce   : > { %v6187_v36 = vadd.f32 %v2744_v6, %v7301_v58 }
 0x6cf   : > { %v2825_v56 = vsel %vm2779_vm8, %v6174_v51, -inf }
 0x6d0   : > { %2826 = vmax.xlane.f32.xlu0 %v2825_v56  ;;  %3266 = vrot.lane.b32.xlu1 %v5717_v34, %s4406_s26  ;;  %v2822_v34 = vsel %vm2779_vm8, %v6187_v36, -inf }
 0x6d4   : > { %2240 = vadd.xlane.f32.xlu0 %v2239_v48 }
 0x6ea   : > { %3260 = vrot.lane.b32.xlu0 %v5867_v62, %s4406_s26 }
 0x6ee   : > { %3264 = vrot.lane.b32.xlu0 %v5711_v11, %s4406_s26 }
 0x6f2   : > { %3268 = vrot.lane.b32.xlu0 %v5742_v13, %s4406_s26 }
 0x6f4   : > { %2823 = vmax.xlane.f32.xlu1 %v2822_v34 }
 0x6f6   : > { %3272 = vrot.lane.b32.xlu0 %v5772_v55, %s4406_s26 }
 0x6fa   : > { %3276 = vrot.lane.b32.xlu0 %v5802_v8, %s4406_s26 }
 0x6fe   : > { %3280 = vrot.lane.b32.xlu0 %v5830_v39, %s4406_s26 }
 0x702   : > { %3284 = vrot.lane.b32.xlu0 %v5851_v57, %s4406_s26 }
 0x705   : > { %3270 = vrot.lane.b32.xlu1 %v5747_v3, %s4406_s26 }
 0x707   : > { %v6211_v11 = vpop.xlane.xlu0 %2228 }
 0x708   : > { %7302 = vst [vmem:[#allocation34_spill] sm:$0xff] %v6211_v11 }
 0x709   : > { %3274 = vrot.lane.b32.xlu1 %v5777_v20, %s4406_s26 }
 0x70b   : > { %v6213_v13 = vpop.xlane.xlu1 %2231  ;;  %v6215_v55 = vpop.xlane.xlu0 %2234 }
 0x70c   : > { %7303 = vst [vmem:[#allocation64_spill] sm:$0xff] %v6213_v13  ;;  %7304 = vst [vmem:[#allocation40_spill] sm:$0xff] %v6215_v55 }
 0x70d   : > { %3278 = vrot.lane.b32.xlu1 %v5807_v25, %s4406_s26 }
 0x70f   : > { %v6217_v8 = vpop.xlane.xlu1 %2237 }
 0x710   : > { %7305 = vst [vmem:[#allocation65_spill] sm:$0xff] %v6217_v8 }
 0x711   : > { %3282 = vrot.lane.b32.xlu1 %v5834_v7, %s4406_s26 }
 0x715   : > { %3286 = vrot.lane.b32.xlu1 %v5855_v26, %s4406_s26 }
 0x72c   : > { %v2785_v3 = vpop.xlane.xlu0 %2784 }
 0x72d   : > { %v6220_v20 = vsub.f32 %v6100_v15, %v2785_v3 }
 0x72f   : > { %v2846_v25 = vmul.f32 1.442695, %v6220_v20 }
 0x730   : > { %v2782_v39 = vpop.xlane.xlu1 %2781 }
 0x731   : > { %4146 = vpow2.f32 %v2846_v25  ;;  %v6224_v7 = vsub.f32 %v6105_v54, %v2782_v39 }
 0x733   : > { %v2844_v57 = vmul.f32 1.442695, %v6224_v7 }
 0x734   : > { %v2794_v26 = vpop.xlane.xlu1 %2793  ;;  %v2791_v62 = vpop.xlane.xlu0 %2790 }
 0x735   : > { %4148 = vpow2.f32 %v2844_v57  ;;  %v6228_v18 = vsub.f32 %v6108_v61, %v2794_v26  ;;  %v6231_v40 = vsub.f32 %v6113_v50, %v2791_v62 }
 0x737   : > { %v2852_v15 = vmul.f32 1.442695, %v6228_v18  ;;  %v2850_v41 = vmul.f32 1.442695, %v6231_v40 }
 0x738   : > { %v2800_v56 = vpop.xlane.xlu1 %2799  ;;  %v2788_v48 = vpop.xlane.xlu0 %2787 }
 0x739   : > { %4150 = vpow2.f32 %v2852_v15  ;;  %v6236_v54 = vsub.f32 %v6119_v44, %v2800_v56  ;;  %v6239_v6 = vsub.f32 %v6116_v21, %v2788_v48 }
 0x73a   : > { %4152 = vpow2.f32 %v2850_v41 }
 0x73b   : > { %v6241_v34 = vpop.eup %4146  ;;  %v2856_v61 = vmul.f32 1.442695, %v6236_v54  ;;  %v2848_v50 = vmul.f32 1.442695, %v6239_v6 }
 0x73c   : > { %v2806_v3 = vpop.xlane.xlu1 %2805  ;;  %2894 = vrot.lane.b32.xlu1 %v6241_v34, %s4407_s10  ;;  %v2797_v25 = vpop.xlane.xlu0 %2796 }
 0x73d   : > { %4154 = vpow2.f32 %v2856_v61  ;;  %v6248_v44 = vsub.f32 %v6126_v4, %v2806_v3  ;;  %v6251_v21 = vsub.f32 %v6129_v60, %v2797_v25 }
 0x73e   : > { %4156 = vpow2.f32 %v2848_v50 }
 0x73f   : > { %v6253_v39 = vpop.eup %4148  ;;  %v2860_v57 = vmul.f32 1.442695, %v6248_v44  ;;  %v2854_v26 = vmul.f32 1.442695, %v6251_v21 }
 0x740   : > { %2892 = vrot.lane.b32.xlu0 %v6253_v39, %s4407_s10  ;;  %v2812_v62 = vpop.xlane.xlu1 %2811  ;;  %v2803_v15 = vpop.xlane.xlu0 %2802 }
 0x741   : > { %4158 = vpow2.f32 %v2860_v57  ;;  %v6260_v41 = vsub.f32 %v6136_v10, %v2812_v62  ;;  %v6263_v4 = vsub.f32 %v6139_v38, %v2803_v15 }
 0x742   : > { %4160 = vpow2.f32 %v2854_v26 }
 0x743   : > { %v6265_v60 = vpop.eup %4150  ;;  %v2864_v56 = vmul.f32 1.442695, %v6260_v41  ;;  %v2858_v48 = vmul.f32 1.442695, %v6263_v4 }
 0x744   : > { %v6269_v61 = vpop.eup %4152  ;;  %2900 = vrot.lane.b32.xlu0 %v6265_v60, %s4407_s10  ;;  %v2818_v50 = vpop.xlane.xlu1 %2817 }
 0x745   : > { %v2809_v3 = vpop.xlane.xlu0 %2808  ;;  %4162 = vpow2.f32 %v2864_v56  ;;  %v6274_v10 = vsub.f32 %v6146_v9, %v2818_v50  ;;  %2898 = vrot.lane.b32.xlu1 %v6269_v61, %s4407_s10 }
 0x746   : > { %v6279_v38 = vsub.f32 %v6149_v45, %v2809_v3  ;;  %4164 = vpow2.f32 %v2858_v48 }
 0x747   : > { %v6281_v25 = vpop.eup %4154  ;;  %v2868_v57 = vmul.f32 1.442695, %v6274_v10 }
 0x748   : > { %v2862_v26 = vmul.f32 1.442695, %v6279_v38  ;;  %v6285_v62 = vpop.eup %4156  ;;  %2904 = vrot.lane.b32.xlu0 %v6281_v25, %s4407_s10  ;;  %v6339_v8 = vpop.xlane.xlu1 %2243 }
 0x749   : > { %v2815_v9 = vpop.xlane.xlu0 %2814  ;;  %4166 = vpow2.f32 %v2868_v57  ;;  %2896 = vrot.lane.b32.xlu1 %v6285_v62, %s4407_s10  ;;  %7306 = vst [vmem:[#allocation46_spill] sm:$0xff] %v6339_v8 }
 0x74a   : > { %v6292_v45 = vsub.f32 %v6156_v42, %v2815_v9  ;;  %4168 = vpow2.f32 %v2862_v26 }
 0x74b   : > { %v6294_v15 = vpop.eup %4158 }
 0x74c   : > { %v2866_v56 = vmul.f32 1.442695, %v6292_v45  ;;  %v6297_v48 = vpop.eup %4160  ;;  %2908 = vrot.lane.b32.xlu0 %v6294_v15, %s4407_s10  ;;  %v6341_v55 = vpop.permute.xlu1 %3262 }
 0x74d   : > { %v2821_v50 = vpop.xlane.xlu0 %2820  ;;  %2902 = vrot.lane.b32.xlu1 %v6297_v48, %s4407_s10 }
 0x74e   : > { %4170 = vpow2.f32 %v2866_v56  ;;  %v6304_v3 = vsub.f32 %v6163_v59, %v2821_v50 }
 0x74f   : > { %v6306_v42 = vpop.eup %4162 }
 0x750   : > { %v2870_v57 = vmul.f32 1.442695, %v6304_v3  ;;  %v6309_v26 = vpop.eup %4164  ;;  %2912 = vrot.lane.b32.xlu0 %v6306_v42, %s4407_s10  ;;  %v6343_v49 = vpop.permute.xlu1 %3266 }
 0x751   : > { %2906 = vrot.lane.b32.xlu1 %v6309_v26, %s4407_s10  ;;  %7307 = vst [vmem:[#allocation52_spill] sm:$0xff] %v6343_v49 }
 0x752   : > { %4172 = vpow2.f32 %v2870_v57 }
 0x753   : > { %v6315_v9 = vpop.eup %4166 }
 0x754   : > { %v6317_v56 = vpop.eup %4168  ;;  %2916 = vrot.lane.b32.xlu0 %v6315_v9, %s4407_s10 }
 0x755   : > { %2910 = vrot.lane.b32.xlu1 %v6317_v56, %s4407_s10 }
 0x758   : > { %v6323_v59 = vpop.eup %4170 }
 0x759   : > { %2914 = vrot.lane.b32.xlu1 %v6323_v59, %s4407_s10 }
 0x75c   : > { %v6327_v50 = vpop.eup %4172 }
 0x75d   : > { %2918 = vrot.lane.b32.xlu1 %v6327_v50, %s4407_s10  ;;  %v2827_v57 = vpop.xlane.xlu0 %2826 }
 0x75e   : > { %v6332_v58 = vsub.f32 %v6174_v51, %v2827_v57 }
 0x760   : > { %v2874_v52 = vmul.f32 1.442695, %v6332_v58 }
 0x761   : > { %v6348_v51 = vpop.xlane.xlu0 %2240 }
 0x762   : > { %4174 = vpow2.f32 %v2874_v52  ;;  %7308 = vst [vmem:[#allocation58_spill] sm:$0xff] %v6348_v51 }
 0x765   : > { %v6351_v52 = vpop.permute.xlu0 %3260 }
 0x769   : > { %v6355_v2 = vpop.permute.xlu0 %3264 }
 0x76a   : > { %7309 = vst [vmem:[#allocation60_spill] sm:$0xff] %v6355_v2 }
 0x76c   : > { %v6335_v12 = vpop.eup %4174 }
 0x76d   : > { %2922 = vrot.lane.b32.xlu1 %v6335_v12, %s4407_s10  ;;  %v6361_v49 = vpop.permute.xlu0 %3268 }
 0x76e   : > { %7311 = vst [vmem:[#allocation62_spill] sm:$0xff] %v6361_v49 }
 0x781   : > { %v2824_v13 = vpop.xlane.xlu1 %2823 }
 0x782   : > { %v6346_v11 = vsub.f32 %v6187_v36, %v2824_v13  ;;  %v6365_v13 = vpop.permute.xlu0 %3272 }
 0x783   : > { %7313 = vst [vmem:[#allocation6_spill] sm:$0xff] %v6365_v13 }
 0x784   : > { %v2872_v57 = vmul.f32 1.442695, %v6346_v11 }
 0x785   : > { %v6359_v8 = vpop.permute.xlu1 %3270 }
 0x786   : > { %4176 = vpow2.f32 %v2872_v57  ;;  %7310 = vst [vmem:[#allocation61_spill] sm:$0xff] %v6359_v8  ;;  %v6369_v57 = vpop.permute.xlu0 %3276 }
 0x787   : > { %7315 = vst [vmem:[#allocation109_spill] sm:$0xff] %v6369_v57 }
 0x789   : > { %v6363_v36 = vpop.permute.xlu1 %3274 }
 0x78a   : > { %7312 = vst [vmem:[#allocation5_spill] sm:$0xff] %v6363_v36  ;;  %v6373_v24 = vpop.permute.xlu0 %3280 }
 0x78b   : > { %7317 = vst [vmem:[#allocation111_spill] sm:$0xff] %v6373_v24 }
 0x78d   : > { %v6367_v51 = vpop.permute.xlu1 %3278 }
 0x78e   : > { %7314 = vst [vmem:[#allocation108_spill] sm:$0xff] %v6367_v51  ;;  %v6377_v23 = vpop.permute.xlu0 %3284 }
 0x78f   : > { %7319 = vst [vmem:[#allocation113_spill] sm:$0xff] %v6377_v23 }
 0x790   : > { %v6353_v16 = vpop.eup %4176 }
 0x791   : > { %2920 = vrot.lane.b32.xlu0 %v6353_v16, %s4407_s10  ;;  %v6371_v43 = vpop.permute.xlu1 %3282 }
 0x792   : > { %7316 = vst [vmem:[#allocation110_spill] sm:$0xff] %v6371_v43 }
 0x795   : > { %v6375_v2 = vpop.permute.xlu1 %3286 }
 0x796   : > { %7318 = vst [vmem:[#allocation112_spill] sm:$0xff] %v6375_v2 }
 0x7ae   : > { %v2895_v22 = vpop.permute.xlu1 %2894 }
 0x7af   : > { %v2943_v8 = vsel %vm1138_vm5, %v2895_v22, 0.0 }
 0x7b0   : > { %2944 = vadd.xlane.f32.xlu1 %v2943_v8 }
 0x7b2   : > { %v2893_v49 = vpop.permute.xlu0 %2892 }
 0x7b3   : > { %v2940_v36 = vsel %vm1138_vm5, %v2893_v49, 0.0 }
 0x7b4   : > { %2941 = vadd.xlane.f32.xlu0 %v2940_v36 }
 0x7b6   : > { %v2901_v13 = vpop.permute.xlu0 %2900 }
 0x7b7   : > { %v2899_v51 = vpop.permute.xlu1 %2898  ;;  %v2952_v23 = vsel %vm1138_vm5, %v2901_v13, 0.0 }
 0x7b8   : > { %v2949_v57 = vsel %vm1138_vm5, %v2899_v51, 0.0 }
 0x7b9   : > { %2950 = vadd.xlane.f32.xlu0 %v2949_v57 }
 0x7ba   : > { %v2905_v5 = vpop.permute.xlu0 %2904 }
 0x7bb   : > { %v2897_v43 = vpop.permute.xlu1 %2896  ;;  %v2958_v36 = vsel %vm1138_vm5, %v2905_v5, 0.0 }
 0x7bc   : > { %v2946_v24 = vsel %vm1138_vm5, %v2897_v43, 0.0 }
 0x7bd   : > { %2947 = vadd.xlane.f32.xlu0 %v2946_v24 }
 0x7be   : > { %v2909_v8 = vpop.permute.xlu0 %2908 }
 0x7bf   : > { %v2903_v2 = vpop.permute.xlu1 %2902  ;;  %v2964_v43 = vsel %vm1138_vm5, %v2909_v8, 0.0 }
 0x7c0   : > { %v2955_v22 = vsel %vm1138_vm5, %v2903_v2, 0.0 }
 0x7c1   : > { %2956 = vadd.xlane.f32.xlu1 %v2955_v22  ;;  %2953 = vadd.xlane.f32.xlu0 %v2952_v23 }
 0x7c2   : > { %v2913_v51 = vpop.permute.xlu0 %2912 }
 0x7c3   : > { %v2907_v49 = vpop.permute.xlu1 %2906  ;;  %v2970_v2 = vsel %vm1138_vm5, %v2913_v51, 0.0 }
 0x7c4   : > { %v2961_v28 = vsel %vm1138_vm5, %v2907_v49, 0.0 }
 0x7c5   : > { %2962 = vadd.xlane.f32.xlu1 %v2961_v28  ;;  %2959 = vadd.xlane.f32.xlu0 %v2958_v36 }
 0x7c6   : > { %v2917_v22 = vpop.permute.xlu0 %2916 }
 0x7c7   : > { %v2911_v57 = vpop.permute.xlu1 %2910  ;;  %v2976_v28 = vsel %vm1138_vm5, %v2917_v22, 0.0 }
 0x7c8   : > { %v2967_v24 = vsel %vm1138_vm5, %v2911_v57, 0.0 }
 0x7c9   : > { %2968 = vadd.xlane.f32.xlu1 %v2967_v24  ;;  %2965 = vadd.xlane.f32.xlu0 %v2964_v43 }
 0x7cb   : > { %v2915_v13 = vpop.permute.xlu1 %2914 }
 0x7cc   : > { %v2973_v23 = vsel %vm1138_vm5, %v2915_v13, 0.0 }
 0x7cd   : > { %2974 = vadd.xlane.f32.xlu1 %v2973_v23  ;;  %2971 = vadd.xlane.f32.xlu0 %v2970_v2 }
 0x7cf   : > { %v2919_v5 = vpop.permute.xlu1 %2918 }
 0x7d0   : > { %v2979_v49 = vsel %vm1138_vm5, %v2919_v5, 0.0 }
 0x7d1   : > { %2980 = vadd.xlane.f32.xlu1 %v2979_v49  ;;  %2977 = vadd.xlane.f32.xlu0 %v2976_v28 }
 0x7df   : > { %v2923_v8 = vpop.permute.xlu1 %2922 }
 0x7e0   : > { %v2985_v36 = vsel %vm1138_vm5, %v2923_v8, 0.0 }
 0x7e1   : > { %2986 = vadd.xlane.f32.xlu1 %v2985_v36 }
 0x803   : > { %v2921_v57 = vpop.permute.xlu0 %2920 }
 0x804   : > { %v2982_v43 = vsel %vm1138_vm5, %v2921_v57, 0.0 }
 0x805   : > { %2983 = vadd.xlane.f32.xlu0 %v2982_v43 }
 0x83d   : > { %v6395_v51 = vpop.xlane.xlu1 %2944 }
 0x83e   : > { %4178 = vrcp.f32 %v6395_v51 }
 0x841   : > { %v6398_v24 = vpop.xlane.xlu0 %2941 }
 0x842   : > { %4180 = vrcp.f32 %v6398_v24 }
 0x846   : > { %v6401_v13 = vpop.xlane.xlu0 %2950 }
 0x847   : > { %4182 = vrcp.f32 %v6401_v13 }
 0x848   : > { %v4179_v2 = vpop.eup %4178 }
 0x849   : > { %v3005_v23 = vmul.f32 %v4179_v2, %v6241_v34 }
 0x84a   : > { %v6405_v22 = vpop.xlane.xlu0 %2947 }
 0x84b   : > { %4184 = vrcp.f32 %v6405_v22  ;;  %3214 = vrot.lane.b32.xlu1 %v3005_v23, %s4408_s12  ;;  %v3053_v28 = vmul.f32 %v3005_v23, %v6220_v20 }
 0x84c   : > { %v4181_v5 = vpop.eup %4180 }
 0x84d   : > { %v3004_v49 = vmul.f32 %v4181_v5, %v6253_v39 }
 0x84e   : > { %v6411_v8 = vpop.xlane.xlu0 %2953  ;;  %v6417_v57 = vpop.xlane.xlu1 %2956 }
 0x84f   : > { %3086 = vrot.lane.b32.xlu1 %v3053_v28, %s4407_s10  ;;  %3212 = vrot.lane.b32.xlu0 %v3004_v49, %s4408_s12  ;;  %4186 = vrcp.f32 %v6411_v8  ;;  %v3052_v34 = vmul.f32 %v3004_v49, %v6224_v7 }
 0x850   : > { %4188 = vrcp.f32 %v6417_v57 }
 0x851   : > { %v4183_v36 = vpop.eup %4182 }
 0x852   : > { %v3007_v43 = vmul.f32 %v4183_v36, %v6269_v61  ;;  %v6421_v20 = vpop.xlane.xlu0 %2959  ;;  %v6428_v7 = vpop.xlane.xlu1 %2962 }
 0x853   : > { %3084 = vrot.lane.b32.xlu0 %v3052_v34, %s4407_s10  ;;  %4190 = vrcp.f32 %v6421_v20 }
 0x854   : > { %3218 = vrot.lane.b32.xlu1 %v3007_v43, %s4408_s12  ;;  %v3055_v23 = vmul.f32 %v3007_v43, %v6231_v40  ;;  %4192 = vrcp.f32 %v6428_v7 }
 0x855   : > { %v4185_v39 = vpop.eup %4184 }
 0x856   : > { %v3006_v2 = vmul.f32 %v4185_v39, %v6285_v62  ;;  %v6431_v5 = vpop.xlane.xlu0 %2965  ;;  %v6441_v34 = vpop.xlane.xlu1 %2968 }
 0x857   : > { %4194 = vrcp.f32 %v6431_v5 }
 0x858   : > { %3216 = vrot.lane.b32.xlu1 %v3006_v2, %s4408_s12  ;;  %v3054_v62 = vmul.f32 %v3006_v2, %v6239_v6  ;;  %4196 = vrcp.f32 %v6441_v34 }
 0x859   : > { %v4187_v61 = vpop.eup %4186 }
 0x85a   : > { %v3008_v28 = vmul.f32 %v4187_v61, %v6265_v60  ;;  %v4189_v49 = vpop.eup %4188  ;;  %v6445_v43 = vpop.xlane.xlu0 %2971 }
 0x85b   : > { %v3009_v60 = vmul.f32 %v4189_v49, %v6297_v48  ;;  %4198 = vrcp.f32 %v6445_v43 }
 0x85c   : > { %3090 = vrot.lane.b32.xlu1 %v3055_v23, %s4407_s10  ;;  %3220 = vrot.lane.b32.xlu0 %v3008_v28, %s4408_s12  ;;  %v3056_v40 = vmul.f32 %v3008_v28, %v6228_v18  ;;  %v6455_v23 = vpop.xlane.xlu1 %2974 }
 0x85d   : > { %v4191_v36 = vpop.eup %4190  ;;  %v3057_v39 = vmul.f32 %v3009_v60, %v6251_v21  ;;  %4200 = vrcp.f32 %v6455_v23 }
 0x85e   : > { %v3010_v6 = vmul.f32 %v4191_v36, %v6281_v25  ;;  %v4193_v18 = vpop.eup %4192  ;;  %v6459_v61 = vpop.xlane.xlu0 %2977 }
 0x85f   : > { %v3011_v25 = vmul.f32 %v4193_v18, %v6309_v26  ;;  %4202 = vrcp.f32 %v6459_v61 }
 0x860   : > { %3088 = vrot.lane.b32.xlu1 %v3054_v62, %s4407_s10  ;;  %3092 = vrot.lane.b32.xlu0 %v3056_v40, %s4407_s10  ;;  %v3058_v2 = vmul.f32 %v3010_v6, %v6236_v54  ;;  %v6469_v49 = vpop.xlane.xlu1 %2980 }
 0x861   : > { %v4195_v48 = vpop.eup %4194  ;;  %v3059_v28 = vmul.f32 %v3011_v25, %v6263_v4  ;;  %4204 = vrcp.f32 %v6469_v49 }
 0x862   : > { %v3012_v21 = vmul.f32 %v4195_v48, %v6294_v15  ;;  %v4197_v54 = vpop.eup %4196 }
 0x863   : > { %v3013_v15 = vmul.f32 %v4197_v54, %v6317_v56 }
 0x864   : > { %3222 = vrot.lane.b32.xlu1 %v3009_v60, %s4408_s12  ;;  %3224 = vrot.lane.b32.xlu0 %v3010_v6, %s4408_s12  ;;  %v3060_v62 = vmul.f32 %v3012_v21, %v6248_v44 }
 0x865   : > { %v4199_v26 = vpop.eup %4198  ;;  %v3061_v4 = vmul.f32 %v3013_v15, %v6279_v38 }
 0x866   : > { %v3014_v40 = vmul.f32 %v4199_v26, %v6306_v42 }
 0x867   : > { %v4201_v36 = vpop.eup %4200 }
 0x868   : > { %3094 = vrot.lane.b32.xlu1 %v3057_v39, %s4407_s10  ;;  %3096 = vrot.lane.b32.xlu0 %v3058_v2, %s4407_s10  ;;  %v3062_v44 = vmul.f32 %v3014_v40, %v6260_v41  ;;  %v3015_v56 = vmul.f32 %v4201_v36, %v6323_v59 }
 0x869   : > { %v4203_v60 = vpop.eup %4202 }
 0x86a   : > { %v3016_v42 = vmul.f32 %v4203_v60, %v6315_v9  ;;  %v3063_v38 = vmul.f32 %v3015_v56, %v6292_v45 }
 0x86b   : > { %v4205_v39 = vpop.eup %4204 }
 0x86c   : > { %3226 = vrot.lane.b32.xlu1 %v3011_v25, %s4408_s12  ;;  %3228 = vrot.lane.b32.xlu0 %v3012_v21, %s4408_s12  ;;  %v3064_v41 = vmul.f32 %v3016_v42, %v6274_v10  ;;  %v3017_v18 = vmul.f32 %v4205_v39, %v6327_v50 }
 0x86e   : > { %v6480_v6 = vpop.xlane.xlu1 %2986  ;;  %v3065_v59 = vmul.f32 %v3017_v18, %v6304_v3 }
 0x86f   : > { %4206 = vrcp.f32 %v6480_v6 }
 0x870   : > { %3098 = vrot.lane.b32.xlu1 %v3059_v28, %s4407_s10  ;;  %3100 = vrot.lane.b32.xlu0 %v3060_v62, %s4407_s10 }
 0x874   : > { %3230 = vrot.lane.b32.xlu1 %v3013_v15, %s4408_s12  ;;  %3232 = vrot.lane.b32.xlu0 %v3014_v40, %s4408_s12 }
 0x878   : > { %3102 = vrot.lane.b32.xlu1 %v3061_v4, %s4407_s10  ;;  %3104 = vrot.lane.b32.xlu0 %v3062_v44, %s4407_s10 }
 0x879   : > { %v4207_v9 = vpop.eup %4206 }
 0x87a   : > { %v3019_v2 = vmul.f32 %v4207_v9, %v6335_v12 }
 0x87c   : > { %3234 = vrot.lane.b32.xlu1 %v3015_v56, %s4408_s12  ;;  %3236 = vrot.lane.b32.xlu0 %v3016_v42, %s4408_s12  ;;  %v3067_v45 = vmul.f32 %v3019_v2, %v6332_v58 }
 0x880   : > { %3106 = vrot.lane.b32.xlu1 %v3063_v38, %s4407_s10  ;;  %3108 = vrot.lane.b32.xlu0 %v3064_v41, %s4407_s10 }
 0x884   : > { %3238 = vrot.lane.b32.xlu1 %v3017_v18, %s4408_s12 }
 0x888   : > { %3110 = vrot.lane.b32.xlu1 %v3065_v59, %s4407_s10 }
 0x88c   : > { %3242 = vrot.lane.b32.xlu1 %v3019_v2, %s4408_s12 }
 0x890   : > { %3114 = vrot.lane.b32.xlu1 %v3067_v45, %s4407_s10 }
 0x892   : > { %v6500_v10 = vpop.xlane.xlu0 %2983 }
 0x893   : > { %7320 = vst [vmem:[#allocation114_spill] sm:$0xff] %v6500_v10  ;;  %4208 = vrcp.f32 %v6500_v10 }
 0x894   : > { %4210 = vlog2.f32 %v5258_v31  ;;  %v7331_v31 = vld [vmem:[#allocation78_spill] sm:$0xff] }
 0x895   : > { %4212 = vlog2.f32 %v5260_v27 }
 0x89d   : > { %v4209_v50 = vpop.eup %4208 }
 0x89e   : > { %v3018_v48 = vmul.f32 %v4209_v50, %v6353_v16 }
 0x8a0   : > { %3240 = vrot.lane.b32.xlu0 %v3018_v48, %s4408_s12  ;;  %v3066_v3 = vmul.f32 %v3018_v48, %v6346_v11 }
 0x8a4   : > { %3112 = vrot.lane.b32.xlu0 %v3066_v3, %s4407_s10 }
 0x8bd   : > { %v6507_v12 = vpop.permute.xlu1 %3214 }
 0x8c1   : > { %v3087_v25 = vpop.permute.xlu1 %3086  ;;  %v6509_v21 = vpop.permute.xlu0 %3212 }
 0x8c2   : > { %v3135_v58 = vsel %vm1138_vm5, %v3087_v25, 0.0 }
 0x8c3   : > { %3136 = vadd.xlane.f32.xlu1 %v3135_v58 }
 0x8c5   : > { %v3085_v28 = vpop.permute.xlu0 %3084 }
 0x8c6   : > { %v6512_v54 = vpop.permute.xlu1 %3218  ;;  %v3132_v62 = vsel %vm1138_vm5, %v3085_v28, 0.0 }
 0x8c7   : > { %3133 = vadd.xlane.f32.xlu0 %v3132_v62 }
 0x8ca   : > { %v6515_v16 = vpop.permute.xlu1 %3216 }
 0x8ce   : > { %v3091_v26 = vpop.permute.xlu1 %3090  ;;  %v6518_v15 = vpop.permute.xlu0 %3220 }
 0x8cf   : > { %v3141_v11 = vsel %vm1138_vm5, %v3091_v26, 0.0 }
 0x8d0   : > { %3142 = vadd.xlane.f32.xlu0 %v3141_v11 }
 0x8d2   : > { %v3089_v40 = vpop.permute.xlu1 %3088  ;;  %v3093_v36 = vpop.permute.xlu0 %3092 }
 0x8d3   : > { %v3138_v4 = vsel %vm1138_vm5, %v3089_v40, 0.0  ;;  %v3144_v60 = vsel %vm1138_vm5, %v3093_v36, 0.0 }
 0x8d4   : > { %3139 = vadd.xlane.f32.xlu0 %v3138_v4 }
 0x8d6   : > { %v6521_v44 = vpop.permute.xlu1 %3222  ;;  %v6524_v56 = vpop.permute.xlu0 %3224 }
 0x8d8   : > { %3145 = vadd.xlane.f32.xlu0 %v3144_v60 }
 0x8da   : > { %v3095_v42 = vpop.permute.xlu1 %3094  ;;  %v3097_v39 = vpop.permute.xlu0 %3096 }
 0x8db   : > { %v3147_v38 = vsel %vm1138_vm5, %v3095_v42, 0.0  ;;  %v3150_v41 = vsel %vm1138_vm5, %v3097_v39, 0.0 }
 0x8dc   : > { %3148 = vadd.xlane.f32.xlu1 %v3147_v38  ;;  %3151 = vadd.xlane.f32.xlu0 %v3150_v41 }
 0x8de   : > { %v6528_v18 = vpop.permute.xlu1 %3226  ;;  %v6530_v59 = vpop.permute.xlu0 %3228 }
 0x8e2   : > { %v3099_v9 = vpop.permute.xlu1 %3098  ;;  %v3101_v45 = vpop.permute.xlu0 %3100 }
 0x8e3   : > { %v3153_v2 = vsel %vm1138_vm5, %v3099_v9, 0.0  ;;  %v3156_v50 = vsel %vm1138_vm5, %v3101_v45, 0.0 }
 0x8e4   : > { %3154 = vadd.xlane.f32.xlu1 %v3153_v2  ;;  %3157 = vadd.xlane.f32.xlu0 %v3156_v50 }
 0x8e6   : > { %v6534_v48 = vpop.permute.xlu1 %3230  ;;  %v6536_v3 = vpop.permute.xlu0 %3232 }
 0x8ea   : > { %v3103_v25 = vpop.permute.xlu1 %3102  ;;  %v3105_v28 = vpop.permute.xlu0 %3104 }
 0x8eb   : > { %v3159_v58 = vsel %vm1138_vm5, %v3103_v25, 0.0  ;;  %v3162_v62 = vsel %vm1138_vm5, %v3105_v28, 0.0  ;;  %v7325_v28 = vld [vmem:[#allocation72_spill] sm:$0xff] }
 0x8ec   : > { %3160 = vadd.xlane.f32.xlu1 %v3159_v58  ;;  %3163 = vadd.xlane.f32.xlu0 %v3162_v62  ;;  %v7324_v58 = vld [vmem:[#allocation71_spill] sm:$0xff]  ;;  %v7326_v62 = vld [vmem:[#allocation73_spill] sm:$0xff] }
 0x8ed   : > { %4214 = vlog2.f32 %v7324_v58 }
 0x8ee   : > { %v6540_v26 = vpop.permute.xlu1 %3234  ;;  %v6542_v11 = vpop.permute.xlu0 %3236  ;;  %4216 = vlog2.f32 %v5264_v30  ;;  %v7333_v30 = vld [vmem:[#allocation80_spill] sm:$0xff] }
 0x8ef   : > { %4218 = vlog2.f32 %v7325_v28  ;;  %v7336_v28 = vld [vmem:[#allocation83_spill] sm:$0xff] }
 0x8f0   : > { %4220 = vlog2.f32 %v7326_v62 }
 0x8f2   : > { %v3107_v40 = vpop.permute.xlu1 %3106  ;;  %v3109_v36 = vpop.permute.xlu0 %3108 }
 0x8f3   : > { %v3165_v4 = vsel %vm1138_vm5, %v3107_v40, 0.0  ;;  %v3168_v60 = vsel %vm1138_vm5, %v3109_v36, 0.0  ;;  %v7328_v40 = vld [vmem:[#allocation75_spill] sm:$0xff]  ;;  %v7330_v36 = vld [vmem:[#allocation77_spill] sm:$0xff] }
 0x8f4   : > { %3166 = vadd.xlane.f32.xlu1 %v3165_v4  ;;  %3169 = vadd.xlane.f32.xlu0 %v3168_v60  ;;  %v7329_v4 = vld [vmem:[#allocation76_spill] sm:$0xff]  ;;  %v7332_v60 = vld [vmem:[#allocation79_spill] sm:$0xff] }
 0x8f6   : > { %v6546_v42 = vpop.permute.xlu1 %3238 }
 0x8f7   : > { %7321 = vst [vmem:[#allocation115_spill] sm:$0xff] %v6546_v42 }
 0x8fa   : > { %v3111_v38 = vpop.permute.xlu1 %3110 }
 0x8fb   : > { %v3171_v39 = vsel %vm1138_vm5, %v3111_v38, 0.0 }
 0x8fc   : > { %3172 = vadd.xlane.f32.xlu1 %v3171_v39 }
 0x8fe   : > { %v6549_v41 = vpop.permute.xlu1 %3242 }
 0x8ff   : > { %7322 = vst [vmem:[#allocation116_spill] sm:$0xff] %v6549_v41 }
 0x902   : > { %v3115_v9 = vpop.permute.xlu1 %3114 }
 0x903   : > { %v3177_v2 = vsel %vm1138_vm5, %v3115_v9, 0.0 }
 0x904   : > { %3178 = vadd.xlane.f32.xlu1 %v3177_v2  ;;  %v7334_v2 = vld [vmem:[#allocation81_spill] sm:$0xff] }
 0x912   : > { %v6552_v45 = vpop.permute.xlu0 %3240 }
 0x913   : > { %7323 = vst [vmem:[#allocation117_spill] sm:$0xff] %v6552_v45  ;;  %v7340_v45 = vld [vmem:[#allocation87_spill] sm:$0xff] }
 0x915   : > { %3290 = vrot.lane.b32.xlu1 %v5915_v35, %s4406_s26  ;;  %v7327_v35 = vld [vmem:[#allocation74_spill] sm:$0xff] }
 0x916   : > { %v3113_v50 = vpop.permute.xlu0 %3112  ;;  %4222 = vlog2.f32 %v7327_v35 }
 0x917   : > { %v3174_v25 = vsel %vm1138_vm5, %v3113_v50, 0.0  ;;  %4224 = vlog2.f32 %v7328_v40  ;;  %v7337_v40 = vld [vmem:[#allocation84_spill] sm:$0xff] }
 0x918   : > { %3175 = vadd.xlane.f32.xlu0 %v3174_v25  ;;  %4226 = vlog2.f32 %v7329_v4  ;;  %v7335_v25 = vld [vmem:[#allocation82_spill] sm:$0xff] }
 0x919   : > { %4228 = vlog2.f32 %v7330_v36 }
 0x91a   : > { %4230 = vlog2.f32 %v7331_v31 }
 0x91b   : > { %4232 = vlog2.f32 %v7332_v60  ;;  %v7339_v60 = vld [vmem:[#allocation86_spill] sm:$0xff] }
 0x91c   : > { %4234 = vlog2.f32 %v7333_v30 }
 0x91d   : > { %4236 = vlog2.f32 %v6395_v51  ;;  %v7338_v51 = vld [vmem:[#allocation85_spill] sm:$0xff] }
 0x91e   : > { %4238 = vlog2.f32 %v7334_v2 }
 0x91f   : > { %4240 = vlog2.f32 %v7335_v25 }
 0x92e   : > { %3288 = vrot.lane.b32.xlu0 %v5912_v47, %s4406_s26  ;;  %v4211_v47 = vpop.eup %4210  ;;  %4242 = vlog2.f32 %v7336_v28  ;;  %s4342_s26 = sshll.u32 %s4409_s25, 4  ;;  %s4343_s26 = int_to_ptr.vmem [resolvable:$false] %s4342_s26 }
 0x92f   : > { %v4213_v27 = vpop.eup %4212  ;;  %4244 = vlog2.f32 %v6398_v24  ;;  %v1655_v2 = vmul.f32 0.6931472, %v4211_v47  ;;  %s4344_s10 = scalar_lea.vmem %s4343_s26, 4096  ;;  %p4345_p0 = scmp.lt.s32.totalorder %s6909_s20, %s4343_s26 }
 0x930   : > { %v4215_v38 = vpop.eup %4214  ;;  %4246 = vlog2.f32 %v7337_v40  ;;  %v2088_v25 = vmul.f32 0.6931472, %v4213_v27  ;;  %p4346_p1 = scmp.lt.s32.totalorder %s4344_s10, %s4338_s24 }
 0x931   : > { %v4217_v39 = vpop.eup %4216  ;;  %4248 = vlog2.f32 %v5318_v32  ;;  %v1220_v30 = vmul.f32 0.6931472, %v4215_v38  ;;  %v7341_v32 = vld [vmem:[#allocation88_spill] sm:$0xff]  ;;  %v7342_v38 = vld [vmem:[#allocation89_spill] sm:$0xff] }
 0x932   : > { %v4219_v9 = vpop.eup %4218  ;;  %4250 = vlog2.f32 %v7338_v51  ;;  %v2086_v24 = vmul.f32 0.6931472, %v4217_v39  ;;  %v1813_v51 = vsub.f32 %v1655_v2, %v6016_v14  ;;  %v3310_v14 = vsel %vm3308_vm9, %v7286_v53, %v6507_v12  ;;  %v7343_v2 = vld [vmem:[#allocation90_spill] sm:$0xff]  ;;  %p4347_p2 = por %p4346_p1, %p4345_p0 }
 0x933   : > { %v4221_v50 = vpop.eup %4220  ;;  %4252 = vlog2.f32 %v7339_v60  ;;  %v6584_v40 = vmul.f32 0.6931472, %v4219_v9 }
 0x934   : > { %v4223_v58 = vpop.eup %4222  ;;  %4254 = vlog2.f32 %v7340_v45  ;;  %v6582_v10 = vmul.f32 0.6931472, %v4221_v50  ;;  %v2246_v50 = vsub.f32 %v2088_v25, %v6021_v17  ;;  %v2245_v12 = vsub.f32 %v2086_v24, %v5998_v29  ;;  %p4348_p3 = pnand %p4347_p2, %p4341_p13 }
 0x935   : > { %v4225_v62 = vpop.eup %4224  ;;  %4256 = vlog2.f32 %v7341_v32  ;;  %v1222_v42 = vmul.f32 0.6931472, %v4223_v58 }
 0x936   : > { %v4227_v35 = vpop.eup %4226  ;;  %4258 = vlog2.f32 %v7342_v38  ;;  %v6589_v27 = vmul.f32 0.6931472, %v4225_v62 }
 0x937   : > { %v4229_v4 = vpop.eup %4228  ;;  %v1653_v47 = vmul.f32 0.6931472, %v4227_v35  ;;  %4260 = vlog2.f32 %v5369_v0  ;;  %v1380_v39 = vsub.f32 %v1222_v42, %v6010_v19  ;;  %v7344_v42 = vld [vmem:[#allocation91_spill] sm:$0xff] }
 0x938   : > { %v4231_v36 = vpop.eup %4230  ;;  %v6594_v9 = vmul.f32 0.6931472, %v4229_v4  ;;  %4262 = vlog2.f32 %v6401_v13  ;;  %v1379_v13 = vsub.f32 %v1220_v30, %v5993_v46 }
 0x939   : > { %v4233_v31 = vpop.eup %4232  ;;  %4264 = vlog2.f32 %v7343_v2  ;;  %v1812_v0 = vsub.f32 %v1653_v47, %v5995_v63  ;;  %v1829_v32 = vadd.f32 %v1813_v51, %v1380_v39  ;;  %v3327_v63 = vsel %vm3325_vm10, %v3310_v14, %v6341_v55  ;;  %v7345_v47 = vld [vmem:[#allocation92_spill] sm:$0xff]  ;;  %v7346_v14 = vld [vmem:[#allocation93_spill] sm:$0xff]  ;;  %v7347_v2 = vld [vmem:[#allocation94_spill] sm:$0xff] }
 0x93a   : > { %v4235_v28 = vpop.eup %4234  ;;  %4266 = vlog2.f32 %v7344_v42  ;;  %v3309_v51 = vsel %vm3308_vm9, %v7287_v37, %v6509_v21  ;;  %v1226_v24 = vmul.f32 0.6931472, %v4231_v36 }
 0x93b   : > { %v4237_v41 = vpop.eup %4236  ;;  %4268 = vlog2.f32 %v6405_v22  ;;  %v1828_v29 = vadd.f32 %v1812_v0, %v1379_v13  ;;  %v6620_v22 = vmul.f32 0.6931472, %v4233_v31  ;;  %v3326_v0 = vsel %vm3325_vm10, %v3309_v51, %v6351_v52  ;;  %v7349_v51 = vld [vmem:[#allocation96_spill] sm:$0xff] }
 0x93c   : > { %v4239_v60 = vpop.eup %4238  ;;  %v3023_v62 = vmul.f32 0.6931472, %v4237_v41  ;;  %v2262_v41 = vadd.f32 %v2246_v50, %v1829_v32  ;;  %4270 = vlog2.f32 %v7345_v47  ;;  %v1659_v32 = vmul.f32 0.6931472, %v4235_v28 }
 0x93d   : > { %v4241_v45 = vpop.eup %4240  ;;  %4272 = vlog2.f32 %v7346_v14 }
 0x93e   : > { %v4243_v58 = vpop.eup %4242  ;;  %4274 = vlog2.f32 %v7347_v2  ;;  %v6632_v31 = vmul.f32 0.6931472, %v4241_v45 }
 0x93f   : > { %v4245_v35 = vpop.eup %4244  ;;  %4276 = vlog2.f32 %v6411_v8  ;;  %v6637_v28 = vmul.f32 0.6931472, %v4243_v58 }
 0x940   : > { %v4247_v17 = vpop.eup %4246  ;;  %v3021_v46 = vmul.f32 0.6931472, %v4245_v35  ;;  %v2261_v35 = vadd.f32 %v2245_v12, %v1828_v29  ;;  %4278 = vlog2.f32 %v5423_v1  ;;  %v7351_v29 = vld [vmem:[#allocation66_spill] sm:$0xff] }
 0x941   : > { %v4249_v53 = vpop.eup %4248  ;;  %v6639_v52 = vmul.f32 0.6931472, %v4247_v17 }
 0x942   : > { %v4251_v25 = vpop.eup %4250  ;;  %v6644_v45 = vmul.f32 0.6931472, %v4249_v53 }
 0x943   : > { %v4253_v30 = vpop.eup %4252 }
 0x944   : > { %v4255_v50 = vpop.eup %4254  ;;  %v6650_v1 = vmul.f32 0.6931472, %v4253_v30 }
 0x945   : > { %v4257_v21 = vpop.eup %4256  ;;  %v6652_v58 = vmul.f32 0.6931472, %v4255_v50 }
 0x946   : > { %v4259_v36 = vpop.eup %4258  ;;  %v6658_v53 = vmul.f32 0.6931472, %v4257_v21  ;;  %v7355_v21 = vld [vmem:[#allocation99_spill] sm:$0xff] }
 0x947   : > { %v4261_v13 = vpop.eup %4260 }
 0x948   : > { %v4263_v12 = vpop.eup %4262  ;;  %v6669_v2 = vmul.f32 0.6931472, %v4261_v13 }
 0x949   : > { %v3027_v50 = vmul.f32 0.6931472, %v4263_v12  ;;  %v7358_v12 = vld [vmem:[#allocation52_spill] sm:$0xff] }
 0x950   : > { %v3137_v19 = vpop.xlane.xlu1 %3136 }
 0x951   : > { %v3181_v4 = vsub.f32 %v3023_v62, %v3137_v19  ;;  %v6630_v19 = vmul.f32 0.6931472, %v4239_v60  ;;  %v1815_v60 = vsub.f32 %v1659_v32, %v6003_v33  ;;  %v2248_v33 = vsub.f32 %v6584_v40, %v7351_v29 }
 0x953   : > { %v3344_v38 = vsel %vm3342_vm11, %v3327_v63, %v3181_v4  ;;  %v4265_v63 = vpop.eup %4264 }
 0x954   : > { %v3361_v39 = vsel %vm3359_vm12, %v3344_v38, %v2262_v41  ;;  %v3134_v55 = vpop.xlane.xlu0 %3133  ;;  %v7348_v41 = vld [vmem:[#allocation95_spill] sm:$0xff]  ;;  %v6648_v38 = vmul.f32 0.6931472, %v4251_v25  ;;  %v4267_v17 = vpop.eup %4266 }
 0x955   : > { %v3378_v62 = vsel %vm3376_vm13, %v3361_v39, 0.0  ;;  %v3180_v37 = vsub.f32 %v3021_v46, %v3134_v55  ;;  %4280 = vlog2.f32 %v7348_v41  ;;  %v7350_v46 = vld [vmem:[#allocation35_spill] sm:$0xff]  ;;  %v7352_v39 = vld [vmem:[#allocation97_spill] sm:$0xff]  ;;  %v6662_v55 = vmul.f32 0.6931472, %v4259_v36  ;;  %v4269_v14 = vpop.eup %4268 }
 0x956   : > { %3394 = vst [vmem:[%s6627_s18 + $0x8] sm:$0xff] %v3378_v62  ;;  %4282 = vlog2.f32 %v7349_v51  ;;  %v1382_v47 = vsub.f32 %v1226_v24, %v7350_v46  ;;  %v7353_v25 = vld [vmem:[#allocation7_spill] sm:$0xff]  ;;  %v6675_v32 = vmul.f32 0.6931472, %v4267_v17  ;;  %v7356_v36 = vld [vmem:[#allocation21_spill] sm:$0xff] }
 0x957   : > { %v3343_v42 = vsel %vm3342_vm11, %v3326_v0, %v3180_v37  ;;  %4284 = vlog2.f32 %v6417_v57  ;;  %v3312_v30 = vsel %vm3308_vm9, %v7353_v25, %v6512_v54  ;;  %v7354_v37 = vld [vmem:[#allocation41_spill] sm:$0xff]  ;;  %v4271_v57 = vpop.eup %4270  ;;  %v3025_v46 = vmul.f32 0.6931472, %v4269_v14 }
 0x958   : > { %v3360_v4 = vsel %vm3359_vm12, %v3343_v42, %v2261_v35  ;;  %4286 = vlog2.f32 %v7352_v39  ;;  %v1831_v62 = vadd.f32 %v1815_v60, %v1382_v47  ;;  %v1814_v24 = vsub.f32 %v6589_v27, %v7354_v37  ;;  %v6677_v54 = vpop.eup %4272  ;;  %v7359_v60 = vld [vmem:[#allocation23_spill] sm:$0xff]  ;;  %v7361_v47 = vld [vmem:[#allocation98_spill] sm:$0xff] }
 0x959   : > { %v3377_v8 = vsel %vm3376_vm13, %v3360_v4, 0.0  ;;  %4288 = vlog2.f32 %v6421_v20  ;;  %v6673_v35 = vmul.f32 0.6931472, %v4265_v63  ;;  %v1381_v42 = vsub.f32 %v6582_v10, %v7356_v36  ;;  %v7357_v4 = vld [vmem:[#allocation54_spill] sm:$0xff]  ;;  %v6685_v41 = vpop.eup %4274  ;;  %v7360_v63 = vld [vmem:[#allocation8_spill] sm:$0xff] }
 0x95a   : > { %3393 = vst [vmem:[%s6627_s18] sm:$0xff] %v3377_v8  ;;  %4290 = vlog2.f32 %v7355_v21  ;;  %v2247_v27 = vsub.f32 %v6594_v9, %v7357_v4  ;;  %v2264_v13 = vadd.f32 %v2248_v33, %v1831_v62  ;;  %v3329_v20 = vsel %vm3325_vm10, %v3312_v30, %v7358_v12  ;;  %v4277_v10 = vpop.eup %4276  ;;  %v7363_v30 = vld [vmem:[#allocation47_spill] sm:$0xff]  ;;  %v7367_v12 = vld [vmem:[#allocation68_spill] sm:$0xff] }
 0x95b   : > { %v1816_v8 = vsub.f32 %v6630_v19, %v7359_v60  ;;  %v3311_v51 = vsel %vm3308_vm9, %v7360_v63, %v6515_v16  ;;  %4292 = vlog2.f32 %v7361_v47  ;;  %v1830_v9 = vadd.f32 %v1814_v24, %v1381_v42  ;;  %v6697_v25 = vpop.eup %4278  ;;  %v7362_v19 = vld [vmem:[#allocation101_spill] sm:$0xff] }
 0x95c   : > { %v6694_v29 = vmul.f32 0.6931472, %v4271_v57  ;;  %4294 = vlog2.f32 %v7362_v19  ;;  %v1383_v16 = vsub.f32 %v6620_v22, %v7363_v30  ;;  %v7365_v57 = vld [vmem:[#allocation60_spill] sm:$0xff]  ;;  %v7366_v22 = vld [vmem:[#allocation11_spill] sm:$0xff] }
 0x95d   : > { %v3143_v40 = vpop.xlane.xlu0 %3142  ;;  %v2263_v37 = vadd.f32 %v2247_v27, %v1830_v9  ;;  %4296 = vlog2.f32 %v6428_v7  ;;  %v3328_v21 = vsel %vm3325_vm10, %v3311_v51, %v7365_v57  ;;  %v3313_v42 = vsel %vm3308_vm9, %v7366_v22, %v6518_v15  ;;  %v7368_v7 = vld [vmem:[#allocation63_spill] sm:$0xff]  ;;  %v7369_v51 = vld [vmem:[#allocation100_spill] sm:$0xff] }
 0x95e   : > { %v3183_v0 = vsub.f32 %v3027_v50, %v3143_v40  ;;  %v7364_v40 = vld [vmem:[#allocation53_spill] sm:$0xff]  ;;  %v1832_v36 = vadd.f32 %v1816_v8, %v1383_v16  ;;  %4298 = vlog2.f32 %v6431_v5  ;;  %v7370_v15 = vld [vmem:[#allocation67_spill] sm:$0xff] }
 0x95f   : > { %v6703_v62 = vpop.eup %4280  ;;  %v2249_v24 = vsub.f32 %v6637_v28, %v7364_v40  ;;  %v1817_v28 = vsub.f32 %v6639_v52, %v7367_v12  ;;  %4300 = vlog2.f32 %v7369_v51  ;;  %v7371_v9 = vld [vmem:[#allocation31_spill] sm:$0xff]  ;;  %v7374_v16 = vld [vmem:[#allocation69_spill] sm:$0xff] }
 0x960   : > { %v3346_v17 = vsel %vm3342_vm11, %v3329_v20, %v3183_v0  ;;  %v6711_v0 = vpop.eup %4282  ;;  %v1818_v20 = vsub.f32 %v6650_v1, %v7368_v7  ;;  %v1385_v1 = vsub.f32 %v6644_v45, %v7371_v9  ;;  %v7376_v40 = vld [vmem:[#allocation103_spill] sm:$0xff]  ;;  %v7378_v12 = vld [vmem:[#allocation61_spill] sm:$0xff] }
 0x961   : > { %v3363_v33 = vsel %vm3359_vm12, %v3346_v17, %v2264_v13  ;;  %v3140_v39 = vpop.xlane.xlu0 %3139  ;;  %v3029_v13 = vmul.f32 0.6931472, %v4277_v10  ;;  %v4285_v27 = vpop.eup %4284  ;;  %v1384_v17 = vsub.f32 %v6632_v31, %v7370_v15  ;;  %v2265_v52 = vadd.f32 %v2249_v24, %v1832_v36  ;;  %v7377_v36 = vld [vmem:[#allocation17_spill] sm:$0xff] }
 0x962   : > { %v3380_v50 = vsel %vm3376_vm13, %v3363_v33, 0.0  ;;  %v3182_v14 = vsub.f32 %v3025_v46, %v3140_v39  ;;  %v6723_v63 = vpop.eup %4286  ;;  %v7372_v33 = vld [vmem:[#allocation37_spill] sm:$0xff]  ;;  %v7373_v39 = vld [vmem:[#allocation62_spill] sm:$0xff]  ;;  %v2251_v31 = vsub.f32 %v6658_v53, %v7374_v16  ;;  %v3031_v45 = vmul.f32 0.6931472, %v4285_v27  ;;  %v7386_v16 = vld [vmem:[#allocation55_spill] sm:$0xff] }
 0x963   : > { %3396 = vst [vmem:[%s6627_s18 + $0x18] sm:$0xff] %v3380_v50  ;;  %v4289_v47 = vpop.eup %4288  ;;  %v2250_v5 = vsub.f32 %v6648_v38, %v7372_v33  ;;  %v3330_v19 = vsel %vm3325_vm10, %v3313_v42, %v7373_v39  ;;  %v7375_v50 = vld [vmem:[#allocation9_spill] sm:$0xff]  ;;  %4302 = vlog2.f32 %v7376_v40  ;;  %v1833_v38 = vadd.f32 %v1817_v28, %v1384_v17  ;;  %v7384_v39 = vld [vmem:[#allocation43_spill] sm:$0xff] }
 0x964   : > { %v3345_v4 = vsel %vm3342_vm11, %v3328_v21, %v3182_v14  ;;  %v6736_v30 = vpop.eup %4290  ;;  %v3314_v14 = vsel %vm3308_vm9, %v7375_v50, %v6521_v44  ;;  %v1834_v24 = vadd.f32 %v1818_v20, %v1385_v1  ;;  %v3315_v22 = vsel %vm3308_vm9, %v7377_v36, %v6524_v56  ;;  %v7380_v17 = vld [vmem:[#allocation49_spill] sm:$0xff] }
 0x965   : > { %v3362_v60 = vsel %vm3359_vm12, %v3345_v4, %v2263_v37  ;;  %v3146_v8 = vpop.xlane.xlu0 %3145  ;;  %v3033_v4 = vmul.f32 0.6931472, %v4289_v47  ;;  %v6750_v44 = vpop.eup %4292  ;;  %v2102_v27 = vmul.f32 0.6931472, %v6677_v54  ;;  %4304 = vlog2.f32 %v6441_v34  ;;  %v7381_v34 = vld [vmem:[#allocation6_spill] sm:$0xff] }
 0x966   : > { %v3379_v46 = vsel %vm3376_vm13, %v3362_v60, 0.0  ;;  %v3184_v10 = vsub.f32 %v3029_v13, %v3146_v8  ;;  %v2266_v13 = vadd.f32 %v2250_v5, %v1833_v38  ;;  %v3331_v28 = vsel %vm3325_vm10, %v3314_v14, %v7378_v12  ;;  %v6757_v20 = vpop.eup %4294  ;;  %v7379_v60 = vld [vmem:[#allocation102_spill] sm:$0xff]  ;;  %v7391_v12 = vld [vmem:[#allocation5_spill] sm:$0xff] }
 0x967   : > { %3395 = vst [vmem:[%s6627_s18 + $0x10] sm:$0xff] %v3379_v46  ;;  %4306 = vlog2.f32 %v7379_v60  ;;  %v2267_v56 = vadd.f32 %v2251_v31, %v1834_v24  ;;  %v4297_v15 = vpop.eup %4296  ;;  %v1819_v54 = vsub.f32 %v6662_v55, %v7380_v17  ;;  %v3332_v46 = vsel %vm3325_vm10, %v3315_v22, %v7381_v34  ;;  %v7382_v47 = vld [vmem:[#allocation106_spill] sm:$0xff]  ;;  %v7390_v22 = vld [vmem:[#allocation19_spill] sm:$0xff] }
 0x968   : > { %v3347_v37 = vsel %vm3342_vm11, %v3330_v19, %v3184_v10  ;;  %4308 = vlog2.f32 %v6445_v43  ;;  %v4299_v5 = vpop.eup %4298  ;;  %v1386_v55 = vsub.f32 %v6652_v58, %v7384_v39  ;;  %v7385_v43 = vld [vmem:[#allocation70_spill] sm:$0xff]  ;;  %v2252_v31 = vsub.f32 %v6673_v35, %v7386_v16  ;;  %v7389_v58 = vld [vmem:[#allocation105_spill] sm:$0xff] }
 0x969   : > { %v3364_v57 = vsel %vm3359_vm12, %v3347_v37, %v2265_v52  ;;  %v3149_v21 = vpop.xlane.xlu1 %3148  ;;  %v3152_v7 = vpop.xlane.xlu0 %3151  ;;  %4310 = vlog2.f32 %v7382_v47  ;;  %v7383_v52 = vld [vmem:[#allocation28_spill] sm:$0xff]  ;;  %v1387_v19 = vsub.f32 %v6669_v2, %v7385_v43  ;;  %v3035_v24 = vmul.f32 0.6931472, %v4297_v15  ;;  %v7393_v15 = vld [vmem:[#allocation109_spill] sm:$0xff] }
 0x96a   : > { %v3381_v53 = vsel %vm3376_vm13, %v3364_v57, 0.0  ;;  %v3185_v42 = vsub.f32 %v3031_v45, %v3149_v21  ;;  %v3186_v51 = vsub.f32 %v3033_v4, %v3152_v7  ;;  %v1820_v9 = vsub.f32 %v6675_v32, %v7383_v52  ;;  %v4301_v14 = vpop.eup %4300  ;;  %v7387_v32 = vld [vmem:[#allocation25_spill] sm:$0xff]  ;;  %v7388_v45 = vld [vmem:[#allocation14_spill] sm:$0xff]  ;;  %v7395_v47 = vld [vmem:[#allocation24_spill] sm:$0xff] }
 0x96b   : > { %3397 = vst [vmem:[%s6627_s18 + $0x20] sm:$0xff] %v3381_v53  ;;  %v2253_v37 = vsub.f32 %v2102_v27, %v7387_v32  ;;  %v3316_v40 = vsel %vm3308_vm9, %v7388_v45, %v6528_v18  ;;  %4312 = vlog2.f32 %v7389_v58  ;;  %v1835_v57 = vadd.f32 %v1819_v54, %v1386_v55  ;;  %v7394_v54 = vld [vmem:[#allocation104_spill] sm:$0xff]  ;;  %v7398_v55 = vld [vmem:[#allocation18_spill] sm:$0xff] }
 0x96c   : > { %v3348_v8 = vsel %vm3342_vm11, %v3331_v28, %v3185_v42  ;;  %v3349_v33 = vsel %vm3342_vm11, %v3332_v46, %v3186_v51  ;;  %v1671_v2 = vmul.f32 0.6931472, %v6685_v41  ;;  %v1240_v35 = vmul.f32 0.6931472, %v6697_v25  ;;  %v7400_v32 = vld [vmem:[#allocation34_spill] sm:$0xff] }
 0x96d   : > { %v3365_v10 = vsel %vm3359_vm12, %v3348_v8, %v2266_v13  ;;  %v3366_v50 = vsel %vm3359_vm12, %v3349_v33, %v2267_v56  ;;  %v1836_v36 = vadd.f32 %v1820_v9, %v1387_v19  ;;  %v3317_v53 = vsel %vm3308_vm9, %v7390_v22, %v6530_v59  ;;  %v4303_v18 = vpop.eup %4302  ;;  %v7392_v8 = vld [vmem:[#allocation29_spill] sm:$0xff] }
 0x96e   : > { %v3382_v1 = vsel %vm3376_vm13, %v3365_v10, 0.0  ;;  %v3383_v38 = vsel %vm3376_vm13, %v3366_v50, 0.0  ;;  %v3037_v4 = vmul.f32 0.6931472, %v4299_v5  ;;  %v2268_v13 = vadd.f32 %v2252_v31, %v1835_v57  ;;  %v7399_v31 = vld [vmem:[#allocation32_spill] sm:$0xff] }
 0x96f   : > { %3398 = vst [vmem:[%s6627_s18 + $0x28] sm:$0xff] %v3382_v1  ;;  %3399 = vst [vmem:[%s6627_s18 + $0x30] sm:$0xff] %v3383_v38  ;;  %v2104_v27 = vmul.f32 0.6931472, %v6703_v62  ;;  %4314 = vlog2.f32 %v6455_v23  ;;  %v3333_v41 = vsel %vm3325_vm10, %v3316_v40, %v7391_v12  ;;  %v2269_v25 = vadd.f32 %v2253_v37, %v1836_v36  ;;  %v4305_v59 = vpop.eup %4304  ;;  %v7397_v1 = vld [vmem:[#allocation38_spill] sm:$0xff]  ;;  %v7404_v12 = vld [vmem:[#allocation111_spill] sm:$0xff] }
 0x970   : > { %v1673_v7 = vmul.f32 0.6931472, %v6711_v0  ;;  %v1821_v51 = vsub.f32 %v1671_v2, %v7392_v8  ;;  %4316 = vlog2.f32 %v6459_v61  ;;  %v3334_v62 = vsel %vm3325_vm10, %v3317_v53, %v7393_v15  ;;  %v7396_v61 = vld [vmem:[#allocation33_spill] sm:$0xff]  ;;  %v7401_v38 = vld [vmem:[#allocation10_spill] sm:$0xff]  ;;  %v7407_v15 = vld [vmem:[#allocation64_spill] sm:$0xff] }
 0x971   : > { %v3155_v21 = vpop.xlane.xlu1 %3154  ;;  %v3158_v28 = vpop.xlane.xlu0 %3157  ;;  %4318 = vlog2.f32 %v7394_v54  ;;  %v2106_v34 = vmul.f32 0.6931472, %v6736_v30  ;;  %v1388_v52 = vsub.f32 %v6694_v29, %v7395_v47  ;;  %v2254_v9 = vsub.f32 %v2104_v27, %v7396_v61  ;;  %v7406_v8 = vld [vmem:[#allocation50_spill] sm:$0xff]  ;;  %v7409_v47 = vld [vmem:[#allocation36_spill] sm:$0xff] }
 0x972   : > { %v3187_v42 = vsub.f32 %v3035_v24, %v3155_v21  ;;  %v3188_v56 = vsub.f32 %v3037_v4, %v3158_v28  ;;  %v4307_v17 = vpop.eup %4306  ;;  %v1822_v33 = vsub.f32 %v1673_v7, %v7397_v1  ;;  %v3318_v30 = vsel %vm3308_vm9, %v7398_v55, %v6534_v48  ;;  %v7411_v1 = vld [vmem:[#allocation40_spill] sm:$0xff] }
 0x973   : > { %v4309_v10 = vpop.eup %4308  ;;  %v3039_v19 = vmul.f32 0.6931472, %v4305_v59  ;;  %v1837_v16 = vadd.f32 %v1821_v51, %v1388_v52  ;;  %v1389_v50 = vsub.f32 %v1240_v35, %v7399_v31  ;;  %v1242_v29 = vmul.f32 0.6931472, %v6723_v63  ;;  %v7402_v35 = vld [vmem:[#allocation108_spill] sm:$0xff]  ;;  %v7415_v31 = vld [vmem:[#allocation110_spill] sm:$0xff] }
 0x974   : > { %v3350_v60 = vsel %vm3342_vm11, %v3333_v41, %v3187_v42  ;;  %v3351_v46 = vsel %vm3342_vm11, %v3334_v62, %v3188_v56  ;;  %v4311_v39 = vpop.eup %4310  ;;  %v2255_v37 = vsub.f32 %v2106_v34, %v7400_v32  ;;  %v1675_v40 = vmul.f32 0.6931472, %v6750_v44  ;;  %v7405_v56 = vld [vmem:[#allocation39_spill] sm:$0xff]  ;;  %v7410_v52 = vld [vmem:[#allocation44_spill] sm:$0xff] }
 0x975   : > { %v3367_v23 = vsel %vm3359_vm12, %v3350_v60, %v2268_v13  ;;  %v3368_v5 = vsel %vm3359_vm12, %v3351_v46, %v2269_v25  ;;  %v3319_v24 = vsel %vm3308_vm9, %v7401_v38, %v6536_v3  ;;  %v3041_v48 = vmul.f32 0.6931472, %v4309_v10  ;;  %v4313_v57 = vpop.eup %4312  ;;  %v7403_v13 = vld [vmem:[#allocation45_spill] sm:$0xff] }
 0x976   : > { %v3384_v0 = vsel %vm3376_vm13, %v3367_v23, 0.0  ;;  %v3385_v43 = vsel %vm3376_vm13, %v3368_v5, 0.0  ;;  %v2270_v2 = vadd.f32 %v2254_v9, %v1837_v16  ;;  %v1838_v21 = vadd.f32 %v1822_v33, %v1389_v50 }
 0x977   : > { %3400 = vst [vmem:[%s6627_s18 + $0x38] sm:$0xff] %v3384_v0  ;;  %3401 = vst [vmem:[%s6627_s18 + $0x40] sm:$0xff] %v3385_v43  ;;  %4320 = vlog2.f32 %v6469_v49  ;;  %v3335_v63 = vsel %vm3325_vm10, %v3318_v30, %v7402_v35  ;;  %v1677_v22 = vmul.f32 0.6931472, %v4311_v39  ;;  %v2108_v53 = vmul.f32 0.6931472, %v4301_v14 }
 0x978   : > { %v1823_v3 = vsub.f32 %v1675_v40, %v7403_v13  ;;  %v2271_v27 = vadd.f32 %v2255_v37, %v1838_v21  ;;  %v3336_v41 = vsel %vm3325_vm10, %v3319_v24, %v7404_v12  ;;  %v1244_v49 = vmul.f32 0.6931472, %v4303_v18  ;;  %v7408_v18 = vld [vmem:[#allocation20_spill] sm:$0xff]  ;;  %v7412_v39 = vld [vmem:[#allocation107_spill] sm:$0xff]  ;;  %v7414_v43 = vld [vmem:[#allocation42_spill] sm:$0xff] }
 0x979   : > { %v3161_v45 = vpop.xlane.xlu1 %3160  ;;  %v3164_v36 = vpop.xlane.xlu0 %3163  ;;  %v2110_v25 = vmul.f32 0.6931472, %v4313_v57  ;;  %v1390_v59 = vsub.f32 %v1242_v29, %v7405_v56  ;;  %v1824_v51 = vsub.f32 %v1677_v22, %v7406_v8  ;;  %v2256_v62 = vsub.f32 %v2108_v53, %v7407_v15  ;;  %v7416_v24 = vld [vmem:[#allocation57_spill] sm:$0xff]  ;;  %v7418_v35 = vld [vmem:[#allocation51_spill] sm:$0xff] }
 0x97a   : > { %v3189_v58 = vsub.f32 %v3039_v19, %v3161_v45  ;;  %v3190_v42 = vsub.f32 %v3041_v48, %v3164_v36  ;;  %v4315_v4 = vpop.eup %4314  ;;  %v1679_v34 = vmul.f32 0.6931472, %v4307_v17  ;;  %v3320_v0 = vsel %vm3308_vm9, %v7408_v18, %v6540_v26  ;;  %v7413_v17 = vld [vmem:[#allocation13_spill] sm:$0xff]  ;;  %v7424_v18 = vld [vmem:[#allocation59_spill] sm:$0xff] }
 0x97b   : > { %v4317_v14 = vpop.eup %4316  ;;  %v3043_v10 = vmul.f32 0.6931472, %v4315_v4  ;;  %4322 = vlog2.f32 %v7409_v47  ;;  %v1391_v61 = vsub.f32 %v1244_v49, %v7410_v52  ;;  %v1839_v9 = vadd.f32 %v1823_v3, %v1390_v59  ;;  %v7417_v48 = vld [vmem:[#allocation113_spill] sm:$0xff]  ;;  %v7422_v49 = vld [vmem:[#allocation112_spill] sm:$0xff] }
 0x97c   : > { %v3352_v44 = vsel %vm3342_vm11, %v3335_v63, %v3189_v58  ;;  %v3353_v60 = vsel %vm3342_vm11, %v3336_v41, %v3190_v42  ;;  %v4319_v54 = vpop.eup %4318  ;;  %v2257_v33 = vsub.f32 %v2110_v25, %v7411_v1  ;;  %4324 = vlog2.f32 %v7412_v39  ;;  %v7419_v36 = vld [vmem:[#allocation65_spill] sm:$0xff]  ;;  %v7421_v42 = vld [vmem:[#allocation12_spill] sm:$0xff]  ;;  %v7428_v1 = vld [vmem:[#allocation15_spill] sm:$0xff] }
 0x97d   : > { %v3369_v28 = vsel %vm3359_vm12, %v3352_v44, %v2270_v2  ;;  %v3370_v23 = vsel %vm3359_vm12, %v3353_v60, %v2271_v27  ;;  %v3321_v55 = vsel %vm3308_vm9, %v7413_v17, %v6542_v11  ;;  %v3045_v26 = vmul.f32 0.6931472, %v4317_v14  ;;  %v7420_v44 = vld [vmem:[#allocation115_spill] sm:$0xff] }
 0x97e   : > { %v3386_v7 = vsel %vm3376_vm13, %v3369_v28, 0.0  ;;  %v3387_v46 = vsel %vm3376_vm13, %v3370_v23, 0.0  ;;  %4326 = vlog2.f32 %v7414_v43  ;;  %v1840_v19 = vadd.f32 %v1824_v51, %v1391_v61  ;;  %v7426_v61 = vld [vmem:[#allocation30_spill] sm:$0xff]  ;;  %v7429_v17 = vld [vmem:[#allocation27_spill] sm:$0xff] }
 0x97f   : > { %3402 = vst [vmem:[%s6627_s18 + $0x48] sm:$0xff] %v3386_v7  ;;  %3403 = vst [vmem:[%s6627_s18 + $0x50] sm:$0xff] %v3387_v46  ;;  %v2272_v16 = vadd.f32 %v2256_v62, %v1839_v9  ;;  %v3337_v50 = vsel %vm3325_vm10, %v3320_v0, %v7415_v31  ;;  %v1246_v32 = vmul.f32 0.6931472, %v6757_v20  ;;  %v2112_v37 = vmul.f32 0.6931472, %v4319_v54 }
 0x980   : > { %v1825_v11 = vsub.f32 %v1679_v34, %v7416_v24  ;;  %v2273_v58 = vadd.f32 %v2257_v33, %v1840_v19  ;;  %v3338_v57 = vsel %vm3325_vm10, %v3321_v55, %v7417_v48  ;;  %4328 = vlog2.f32 %v6480_v6  ;;  %v7423_v62 = vld [vmem:[#allocation26_spill] sm:$0xff]  ;;  %v7427_v9 = vld [vmem:[#allocation116_spill] sm:$0xff] }
 0x981   : > { %v3167_v5 = vpop.xlane.xlu1 %3166  ;;  %v3170_v29 = vpop.xlane.xlu0 %3169  ;;  %v1392_v63 = vsub.f32 %v1246_v32, %v7418_v35  ;;  %v2258_v22 = vsub.f32 %v2112_v37, %v7419_v36  ;;  %v3322_v4 = vsel %vm3308_vm9, %v7421_v42, %v7420_v44  ;;  %v7425_v46 = vld [vmem:[#allocation46_spill] sm:$0xff]  ;;  %4330 = vlog2.f32 %v7426_v61  ;;  %v7433_v48 = vld [vmem:[#allocation56_spill] sm:$0xff] }
 0x982   : > { %v3191_v30 = vsub.f32 %v3043_v10, %v3167_v5  ;;  %v3192_v40 = vsub.f32 %v3045_v26, %v3170_v29  ;;  %v4321_v38 = vpop.eup %4320  ;;  %v3339_v25 = vsel %vm3325_vm10, %v3322_v4, %v7422_v49  ;;  %v3324_v33 = vsel %vm3308_vm9, %v7428_v1, %v7427_v9  ;;  %v7430_v26 = vld [vmem:[#allocation48_spill] sm:$0xff]  ;;  %v7431_v31 = vld [vmem:[#allocation114_spill] sm:$0xff] }
 0x983   : > { %v3047_v3 = vmul.f32 0.6931472, %v4321_v38  ;;  %v1841_v6 = vadd.f32 %v1825_v11, %v1392_v63  ;;  %4332 = vlog2.f32 %v7429_v17  ;;  %v7432_v38 = vld [vmem:[#allocation22_spill] sm:$0xff]  ;;  %v7435_v63 = vld [vmem:[#allocation117_spill] sm:$0xff]  ;;  %v7436_v36 = vld [vmem:[#allocation16_spill] sm:$0xff] }
 0x984   : > { %v3354_v45 = vsel %vm3342_vm11, %v3337_v50, %v3191_v30  ;;  %v3355_v20 = vsel %vm3342_vm11, %v3338_v57, %v3192_v40  ;;  %4334 = vlog2.f32 %v7430_v26 }
 0x985   : > { %v3371_v2 = vsel %vm3359_vm12, %v3354_v45, %v2272_v16  ;;  %v3372_v53 = vsel %vm3359_vm12, %v3355_v20, %v2273_v58  ;;  %v4323_v41 = vpop.eup %4322  ;;  %v2274_v28 = vadd.f32 %v2258_v22, %v1841_v6  ;;  %4336 = vlog2.f32 %v7431_v31 }
 0x986   : > { %v3388_v21 = vsel %vm3376_vm13, %v3371_v2, 0.0  ;;  %v3389_v13 = vsel %vm3376_vm13, %v3372_v53, 0.0  ;;  %v4325_v7 = vpop.eup %4324  ;;  %v1683_v59 = vmul.f32 0.6931472, %v4323_v41  ;;  %v7434_v2 = vld [vmem:[#allocation58_spill] sm:$0xff]  ;;  %v3323_v22 = vsel %vm3308_vm9, %v7436_v36, %v7435_v63 }
 0x987   : > { %3404 = vst [vmem:[%s6627_s18 + $0x58] sm:$0xff] %v3388_v21  ;;  %3405 = vst [vmem:[%s6627_s18 + $0x60] sm:$0xff] %v3389_v13  ;;  %v1250_v15 = vmul.f32 0.6931472, %v4325_v7 }
 0x988   : > { %v4327_v14 = vpop.eup %4326  ;;  %v1827_v23 = vsub.f32 %v1683_v59, %v7423_v62 }
 0x989   : > { %v3173_v27 = vpop.xlane.xlu1 %3172  ;;  %v2116_v54 = vmul.f32 0.6931472, %v4327_v14  ;;  %v1394_v0 = vsub.f32 %v1250_v15, %v7424_v18 }
 0x98a   : > { %v3193_v12 = vsub.f32 %v3047_v3, %v3173_v27  ;;  %v4329_v51 = vpop.eup %4328 }
 0x98b   : > { %v2260_v10 = vsub.f32 %v2116_v54, %v7425_v46  ;;  %v3051_v47 = vmul.f32 0.6931472, %v4329_v51  ;;  %v1843_v52 = vadd.f32 %v1827_v23, %v1394_v0  ;;  %v4331_v50 = vpop.eup %4330 }
 0x98c   : > { %v3356_v60 = vsel %vm3342_vm11, %v3339_v25, %v3193_v12  ;;  %v1681_v37 = vmul.f32 0.6931472, %v4331_v50 }
 0x98d   : > { %v3373_v56 = vsel %vm3359_vm12, %v3356_v60, %v2274_v28  ;;  %v2276_v55 = vadd.f32 %v2260_v10, %v1843_v52  ;;  %v4333_v29 = vpop.eup %4332 }
 0x98e   : > { %v3390_v8 = vsel %vm3376_vm13, %v3373_v56, 0.0  ;;  %v4335_v32 = vpop.eup %4334  ;;  %v1248_v40 = vmul.f32 0.6931472, %v4333_v29  ;;  %v1826_v24 = vsub.f32 %v1681_v37, %v7432_v38 }
 0x98f   : > { %3406 = vst [vmem:[%s6627_s18 + $0x68] sm:$0xff] %v3390_v8  ;;  %v4337_v45 = vpop.eup %4336  ;;  %v2114_v11 = vmul.f32 0.6931472, %v4335_v32 }
 0x990   : > { %v1393_v57 = vsub.f32 %v1248_v40, %v7433_v48  ;;  %v3049_v20 = vmul.f32 0.6931472, %v4337_v45 }
 0x991   : > { %v3179_v34 = vpop.xlane.xlu1 %3178  ;;  %v2259_v21 = vsub.f32 %v2114_v11, %v7434_v2 }
 0x992   : > { %v3195_v5 = vsub.f32 %v3051_v47, %v3179_v34  ;;  %v1842_v35 = vadd.f32 %v1826_v24, %v1393_v57 }
 0x994   : > { %v2275_v42 = vadd.f32 %v2259_v21, %v1842_v35 }
 0x995   : > { %v3291_v39 = vpop.permute.xlu1 %3290 }
 0x996   : > { %v3341_v30 = vsel %vm3325_vm10, %v3324_v33, %v3291_v39 }
 0x997   : > { %v3358_v43 = vsel %vm3342_vm11, %v3341_v30, %v3195_v5 }
 0x998   : > { %v3375_v19 = vsel %vm3359_vm12, %v3358_v43, %v2276_v55 }
 0x999   : > { %v3392_v16 = vsel %vm3376_vm13, %v3375_v19, 0.0 }
 0x99a   : > { %3408 = vst [vmem:[%s6627_s18 + $0x78] sm:$0xff] %v3392_v16 }
 0x9a5   : > { %v3176_v58 = vpop.xlane.xlu0 %3175 }
 0x9a6   : > { %v3194_v53 = vsub.f32 %v3049_v20, %v3176_v58 }
 0x9a9   : > { %v3289_v44 = vpop.permute.xlu0 %3288 }
 0x9aa   : > { %v3340_v4 = vsel %vm3325_vm10, %v3323_v22, %v3289_v44 }
 0x9ab   : > { %v3357_v13 = vsel %vm3342_vm11, %v3340_v4, %v3194_v53 }
 0x9ac   : > { %v3374_v3 = vsel %vm3359_vm12, %v3357_v13, %v2275_v42 }
 0x9ad   : > { %v3391_v6 = vsel %vm3376_vm13, %v3374_v3, 0.0 }
 0x9ae   : > { %3407 = vst [vmem:[%s6627_s18 + $0x70] sm:$0xff] %v3391_v6 }
 0x9af   : > { %4351 = shalt.err (!%p4348_p3)
}
 0x9b0   : > { %s4352_s12 = scalar_lea.hbm %s6907_s23, 2048  ;;  %s4356_s18 = scalar_lea.hbm %s6965_s8, 4096 }
 0x9b1   : > { %p4353_p4 = scmp.ne.s32.totalorder %s6907_s23, %s4352_s12  ;;  %p4357_p9 = scmp.lt.u32.totalorder %s6907_s23, %s6965_s8 }
 0x9b2   : > { %p4358_p10 = scmp.lt.u32.totalorder %s4356_s18, %s4352_s12  ;;  %p4360_p12 = scmp.lt.u32.totalorder %s4352_s12, %s6907_s23 }
 0x9b3   : > { %p4354_p7 = pnand %p4353_p4, %p4495_p5 }
 0x9b4   : > { %p4359_p11 = por %p4358_p10, %p4357_p9 }
 0x9b5   : > { %p4355_p8 = pneg %p4354_p7 }
 0x9b6   : > { %p4361_p13 = por %p4360_p12, %p4359_p11 }
 0x9b8   : > { %p4362_p0 = pnand %p4361_p13, %p4355_p8 }
 0x9ba   : > { %4365 = shalt.err (!%p4362_p0)
}
 0x9bb   : > { %s4410_s22 = smov 128   ;;  %s4411_s24 = smov 8  }
 0x9bc   : > { %3842 = dma.vmem_to_hbm [thread:$0]  (%p4495_p5), %s6909_s20, 2048, %s6907_s23, %s6916_s9, %s4410_s22, %s4410_s22, %s4411_s24  }
 0x9bd PF: > { %p3848_p1 = scmp.ge.s32.totalorder %s4400_s30, 2  ;;  %s3438_s25 = sand.u32 1, %s4388_s27  }
 0x9be   : > { %s3439_s26 = scalar_lea.sflag [#allocation3], %s3438_s25 }
 0x9bf   : > { %p3845_p2 = pnand %p3848_p1, %p4499_p6 }
 0x9c1   : > { %4383 = dma.done.wait (!%p3845_p2), %s3439_s26, 2048  }
 0x9c2   : > { %4385 = vsyncadd (!%p3845_p2), %s3439_s26, 4294965248  ;;  %p18_p3 = scmp.ge.s32.totalorder %s4482_s11, 4   ;;  %s7437_s27 = smov %s4392_s28 }
 0x9c3   : > { %s7438_s28 = smov %s4396_s29  ;;  %s7439_s29 = smov %s4493_s14 }
 0x9c4   : > { %s7440_s30 = smov %s4482_s11  ;;  %20 = sbr.rel (!%p18_p3) target bundleno = 3 (0x3), region = 87 }
 0x9cb   :  { %3444 = vsyncpa [#allocation3], 1 }
 0x9cc   :  { %3446 = vsyncpa [#allocation3 + $0x1], 1 }

</bundles_post_ra>
